<compile_context>
chip_gen: v7x
topology: tpu7x:2x2x1
jax: 0.10.0
libtpu: 0.0.40
codegen_flags: <defaults>
</compile_context>

<pallas_src>
import jax
import jax.numpy as jnp
from jax import lax
from jax.experimental import pallas as pl
from jax.experimental.pallas import tpu as pltpu


# ----------------------------------------------------------------------------
# shared compute block
# ----------------------------------------------------------------------------
def _sage_block(a_i8, h_full, x_rows, inv_deg, w_l, w_r, b):
    """One SAGEConv + L2-normalize + ReLU on a row tile.

    a_i8    : (TILE_N, N_pad)  int8   in-edge counts for this row tile
    h_full  : (N_pad, H_in)    bf16   full previous-layer features
    x_rows  : (TILE_N, H_in)   bf16   this tile's rows of h_full (root term)
    inv_deg : (TILE_N, 1)      f32    1 / max(in-degree, 1) for these rows
    w_l,w_r : (H_in, H_out)    bf16   neighbor / root projections
    b       : (1, H_out)       f32    lin_l bias
    """
    a = a_i8.astype(jnp.bfloat16)
    # mean aggregation: (sum over in-neighbors) * 1/deg, exact f32 scale
    neigh = jnp.dot(a, h_full, preferred_element_type=jnp.float32) * inv_deg
    out = (jnp.dot(neigh.astype(jnp.bfloat16), w_l,
                   preferred_element_type=jnp.float32)
           + jnp.dot(x_rows, w_r, preferred_element_type=jnp.float32)
           + b)
    # F.normalize(out, p=2, dim=1): x / max(||x||, eps)   (rsqrt -> EUP slot)
    ss = jnp.sum(out * out, axis=1, keepdims=True)
    out = out * lax.rsqrt(jnp.maximum(ss, 1e-24))
    return jnp.maximum(out, 0.0)  # ReLU


# ----------------------------------------------------------------------------
# kernels
# ----------------------------------------------------------------------------
def sage_layer_kernel(a_ref, xr_ref, inv_ref, h_ref, wl_ref, wr_ref, b_ref,
                      o_ref):
    out = _sage_block(a_ref[...], h_ref[...], xr_ref[...], inv_ref[...],
                      wl_ref[...], wr_ref[...], b_ref[...])
    o_ref[...] = out.astype(o_ref.dtype)


def sage_head_kernel(a_ref, h2r_ref, h1r_ref, inv_ref, h2_ref,
                     w3l_ref, w3r_ref, b3_ref,
                     wl1_ref, wl2_ref, wl3_ref, bl_ref, o_ref):
    """Fused SAGEConv3 + Linear([h1 | h2 | h3]) as three separate matmuls."""
    h3 = _sage_block(a_ref[...], h2_ref[...], h2r_ref[...], inv_ref[...],
                     w3l_ref[...], w3r_ref[...], b3_ref[...])
    o_ref[...] = (
        jnp.dot(h1r_ref[...], wl1_ref[...], preferred_element_type=jnp.float32)
        + jnp.dot(h2r_ref[...], wl2_ref[...],
                  preferred_element_type=jnp.float32)
        + jnp.dot(h3.astype(jnp.bfloat16), wl3_ref[...],
                  preferred_element_type=jnp.float32)
        + bl_ref[...])


def fused_gsage_kernel(a_ref, x_ref, inv_ref,
                       w1l_ref, w1r_ref, b1_ref,
                       w2l_ref, w2r_ref, b2_ref,
                       w3l_ref, w3r_ref, b3_ref,
                       wl1_ref, wl2_ref, wl3_ref, bl_ref, o_ref):
    """Small-graph fast path: all 3 SAGE layers + Linear, A resident."""
    a = a_ref[...].astype(jnp.bfloat16)   # upcast once, reused by all 3 layers
    inv = inv_ref[...]

    def sage(h_bf16, w_l, w_r, b):
        neigh = jnp.dot(a, h_bf16, preferred_element_type=jnp.float32) * inv
        out = (jnp.dot(neigh.astype(jnp.bfloat16), w_l,
                       preferred_element_type=jnp.float32)
               + jnp.dot(h_bf16, w_r, preferred_element_type=jnp.float32)
               + b)
        ss = jnp.sum(out * out, axis=1, keepdims=True)
        out = out * lax.rsqrt(jnp.maximum(ss, 1e-24))
        return jnp.maximum(out, 0.0).astype(jnp.bfloat16)

    h1 = sage(x_ref[...], w1l_ref[...], w1r_ref[...], b1_ref[...])
    h2 = sage(h1, w2l_ref[...], w2r_ref[...], b2_ref[...])
    h3 = sage(h2, w3l_ref[...], w3r_ref[...], b3_ref[...])
    o_ref[...] = (
        jnp.dot(h1, wl1_ref[...], preferred_element_type=jnp.float32)
        + jnp.dot(h2, wl2_ref[...], preferred_element_type=jnp.float32)
        + jnp.dot(h3, wl3_ref[...], preferred_element_type=jnp.float32)
        + bl_ref[...])


# ----------------------------------------------------------------------------
# pallas_call wrappers
# ----------------------------------------------------------------------------
def _round_up(n, m):
    return ((n + m - 1) // m) * m


def _pad2d(a, rows, cols, dtype):
    out = jnp.zeros((rows, cols), dtype)
    return out.at[:a.shape[0], :a.shape[1]].set(a.astype(dtype))


def _full_spec(shape):
    # whole-array block, block index never changes (resident across the grid)
    nd = len(shape)
    return pl.BlockSpec(shape, lambda i, _nd=nd: (0,) * _nd)


def _vmem_capacity_bytes():
    try:
        return int(pltpu.get_tpu_info().vmem_capacity_bytes)
    except Exception:
        return 64 * 1024 * 1024   # v7x per-TensorCore VMEM (most conservative)


def _compiler_params(vmem_bytes, parallel_grid=False):
    # leave headroom for Mosaic internal scratch: 0.75 * capacity
    # -> ~48 MiB on v7x (64 MiB phys), ~96 MiB on v5e/v6e (128 MiB phys)
    cap = int(0.75 * _vmem_capacity_bytes())
    limit = int(min(max(vmem_bytes, 8 << 20), cap))
    sem = ("parallel",) if parallel_grid else None
    return pltpu.CompilerParams(dimension_semantics=sem,
                                vmem_limit_bytes=limit)


def _sage_layer_call(a, h_prev, inv_deg, w_l, w_r, b, *, tile_n, h_out):
    n_pad = a.shape[0]
    h_in = h_prev.shape[1]
    grid = (n_pad // tile_n,)
    # double-buffered tiles + residents (counted x2: default double-buffering)
    vmem = (2 * tile_n * n_pad * 1          # A row tile (int8)
            + 2 * tile_n * h_in * 2         # root rows (bf16)
            + 2 * tile_n * 4                # 1/deg rows (f32)
            + 2 * tile_n * h_out * 2        # output tile (bf16)
            + 2 * n_pad * h_in * 2          # resident H
            + 2 * 2 * h_in * h_out * 2      # resident W_l, W_r
            + 2 * h_out * 4                 # bias
            + tile_n * n_pad * 2            # in-kernel bf16 upcast of A tile
            + tile_n * (h_in + 2 * h_out) * 4)  # f32 temporaries
    vmem = int(vmem * 1.3) + (2 << 20)
    return pl.pallas_call(
        sage_layer_kernel,
        out_shape=jax.ShapeDtypeStruct((n_pad, h_out), jnp.bfloat16),
        grid_spec=pltpu.PrefetchScalarGridSpec(
            num_scalar_prefetch=0,
            grid=grid,
            in_specs=[
                pl.BlockSpec((tile_n, n_pad), lambda i: (i, 0)),  # A row tile
                pl.BlockSpec((tile_n, h_in), lambda i: (i, 0)),   # root rows
                pl.BlockSpec((tile_n, 1), lambda i: (i, 0)),      # 1/deg rows
                _full_spec(h_prev.shape),                         # H resident
                _full_spec(w_l.shape),
                _full_spec(w_r.shape),
                _full_spec(b.shape),
            ],
            out_specs=pl.BlockSpec((tile_n, h_out), lambda i: (i, 0)),
        ),
        compiler_params=_compiler_params(vmem, parallel_grid=True),
    )(a, h_prev, inv_deg, h_prev, w_l, w_r, b)


def _sage_head_call(a, h2, h1, inv_deg, w3l, w3r, b3, wl1, wl2, wl3, bl, *,
                    tile_n, c_pad):
    n_pad = a.shape[0]
    h_pad = h2.shape[1]
    grid = (n_pad // tile_n,)
    vmem = (2 * tile_n * n_pad * 1
            + 2 * 2 * tile_n * h_pad * 2         # h1, h2 row tiles
            + 2 * tile_n * 4
            + 2 * tile_n * c_pad * 4             # output tile (f32)
            + 2 * n_pad * h_pad * 2              # resident h2
            + 2 * 2 * h_pad * h_pad * 2          # W3_l, W3_r
            + 2 * 3 * h_pad * c_pad * 2          # Wl1..3
            + 2 * (h_pad + c_pad) * 4            # biases
            + tile_n * n_pad * 2
            + tile_n * (h_pad + 2 * c_pad + h_pad) * 4)
    vmem = int(vmem * 1.3) + (2 << 20)
    return pl.pallas_call(
        sage_head_kernel,
        out_shape=jax.ShapeDtypeStruct((n_pad, c_pad), jnp.float32),
        grid_spec=pltpu.PrefetchScalarGridSpec(
            num_scalar_prefetch=0,
            grid=grid,
            in_specs=[
                pl.BlockSpec((tile_n, n_pad), lambda i: (i, 0)),  # A row tile
                pl.BlockSpec((tile_n, h_pad), lambda i: (i, 0)),  # h2 rows
                pl.BlockSpec((tile_n, h_pad), lambda i: (i, 0)),  # h1 rows
                pl.BlockSpec((tile_n, 1), lambda i: (i, 0)),      # 1/deg rows
                _full_spec(h2.shape),                             # h2 resident
                _full_spec(w3l.shape),
                _full_spec(w3r.shape),
                _full_spec(b3.shape),
                _full_spec(wl1.shape),
                _full_spec(wl2.shape),
                _full_spec(wl3.shape),
                _full_spec(bl.shape),
            ],
            out_specs=pl.BlockSpec((tile_n, c_pad), lambda i: (i, 0)),
        ),
        compiler_params=_compiler_params(vmem, parallel_grid=True),
    )(a, h2, h1, inv_deg, h2, w3l, w3r, b3, wl1, wl2, wl3, bl)


def _fused_call(a, x_p, inv_deg, weights, *, n_pad, c_pad, vmem):
    # no grid: whole operands placed in VMEM, A read from HBM exactly once
    return pl.pallas_call(
        fused_gsage_kernel,
        out_shape=jax.ShapeDtypeStruct((n_pad, c_pad), jnp.float32),
        compiler_params=_compiler_params(vmem),
    )(a, x_p, inv_deg, *weights)


def _fast_path_bytes(n_pad, f_pad, h_pad, c_pad):
    a = n_pad * n_pad * (1 + 2)                     # int8 input + bf16 upcast
    x = n_pad * f_pad * 2
    inter = n_pad * h_pad * (3 * 2 + 2 * 4)         # h1..h3 bf16 + f32 temps
    w = (f_pad + 5 * h_pad) * h_pad * 2 + 3 * h_pad * c_pad * 2
    out = n_pad * c_pad * 4
    return int(1.5 * (a + x + inter + w + out)) + (2 << 20)


def node_gsage_forward(x, edge_index, params, *, tile_n=256, force_tiled=False):
    """x: [N, F] float32, edge_index: [2, E] int (row 0 = src, row 1 = dst)."""
    n, f = x.shape
    h = params["w1_l"].shape[1]
    c = params["w_lin"].shape[1]

    f_pad = _round_up(f, 128)
    h_pad = _round_up(h, 128)
    c_pad = _round_up(c, 128)

    assert tile_n % 128 == 0
    n_pad = _round_up(n, 128)
    # keep >= 2 grid steps where possible (megacore sharding + DMA pipelining)
    if n_pad // tile_n < 2:
        tile_n = max(128, ((n_pad // 2) // 128) * 128)
    tile_n = min(tile_n, n_pad)
    n_pad = _round_up(n_pad, tile_n)

    # --- glue: dense in-edge COUNT adjacency in int8 (1.0 exact; duplicates
    # counted, matching PyG scatter-mean semantics), plus exact f32 1/deg.
    # Padded A rows/cols are zero, so padded nodes never contaminate real
    # rows; padded rows of h1/h2 become bias-only garbage but are sliced off.
    # TODO(synk): int8 counts overflow for >127 parallel edges between a pair.
    src = edge_index[0].astype(jnp.int32)
    dst = edge_index[1].astype(jnp.int32)
    a_cnt = (jnp.zeros((n_pad, n_pad), jnp.int32)
             .at[dst, src].add(1).astype(jnp.int8))
    deg = jnp.zeros((n_pad,), jnp.float32).at[dst].add(1.0)
    inv_deg = (1.0 / jnp.maximum(deg, 1.0)).reshape(n_pad, 1)

    x_p = _pad2d(x, n_pad, f_pad, jnp.bfloat16)

    w1l = _pad2d(params["w1_l"], f_pad, h_pad, jnp.bfloat16)
    w1r = _pad2d(params["w1_r"], f_pad, h_pad, jnp.bfloat16)
    w2l = _pad2d(params["w2_l"], h_pad, h_pad, jnp.bfloat16)
    w2r = _pad2d(params["w2_r"], h_pad, h_pad, jnp.bfloat16)
    w3l = _pad2d(params["w3_l"], h_pad, h_pad, jnp.bfloat16)
    w3r = _pad2d(params["w3_r"], h_pad, h_pad, jnp.bfloat16)
    b1 = _pad2d(params["b1"], 1, h_pad, jnp.float32)
    b2 = _pad2d(params["b2"], 1, h_pad, jnp.float32)
    b3 = _pad2d(params["b3"], 1, h_pad, jnp.float32)
    # final Linear split into three (h_pad, c_pad) blocks (no in-kernel concat)
    wl1 = _pad2d(params["w_lin"][0 * h:1 * h], h_pad, c_pad, jnp.bfloat16)
    wl2 = _pad2d(params["w_lin"][1 * h:2 * h], h_pad, c_pad, jnp.bfloat16)
    wl3 = _pad2d(params["w_lin"][2 * h:3 * h], h_pad, c_pad, jnp.bfloat16)
    bl = _pad2d(params["b_lin"], 1, c_pad, jnp.float32)

    est = _fast_path_bytes(n_pad, f_pad, h_pad, c_pad)
    if (not force_tiled) and est <= int(0.5 * _vmem_capacity_bytes()):
        weights = (w1l, w1r, b1, w2l, w2r, b2, w3l, w3r, b3,
                   wl1, wl2, wl3, bl)
        out = _fused_call(a_cnt, x_p, inv_deg, weights,
                          n_pad=n_pad, c_pad=c_pad, vmem=est)
    else:
        h1 = _sage_layer_call(a_cnt, x_p, inv_deg, w1l, w1r, b1,
                              tile_n=tile_n, h_out=h_pad)
        h2 = _sage_layer_call(a_cnt, h1, inv_deg, w2l, w2r, b2,
                              tile_n=tile_n, h_out=h_pad)
        out = _sage_head_call(a_cnt, h2, h1, inv_deg, w3l, w3r, b3,
                              wl1, wl2, wl3, bl, tile_n=tile_n, c_pad=c_pad)
    return out[:n, :c]


# ----------------------------------------------------------------------------
# params + reference + test
# ----------------------------------------------------------------------------
def init_params(key, num_features, num_classes, hidden_size):
    ks = jax.random.split(key, 12)
    s = 0.1

    def w(k, shape):
        return jax.random.normal(k, shape, jnp.float32) * s

    return {
        # SAGEConv 1: lin_l (neighbors, with bias), lin_r (root, no bias)
        "w1_l": w(ks[0], (num_features, hidden_size)),
        "b1":   w(ks[1], (1, hidden_size)),
        "w1_r": w(ks[2], (num_features, hidden_size)),
        # SAGEConv 2
        "w2_l": w(ks[3], (hidden_size, hidden_size)),
        "b2":   w(ks[4], (1, hidden_size)),
        "w2_r": w(ks[5], (hidden_size, hidden_size)),
        # SAGEConv 3
        "w3_l": w(ks[6], (hidden_size, hidden_size)),
        "b3":   w(ks[7], (1, hidden_size)),
        "w3_r": w(ks[8], (hidden_size, hidden_size)),
        # Final Linear(3*hidden -> num_classes)
        "w_lin": w(ks[9], (3 * hidden_size, num_classes)),
        "b_lin": w(ks[10], (1, num_classes)),
    }


def _reference(x, edge_index, params):
    """Pure-JAX f32 reference with PyTorch (PyG SAGEConv) semantics."""
    n = x.shape[0]
    src = edge_index[0].astype(jnp.int32)
    dst = edge_index[1].astype(jnp.int32)
    a = jnp.zeros((n, n), jnp.float32).at[dst, src].add(1.0)
    deg = jnp.sum(a, axis=1, keepdims=True)
    a_mean = a / jnp.maximum(deg, 1.0)

    def layer(hh, w_l, b, w_r):
        out = (a_mean @ hh) @ w_l + b + hh @ w_r
        norm = jnp.sqrt(jnp.sum(out * out, axis=1, keepdims=True))
        out = out / jnp.maximum(norm, 1e-12)
        return jnp.maximum(out, 0.0)

    h1 = layer(x, params["w1_l"], params["b1"], params["w1_r"])
    h2 = layer(h1, params["w2_l"], params["b2"], params["w2_r"])
    h3 = layer(h2, params["w3_l"], params["b3"], params["w3_r"])
    cat = jnp.concatenate([h1, h2, h3], axis=1)
    return cat @ params["w_lin"] + params["b_lin"]


if __name__ == "__main__":
    NUM_NODES = 256
    NUM_FEATURES = 16
    HIDDEN = 20          # module default hidden_size
    NUM_CLASSES = 7
    NUM_EDGES = 1024

    key = jax.random.PRNGKey(0)
    k_x, k_e, k_p = jax.random.split(key, 3)

    x = jax.random.normal(k_x, (NUM_NODES, NUM_FEATURES), jnp.float32)
    edge_index = jax.random.randint(
        k_e, (2, NUM_EDGES), 0, NUM_NODES, dtype=jnp.int32)

    params = init_params(k_p, NUM_FEATURES, NUM_CLASSES, HIDDEN)
    ref = _reference(x, edge_index, params)

    # small-graph fast path: single fused pallas_call, A resident in VMEM
    out_fast = jax.block_until_ready(node_gsage_forward(x, edge_index, params))
    # general path: per-layer row-tiled streaming kernels
    out_tiled = jax.block_until_ready(
        node_gsage_forward(x, edge_index, params, tile_n=128, force_tiled=True))

    for out in (out_fast, out_tiled):
        assert out.shape == (NUM_NODES, NUM_CLASSES)
        assert bool(jnp.all(jnp.isfinite(out)))
        max_err = float(jnp.max(jnp.abs(out - ref)))
        assert max_err < 0.1, f"max abs error vs f32 reference: {max_err}"

    print("KERNEL_OK")
</pallas_src>

<mosaic_0001>
module attributes {stable_mosaic.version = 11 : i64} {
  func.func @fused_gsage_kernel(%arg0: memref<256x256xi8, #tpu.memory_space<vmem>>, %arg1: memref<256x128xbf16, #tpu.memory_space<vmem>>, %arg2: memref<256x1xf32, #tpu.memory_space<vmem>>, %arg3: memref<128x128xbf16, #tpu.memory_space<vmem>>, %arg4: memref<128x128xbf16, #tpu.memory_space<vmem>>, %arg5: memref<1x128xf32, #tpu.memory_space<vmem>>, %arg6: memref<128x128xbf16, #tpu.memory_space<vmem>>, %arg7: memref<128x128xbf16, #tpu.memory_space<vmem>>, %arg8: memref<1x128xf32, #tpu.memory_space<vmem>>, %arg9: memref<128x128xbf16, #tpu.memory_space<vmem>>, %arg10: memref<128x128xbf16, #tpu.memory_space<vmem>>, %arg11: memref<1x128xf32, #tpu.memory_space<vmem>>, %arg12: memref<128x128xbf16, #tpu.memory_space<vmem>>, %arg13: memref<128x128xbf16, #tpu.memory_space<vmem>>, %arg14: memref<128x128xbf16, #tpu.memory_space<vmem>>, %arg15: memref<1x128xf32, #tpu.memory_space<vmem>>, %arg16: memref<256x128xf32, #tpu.memory_space<vmem>>) attributes {dimension_semantics = [], scalar_prefetch = 0 : i64, scratch_operands = 0 : i64, tpu.core_type = #tpu.core_type<tc>} {
    %c0 = arith.constant 0 : index
    %c0_0 = arith.constant 0 : index
    %0 = vector.load %arg0[%c0, %c0_0] : memref<256x256xi8, #tpu.memory_space<vmem>>, vector<256x256xi8>
    %1 = arith.sitofp %0 : vector<256x256xi8> to vector<256x256xbf16>
    %c0_1 = arith.constant 0 : index
    %c0_2 = arith.constant 0 : index
    %2 = vector.load %arg2[%c0_1, %c0_2] : memref<256x1xf32, #tpu.memory_space<vmem>>, vector<256x1xf32>
    %c0_3 = arith.constant 0 : index
    %c0_4 = arith.constant 0 : index
    %3 = vector.load %arg1[%c0_3, %c0_4] : memref<256x128xbf16, #tpu.memory_space<vmem>>, vector<256x128xbf16>
    %c0_5 = arith.constant 0 : index
    %c0_6 = arith.constant 0 : index
    %4 = vector.load %arg3[%c0_5, %c0_6] : memref<128x128xbf16, #tpu.memory_space<vmem>>, vector<128x128xbf16>
    %c0_7 = arith.constant 0 : index
    %c0_8 = arith.constant 0 : index
    %5 = vector.load %arg4[%c0_7, %c0_8] : memref<128x128xbf16, #tpu.memory_space<vmem>>, vector<128x128xbf16>
    %c0_9 = arith.constant 0 : index
    %c0_10 = arith.constant 0 : index
    %6 = vector.load %arg5[%c0_9, %c0_10] : memref<1x128xf32, #tpu.memory_space<vmem>>, vector<1x128xf32>
    %cst = arith.constant dense<0.000000e+00> : vector<256x128xf32>
    %7 = tpu.matmul %1, %3, %cst {dimension_numbers = #tpu.dot_dimension_numbers<[1], [0], [0], [1], [0, 0, 1, 1], [], []>} : vector<256x256xbf16>, vector<256x128xbf16>, vector<256x128xf32> -> vector<256x128xf32>
    %8 = vector.broadcast %2 : vector<256x1xf32> to vector<256x128xf32>
    %9 = arith.mulf %7, %8 : vector<256x128xf32>
    %10 = arith.truncf %9 : vector<256x128xf32> to vector<256x128xbf16>
    %cst_11 = arith.constant dense<0.000000e+00> : vector<256x128xf32>
    %11 = tpu.matmul %10, %4, %cst_11 {dimension_numbers = #tpu.dot_dimension_numbers<[1], [0], [0], [1], [0, 0, 1, 1], [], []>} : vector<256x128xbf16>, vector<128x128xbf16>, vector<256x128xf32> -> vector<256x128xf32>
    %cst_12 = arith.constant dense<0.000000e+00> : vector<256x128xf32>
    %12 = tpu.matmul %3, %5, %cst_12 {dimension_numbers = #tpu.dot_dimension_numbers<[1], [0], [0], [1], [0, 0, 1, 1], [], []>} : vector<256x128xbf16>, vector<128x128xbf16>, vector<256x128xf32> -> vector<256x128xf32>
    %13 = arith.addf %11, %12 : vector<256x128xf32>
    %14 = vector.broadcast %6 : vector<1x128xf32> to vector<256x128xf32>
    %15 = arith.addf %13, %14 : vector<256x128xf32>
    %16 = arith.mulf %15, %15 : vector<256x128xf32>
    %cst_13 = arith.constant dense<0.000000e+00> : vector<256xf32>
    %17 = vector.multi_reduction <add>, %16, %cst_13 [1] : vector<256x128xf32> to vector<256xf32>
    %18 = vector.shape_cast %17 : vector<256xf32> to vector<256x1xf32>
    %cst_14 = arith.constant 1.000000e-24 : f32
    %19 = vector.broadcast %cst_14 : f32 to vector<256x1xf32>
    %20 = arith.maximumf %18, %19 : vector<256x1xf32>
    %21 = math.rsqrt %20 : vector<256x1xf32>
    %22 = vector.broadcast %21 : vector<256x1xf32> to vector<256x128xf32>
    %23 = arith.mulf %15, %22 : vector<256x128xf32>
    %cst_15 = arith.constant 0.000000e+00 : f32
    %24 = vector.broadcast %cst_15 : f32 to vector<256x128xf32>
    %25 = arith.maximumf %23, %24 : vector<256x128xf32>
    %26 = arith.truncf %25 : vector<256x128xf32> to vector<256x128xbf16>
    %c0_16 = arith.constant 0 : index
    %c0_17 = arith.constant 0 : index
    %27 = vector.load %arg6[%c0_16, %c0_17] : memref<128x128xbf16, #tpu.memory_space<vmem>>, vector<128x128xbf16>
    %c0_18 = arith.constant 0 : index
    %c0_19 = arith.constant 0 : index
    %28 = vector.load %arg7[%c0_18, %c0_19] : memref<128x128xbf16, #tpu.memory_space<vmem>>, vector<128x128xbf16>
    %c0_20 = arith.constant 0 : index
    %c0_21 = arith.constant 0 : index
    %29 = vector.load %arg8[%c0_20, %c0_21] : memref<1x128xf32, #tpu.memory_space<vmem>>, vector<1x128xf32>
    %cst_22 = arith.constant dense<0.000000e+00> : vector<256x128xf32>
    %30 = tpu.matmul %1, %26, %cst_22 {dimension_numbers = #tpu.dot_dimension_numbers<[1], [0], [0], [1], [0, 0, 1, 1], [], []>} : vector<256x256xbf16>, vector<256x128xbf16>, vector<256x128xf32> -> vector<256x128xf32>
    %31 = vector.broadcast %2 : vector<256x1xf32> to vector<256x128xf32>
    %32 = arith.mulf %30, %31 : vector<256x128xf32>
    %33 = arith.truncf %32 : vector<256x128xf32> to vector<256x128xbf16>
    %cst_23 = arith.constant dense<0.000000e+00> : vector<256x128xf32>
    %34 = tpu.matmul %33, %27, %cst_23 {dimension_numbers = #tpu.dot_dimension_numbers<[1], [0], [0], [1], [0, 0, 1, 1], [], []>} : vector<256x128xbf16>, vector<128x128xbf16>, vector<256x128xf32> -> vector<256x128xf32>
    %cst_24 = arith.constant dense<0.000000e+00> : vector<256x128xf32>
    %35 = tpu.matmul %26, %28, %cst_24 {dimension_numbers = #tpu.dot_dimension_numbers<[1], [0], [0], [1], [0, 0, 1, 1], [], []>} : vector<256x128xbf16>, vector<128x128xbf16>, vector<256x128xf32> -> vector<256x128xf32>
    %36 = arith.addf %34, %35 : vector<256x128xf32>
    %37 = vector.broadcast %29 : vector<1x128xf32> to vector<256x128xf32>
    %38 = arith.addf %36, %37 : vector<256x128xf32>
    %39 = arith.mulf %38, %38 : vector<256x128xf32>
    %cst_25 = arith.constant dense<0.000000e+00> : vector<256xf32>
    %40 = vector.multi_reduction <add>, %39, %cst_25 [1] : vector<256x128xf32> to vector<256xf32>
    %41 = vector.shape_cast %40 : vector<256xf32> to vector<256x1xf32>
    %cst_26 = arith.constant 1.000000e-24 : f32
    %42 = vector.broadcast %cst_26 : f32 to vector<256x1xf32>
    %43 = arith.maximumf %41, %42 : vector<256x1xf32>
    %44 = math.rsqrt %43 : vector<256x1xf32>
    %45 = vector.broadcast %44 : vector<256x1xf32> to vector<256x128xf32>
    %46 = arith.mulf %38, %45 : vector<256x128xf32>
    %cst_27 = arith.constant 0.000000e+00 : f32
    %47 = vector.broadcast %cst_27 : f32 to vector<256x128xf32>
    %48 = arith.maximumf %46, %47 : vector<256x128xf32>
    %49 = arith.truncf %48 : vector<256x128xf32> to vector<256x128xbf16>
    %c0_28 = arith.constant 0 : index
    %c0_29 = arith.constant 0 : index
    %50 = vector.load %arg9[%c0_28, %c0_29] : memref<128x128xbf16, #tpu.memory_space<vmem>>, vector<128x128xbf16>
    %c0_30 = arith.constant 0 : index
    %c0_31 = arith.constant 0 : index
    %51 = vector.load %arg10[%c0_30, %c0_31] : memref<128x128xbf16, #tpu.memory_space<vmem>>, vector<128x128xbf16>
    %c0_32 = arith.constant 0 : index
    %c0_33 = arith.constant 0 : index
    %52 = vector.load %arg11[%c0_32, %c0_33] : memref<1x128xf32, #tpu.memory_space<vmem>>, vector<1x128xf32>
    %cst_34 = arith.constant dense<0.000000e+00> : vector<256x128xf32>
    %53 = tpu.matmul %1, %49, %cst_34 {dimension_numbers = #tpu.dot_dimension_numbers<[1], [0], [0], [1], [0, 0, 1, 1], [], []>} : vector<256x256xbf16>, vector<256x128xbf16>, vector<256x128xf32> -> vector<256x128xf32>
    %54 = vector.broadcast %2 : vector<256x1xf32> to vector<256x128xf32>
    %55 = arith.mulf %53, %54 : vector<256x128xf32>
    %56 = arith.truncf %55 : vector<256x128xf32> to vector<256x128xbf16>
    %cst_35 = arith.constant dense<0.000000e+00> : vector<256x128xf32>
    %57 = tpu.matmul %56, %50, %cst_35 {dimension_numbers = #tpu.dot_dimension_numbers<[1], [0], [0], [1], [0, 0, 1, 1], [], []>} : vector<256x128xbf16>, vector<128x128xbf16>, vector<256x128xf32> -> vector<256x128xf32>
    %cst_36 = arith.constant dense<0.000000e+00> : vector<256x128xf32>
    %58 = tpu.matmul %49, %51, %cst_36 {dimension_numbers = #tpu.dot_dimension_numbers<[1], [0], [0], [1], [0, 0, 1, 1], [], []>} : vector<256x128xbf16>, vector<128x128xbf16>, vector<256x128xf32> -> vector<256x128xf32>
    %59 = arith.addf %57, %58 : vector<256x128xf32>
    %60 = vector.broadcast %52 : vector<1x128xf32> to vector<256x128xf32>
    %61 = arith.addf %59, %60 : vector<256x128xf32>
    %62 = arith.mulf %61, %61 : vector<256x128xf32>
    %cst_37 = arith.constant dense<0.000000e+00> : vector<256xf32>
    %63 = vector.multi_reduction <add>, %62, %cst_37 [1] : vector<256x128xf32> to vector<256xf32>
    %64 = vector.shape_cast %63 : vector<256xf32> to vector<256x1xf32>
    %cst_38 = arith.constant 1.000000e-24 : f32
    %65 = vector.broadcast %cst_38 : f32 to vector<256x1xf32>
    %66 = arith.maximumf %64, %65 : vector<256x1xf32>
    %67 = math.rsqrt %66 : vector<256x1xf32>
    %68 = vector.broadcast %67 : vector<256x1xf32> to vector<256x128xf32>
    %69 = arith.mulf %61, %68 : vector<256x128xf32>
    %cst_39 = arith.constant 0.000000e+00 : f32
    %70 = vector.broadcast %cst_39 : f32 to vector<256x128xf32>
    %71 = arith.maximumf %69, %70 : vector<256x128xf32>
    %72 = arith.truncf %71 : vector<256x128xf32> to vector<256x128xbf16>
    %c0_40 = arith.constant 0 : index
    %c0_41 = arith.constant 0 : index
    %73 = vector.load %arg12[%c0_40, %c0_41] : memref<128x128xbf16, #tpu.memory_space<vmem>>, vector<128x128xbf16>
    %cst_42 = arith.constant dense<0.000000e+00> : vector<256x128xf32>
    %74 = tpu.matmul %26, %73, %cst_42 {dimension_numbers = #tpu.dot_dimension_numbers<[1], [0], [0], [1], [0, 0, 1, 1], [], []>} : vector<256x128xbf16>, vector<128x128xbf16>, vector<256x128xf32> -> vector<256x128xf32>
    %c0_43 = arith.constant 0 : index
    %c0_44 = arith.constant 0 : index
    %75 = vector.load %arg13[%c0_43, %c0_44] : memref<128x128xbf16, #tpu.memory_space<vmem>>, vector<128x128xbf16>
    %cst_45 = arith.constant dense<0.000000e+00> : vector<256x128xf32>
    %76 = tpu.matmul %49, %75, %cst_45 {dimension_numbers = #tpu.dot_dimension_numbers<[1], [0], [0], [1], [0, 0, 1, 1], [], []>} : vector<256x128xbf16>, vector<128x128xbf16>, vector<256x128xf32> -> vector<256x128xf32>
    %77 = arith.addf %74, %76 : vector<256x128xf32>
    %c0_46 = arith.constant 0 : index
    %c0_47 = arith.constant 0 : index
    %78 = vector.load %arg14[%c0_46, %c0_47] : memref<128x128xbf16, #tpu.memory_space<vmem>>, vector<128x128xbf16>
    %cst_48 = arith.constant dense<0.000000e+00> : vector<256x128xf32>
    %79 = tpu.matmul %72, %78, %cst_48 {dimension_numbers = #tpu.dot_dimension_numbers<[1], [0], [0], [1], [0, 0, 1, 1], [], []>} : vector<256x128xbf16>, vector<128x128xbf16>, vector<256x128xf32> -> vector<256x128xf32>
    %80 = arith.addf %77, %79 : vector<256x128xf32>
    %c0_49 = arith.constant 0 : index
    %c0_50 = arith.constant 0 : index
    %81 = vector.load %arg15[%c0_49, %c0_50] : memref<1x128xf32, #tpu.memory_space<vmem>>, vector<1x128xf32>
    %82 = vector.broadcast %81 : vector<1x128xf32> to vector<256x128xf32>
    %83 = arith.addf %80, %82 : vector<256x128xf32>
    %c0_51 = arith.constant 0 : index
    %c0_52 = arith.constant 0 : index
    %84 = vector.load %arg16[%c0_51, %c0_52] : memref<256x128xf32, #tpu.memory_space<vmem>>, vector<256x128xf32>
    tpu.vector_store %arg16[%c0_51, %c0_52], %83 {strides = array<i32>} : memref<256x128xf32, #tpu.memory_space<vmem>>, vector<256x128xf32>,
    return
  }
}

</mosaic_0001>

<bundles_post_ra>
// kernel: tpu_custom_call.1
= control target key start
LH: loop header
LB: loop body
LE: loop exit
PB: predicated region body
PF: predicated region fallthrough
CT: control target
= control target key end

     0   :  { %s7618_s0 = inlined_call_operand.vmem [shape: s8[256,256], index: 0, kind: input, shape index: {}]   ;;  %s7619_s1 = inlined_call_operand.vmem [shape: bf16[256,128], index: 1, kind: input, shape index: {}]   ;;  %s7620_s2 = inlined_call_operand.vmem [shape: f32[256,1], index: 2, kind: input, shape index: {}]   ;;  %s7621_s3 = inlined_call_operand.hbm [shape: bf16[128,128], index: 3, kind: input, shape index: {}]   ;;  %s7622_s4 = inlined_call_operand.hbm [shape: bf16[128,128], index: 4, kind: input, shape index: {}]   ;;  %s7623_s5 = inlined_call_operand.vmem [shape: f32[1,128], index: 5, kind: input, shape index: {}]   ;;  %s7624_s6 = inlined_call_operand.hbm [shape: bf16[128,128], index: 6, kind: input, shape index: {}]   ;;  %s7625_s7 = inlined_call_operand.hbm [shape: bf16[128,128], index: 7, kind: input, shape index: {}]   ;;  %s7626_s8 = inlined_call_operand.vmem [shape: f32[1,128], index: 8, kind: input, shape index: {}]   ;;  %s7627_s9 = inlined_call_operand.hbm [shape: bf16[128,128], index: 9, kind: input, shape index: {}]   ;;  %s7628_s10 = inlined_call_operand.hbm [shape: bf16[128,128], index: 10, kind: input, shape index: {}]   ;;  %s7629_s11 = inlined_call_operand.vmem [shape: f32[1,128], index: 11, kind: input, shape index: {}]   ;;  %s7630_s12 = inlined_call_operand.hbm [shape: bf16[128,128], index: 12, kind: input, shape index: {}]   ;;  %s7631_s13 = inlined_call_operand.hbm [shape: bf16[128,128], index: 13, kind: input, shape index: {}]   ;;  %s7632_s14 = inlined_call_operand.hbm [shape: bf16[128,128], index: 14, kind: input, shape index: {}]   ;;  %s7633_s15 = inlined_call_operand.vmem [shape: f32[1,128], index: 15, kind: input, shape index: {}]   ;;  %s7634_s16 = inlined_call_operand.hbm [shape: f32[256,128], index: 16, kind: output, shape index: {}]  }
   0x1   :  { %7753 = sst [smem:[#allocation91_spill]] %s7618_s0 }
   0x2   :  { %21 = vsyncpa [#allocation3], 0 }
   0x3   :  { %22 = vsyncpa [#allocation6], 0 }
   0x4   :  { %23 = vsyncpa [#allocation9], 0 }
   0x5   :  { %24 = vsyncpa [#allocation12], 0 }
   0x6   :  { %25 = vsyncpa [#allocation15], 0 }
   0x7   :  { %26 = vsyncpa [#allocation4], 0  ;;  %s5939_s21 = smov [#allocation5]   ;;  %s5940_s23 = smov [#allocation8]  }
   0x8   :  { %s50_s22 = sshll.u32 %s5939_s21, 4  ;;  %s76_s24 = sshll.u32 %s5940_s23, 4  ;;  %s51_s22 = int_to_ptr.vmem [resolvable:$true] %s50_s22  ;;  %s6039_s24 = int_to_ptr.vmem [resolvable:$true] %s76_s24 }
   0x9   :  { %s5707_s27 = scalar_lea.hbm %s7622_s4, 1024 }
   0xa   :  { %p5708_p0 = scmp.ne.s32.totalorder %s7622_s4, %s5707_s27  ;;  %p5711_p1 = scmp.lt.u32.totalorder %s5707_s27, %s7622_s4 }
   0xc   :  { %p5713_p2 = pnand %p5711_p1, %p5708_p0 }
   0xe   :  { %5716 = shalt.err (!%p5713_p2)
}
   0xf   :  { %s5717_s17 = scalar_lea.vmem %s51_s22, 1024  ;;  %p5722_p4 = scmp.lt.s32.totalorder %s51_s22, %s51_s22 }
  0x10   :  { %p5718_p3 = scmp.ne.s32.totalorder %s51_s22, %s5717_s17  ;;  %p5723_p5 = scmp.lt.s32.totalorder %s5717_s17, %s5717_s17 }
  0x12   :  { %p5724_p6 = por %p5723_p5, %p5722_p4 }
  0x14   :  { %p5725_p7 = pnand %p5724_p6, %p5718_p3 }
  0x16   :  { %5728 = shalt.err (!%p5725_p7)
}
  0x17   :  { %s5941_s18 = smov 64   ;;  %s5942_s19 = smov 4  }
  0x18   :  { %56 = dma.hbm_to_vmem [thread:$0]  %s7622_s4, 1024, %s51_s22, [#allocation6], %s5941_s18, %s5941_s18, %s5942_s19  }
  0x19   :  { %s5729_s26 = scalar_lea.hbm %s7625_s7, 1024 }
  0x1a   :  { %p5730_p8 = scmp.ne.s32.totalorder %s7625_s7, %s5729_s26  ;;  %p5733_p9 = scmp.lt.u32.totalorder %s5729_s26, %s7625_s7 }
  0x1c   :  { %p5735_p10 = pnand %p5733_p9, %p5730_p8 }
  0x1e   :  { %5738 = shalt.err (!%p5735_p10)
}
  0x1f   :  { %s5739_s0 = scalar_lea.vmem %s6039_s24, 1024  ;;  %p5744_p12 = scmp.lt.s32.totalorder %s6039_s24, %s6039_s24 }
  0x20   :  { %p5740_p11 = scmp.ne.s32.totalorder %s6039_s24, %s5739_s0  ;;  %p5745_p13 = scmp.lt.s32.totalorder %s5739_s0, %s5739_s0 }
  0x22   :  { %p5746_p0 = por %p5745_p13, %p5744_p12 }
  0x24   :  { %p5747_p1 = pnand %p5746_p0, %p5740_p11 }
  0x26   :  { %5750 = shalt.err (!%p5747_p1)
}
  0x27   :  { %82 = dma.hbm_to_vmem [thread:$0]  %s7625_s7, 1024, %s6039_s24, [#allocation9], %s5941_s18, %s5941_s18, %s5942_s19  }
  0x28   :  { %s5943_s17 = smov [#allocation11]   ;;  %s5944_s21 = smov [#allocation14]  }
  0x29   :  { %s102_s20 = sshll.u32 %s5943_s17, 4  ;;  %s128_s23 = sshll.u32 %s5944_s21, 4  ;;  %s103_s20 = int_to_ptr.vmem [resolvable:$true] %s102_s20  ;;  %s6076_s23 = int_to_ptr.vmem [resolvable:$true] %s128_s23 }
  0x2a   :  { %s5751_s27 = scalar_lea.hbm %s7628_s10, 1024 }
  0x2b   :  { %p5752_p2 = scmp.ne.s32.totalorder %s7628_s10, %s5751_s27  ;;  %p5755_p3 = scmp.lt.u32.totalorder %s5751_s27, %s7628_s10 }
  0x2d   :  { %p5757_p4 = pnand %p5755_p3, %p5752_p2 }
  0x2f   :  { %5760 = shalt.err (!%p5757_p4)
}
  0x30   :  { %s5761_s7 = scalar_lea.vmem %s103_s20, 1024  ;;  %p5766_p6 = scmp.lt.s32.totalorder %s103_s20, %s103_s20 }
  0x31   :  { %p5762_p5 = scmp.ne.s32.totalorder %s103_s20, %s5761_s7  ;;  %p5767_p7 = scmp.lt.s32.totalorder %s5761_s7, %s5761_s7 }
  0x33   :  { %p5768_p8 = por %p5767_p7, %p5766_p6 }
  0x35   :  { %p5769_p9 = pnand %p5768_p8, %p5762_p5 }
  0x37   :  { %5772 = shalt.err (!%p5769_p9)
}
  0x38   :  { %108 = dma.hbm_to_vmem [thread:$0]  %s7628_s10, 1024, %s103_s20, [#allocation12], %s5941_s18, %s5941_s18, %s5942_s19  }
  0x39   :  { %s5773_s21 = scalar_lea.hbm %s7631_s13, 1024 }
  0x3a   :  { %p5774_p10 = scmp.ne.s32.totalorder %s7631_s13, %s5773_s21  ;;  %p5777_p11 = scmp.lt.u32.totalorder %s5773_s21, %s7631_s13 }
  0x3c   :  { %p5779_p12 = pnand %p5777_p11, %p5774_p10 }
  0x3e   :  { %5782 = shalt.err (!%p5779_p12)
}
  0x3f   :  { %s5783_s29 = scalar_lea.vmem %s6076_s23, 1024  ;;  %p5788_p0 = scmp.lt.s32.totalorder %s6076_s23, %s6076_s23 }
  0x40   :  { %p5784_p13 = scmp.ne.s32.totalorder %s6076_s23, %s5783_s29  ;;  %p5789_p1 = scmp.lt.s32.totalorder %s5783_s29, %s5783_s29 }
  0x42   :  { %p5790_p2 = por %p5789_p1, %p5788_p0 }
  0x44   :  { %p5791_p3 = pnand %p5790_p2, %p5784_p13 }
  0x46   :  { %5794 = shalt.err (!%p5791_p3)
}
  0x47   :  { %134 = dma.hbm_to_vmem [thread:$0]  %s7631_s13, 1024, %s6076_s23, [#allocation15], %s5941_s18, %s5941_s18, %s5942_s19  }
  0x48   :  { %s5945_s30 = smov [#allocation2]   ;;  %s5946_s7 = smov [#allocation7]  }
  0x49   :  { %s38_s0 = sshll.u32 %s5945_s30, 4  ;;  %s64_s24 = sshll.u32 %s5946_s7, 4  ;;  %s39_s0 = int_to_ptr.vmem [resolvable:$true] %s38_s0  ;;  %s6113_s24 = int_to_ptr.vmem [resolvable:$true] %s64_s24 }
  0x4a   :  { %s5795_s17 = scalar_lea.hbm %s7621_s3, 1024 }
  0x4b   :  { %p5796_p4 = scmp.ne.s32.totalorder %s7621_s3, %s5795_s17  ;;  %p5799_p5 = scmp.lt.u32.totalorder %s5795_s17, %s7621_s3 }
  0x4d   :  { %p5801_p6 = pnand %p5799_p5, %p5796_p4 }
  0x4f   :  { %5804 = shalt.err (!%p5801_p6)
}
  0x50   :  { %s5805_s13 = scalar_lea.vmem %s39_s0, 1024  ;;  %p5810_p8 = scmp.lt.s32.totalorder %s39_s0, %s39_s0 }
  0x51   :  { %p5806_p7 = scmp.ne.s32.totalorder %s39_s0, %s5805_s13  ;;  %p5811_p9 = scmp.lt.s32.totalorder %s5805_s13, %s5805_s13 }
  0x53   :  { %p5812_p10 = por %p5811_p9, %p5810_p8 }
  0x55   :  { %p5813_p11 = pnand %p5812_p10, %p5806_p7 }
  0x57   :  { %5816 = shalt.err (!%p5813_p11)
}
  0x58   :  { %44 = dma.hbm_to_vmem [thread:$0]  %s7621_s3, 1024, %s39_s0, [#allocation3], %s5941_s18, %s5941_s18, %s5942_s19  }
  0x59   :  { %s5817_s20 = scalar_lea.hbm %s7624_s6, 1024 }
  0x5a   :  { %p5818_p12 = scmp.ne.s32.totalorder %s7624_s6, %s5817_s20  ;;  %p5821_p13 = scmp.lt.u32.totalorder %s5817_s20, %s7624_s6 }
  0x5c   :  { %p5823_p0 = pnand %p5821_p13, %p5818_p12 }
  0x5e   :  { %5826 = shalt.err (!%p5823_p0)
}
  0x5f   :  { %s5827_s17 = scalar_lea.vmem %s6113_s24, 1024  ;;  %p5832_p2 = scmp.lt.s32.totalorder %s6113_s24, %s6113_s24 }
  0x60   :  { %p5828_p1 = scmp.ne.s32.totalorder %s6113_s24, %s5827_s17  ;;  %p5833_p3 = scmp.lt.s32.totalorder %s5827_s17, %s5827_s17 }
  0x62   :  { %p5834_p4 = por %p5833_p3, %p5832_p2 }
  0x64   :  { %p5835_p5 = pnand %p5834_p4, %p5828_p1 }
  0x66   :  { %5838 = shalt.err (!%p5835_p5)
}
  0x67   :  { %70 = dma.hbm_to_vmem [thread:$0]  %s7624_s6, 1024, %s6113_s24, [#allocation6], %s5941_s18, %s5941_s18, %s5942_s19  }
  0x68   :  { %s5947_s21 = smov [#allocation10]   ;;  %s5948_s26 = smov [#allocation13]  }
  0x69   :  { %s90_s25 = sshll.u32 %s5947_s21, 4  ;;  %s116_s27 = sshll.u32 %s5948_s26, 4  ;;  %s91_s25 = int_to_ptr.vmem [resolvable:$true] %s90_s25  ;;  %s6150_s27 = int_to_ptr.vmem [resolvable:$true] %s116_s27 }
  0x6a   :  { %s5839_s28 = scalar_lea.hbm %s7627_s9, 1024 }
  0x6b   :  { %p5840_p6 = scmp.ne.s32.totalorder %s7627_s9, %s5839_s28  ;;  %p5843_p7 = scmp.lt.u32.totalorder %s5839_s28, %s7627_s9 }
  0x6d   :  { %p5845_p8 = pnand %p5843_p7, %p5840_p6 }
  0x6f   :  { %5848 = shalt.err (!%p5845_p8)
}
  0x70   :  { %s5849_s6 = scalar_lea.vmem %s91_s25, 1024  ;;  %p5854_p10 = scmp.lt.s32.totalorder %s91_s25, %s91_s25 }
  0x71   :  { %p5850_p9 = scmp.ne.s32.totalorder %s91_s25, %s5849_s6  ;;  %p5855_p11 = scmp.lt.s32.totalorder %s5849_s6, %s5849_s6 }
  0x73   :  { %p5856_p12 = por %p5855_p11, %p5854_p10 }
  0x75   :  { %p5857_p13 = pnand %p5856_p12, %p5850_p9 }
  0x77   :  { %5860 = shalt.err (!%p5857_p13)
}
  0x78   :  { %96 = dma.hbm_to_vmem [thread:$0]  %s7627_s9, 1024, %s91_s25, [#allocation9], %s5941_s18, %s5941_s18, %s5942_s19  }
  0x79   :  { %s5861_s17 = scalar_lea.hbm %s7630_s12, 1024 }
  0x7a   :  { %p5862_p0 = scmp.ne.s32.totalorder %s7630_s12, %s5861_s17  ;;  %p5865_p1 = scmp.lt.u32.totalorder %s5861_s17, %s7630_s12 }
  0x7c   :  { %p5867_p2 = pnand %p5865_p1, %p5862_p0 }
  0x7e   :  { %5870 = shalt.err (!%p5867_p2)
}
  0x7f   :  { %s5871_s13 = scalar_lea.vmem %s6150_s27, 1024  ;;  %p5876_p4 = scmp.lt.s32.totalorder %s6150_s27, %s6150_s27 }
  0x80   :  { %p5872_p3 = scmp.ne.s32.totalorder %s6150_s27, %s5871_s13  ;;  %p5877_p5 = scmp.lt.s32.totalorder %s5871_s13, %s5871_s13 }
  0x82   :  { %p5878_p6 = por %p5877_p5, %p5876_p4 }
  0x84   :  { %p5879_p7 = pnand %p5878_p6, %p5872_p3 }
  0x86   :  { %5882 = shalt.err (!%p5879_p7)
}
  0x87   :  { %122 = dma.hbm_to_vmem [thread:$0]  %s7630_s12, 1024, %s6150_s27, [#allocation12], %s5941_s18, %s5941_s18, %s5942_s19  }
  0x88   :  { %s5949_s23 = smov [#allocation16]   ;;  %s5883_s20 = scalar_lea.hbm %s7632_s14, 1024 }
  0x89   :  { %s140_s28 = sshll.u32 %s5949_s23, 4  ;;  %p5884_p8 = scmp.ne.s32.totalorder %s7632_s14, %s5883_s20  ;;  %s141_s28 = int_to_ptr.vmem [resolvable:$true] %s140_s28 }
  0x8a   :  { %p5887_p9 = scmp.lt.u32.totalorder %s5883_s20, %s7632_s14 }
  0x8c   :  { %p5889_p10 = pnand %p5887_p9, %p5884_p8 }
  0x8e   :  { %5892 = shalt.err (!%p5889_p10)
}
  0x8f   :  { %s5893_s4 = scalar_lea.vmem %s141_s28, 1024  ;;  %p5898_p12 = scmp.lt.s32.totalorder %s141_s28, %s141_s28 }
  0x90   :  { %p5894_p11 = scmp.ne.s32.totalorder %s141_s28, %s5893_s4  ;;  %p5899_p13 = scmp.lt.s32.totalorder %s5893_s4, %s5893_s4 }
  0x92   :  { %p5900_p0 = por %p5899_p13, %p5898_p12 }
  0x94   :  { %p5901_p1 = pnand %p5900_p0, %p5894_p11 }
  0x96   :  { %5904 = shalt.err (!%p5901_p1)
}
  0x97   :  { %146 = dma.hbm_to_vmem [thread:$0]  %s7632_s14, 1024, %s141_s28, [#allocation15], %s5941_s18, %s5941_s18, %s5942_s19  }
  0x98   :  { %5927 = dma.done.wait [#allocation3], 1024  }
  0x99   :  { %5928 = vsyncadd [#allocation3], 4294966272 }
  0x9a   :  { %5929 = dma.done.wait [#allocation6], 2048  }
  0x9b   :  { %5930 = vsyncadd [#allocation6], 4294965248 }
  0x9c   :  { %5931 = dma.done.wait [#allocation9], 2048  }
  0x9d   :  { %5932 = vsyncadd [#allocation9], 4294965248 }
  0x9e   :  { %5933 = dma.done.wait [#allocation12], 2048  }
  0x9f   :  { %5934 = vsyncadd [#allocation12], 4294965248 }
  0xa0   :  { %5935 = dma.done.wait [#allocation15], 2048  }
  0xa1   :  { %5936 = vsyncadd [#allocation15], 4294965248  ;;  %v5950_v0 = vmov 0   ;;  %v6205_v1 = vld [vmem:[%s7619_s1 + $0x40] sm:$0xff]   ;;  %v6217_v3 = vld [vmem:[%s7619_s1 + $0x48] sm:$0xff]   ;;  %s7754_s22 = sld [smem:[#allocation91_spill]] }
  0xa2   :  { %5425 = vset.pattern.permute.xlu0 %v5950_v0  ;;  %5426 = vset.pattern.permute.xlu1 %v5950_v0  ;;  %v6210_v2 = vld [vmem:[%s7619_s1] sm:$0xff]   ;;  %v6224_v4 = vld [vmem:[%s7619_s1 + $0x8] sm:$0xff]   ;;  %v6231_v5 = vld [vmem:[%s7619_s1 + $0x50] sm:$0xff]  }
  0xa3   :  { %4250 = vmatprep.subr.bf16.mxu0 %v6205_v1  ;;  %5234 = vmatprep.subr.bf16.mxu1 %v6205_v1  ;;  %v6238_v6 = vld [vmem:[%s7619_s1 + $0x10] sm:$0xff]   ;;  %v6245_v7 = vld [vmem:[%s7619_s1 + $0x58] sm:$0xff]   ;;  %v6259_v9 = vld [vmem:[%s7619_s1 + $0x60] sm:$0xff]  }
  0xa4   :  { %4251 = vmatpush3.bf16.msra.mxu0 %v6210_v2  ;;  %5242 = vmatpush3.bf16.msra.mxu1 %v6210_v2  ;;  %v6252_v8 = vld [vmem:[%s7619_s1 + $0x18] sm:$0xff]   ;;  %v6266_v10 = vld [vmem:[%s7619_s1 + $0x20] sm:$0xff]   ;;  %v6273_v11 = vld [vmem:[%s7619_s1 + $0x68] sm:$0xff]  }
  0xa5   :  { %4252 = vmatprep.subr.bf16.mxu0 %v6217_v3  ;;  %5235 = vmatprep.subr.bf16.mxu1 %v6217_v3  ;;  %v6290_v16 = vld [vmem:[%s7619_s1 + $0x28] sm:$0xff]   ;;  %v6297_v17 = vld [vmem:[%s7619_s1 + $0x70] sm:$0xff]   ;;  %v225_v18 = vld [vmem:[%s7620_s2] sm:$0xff] }
  0xa6   :  { %v227_v19 = vld [vmem:[%s7620_s2 + $0x10] sm:$0xff]  ;;  %581 = vperm.xlu0 %5425, %v225_v18   ;;  %v226_v21 = vld [vmem:[%s7620_s2 + $0x8] sm:$0xff]  ;;  %v228_v22 = vld [vmem:[%s7620_s2 + $0x18] sm:$0xff] }
  0xa7   :  { %v178_v12 = vld [vmem:[%s7754_s22 + $0x8] sm:$0xff]  ;;  %591 = vperm.xlu1 %5426, %v227_v19   ;;  %v6312_v20 = vld [vmem:[%s7619_s1 + $0x30] sm:$0xff]   ;;  %v6325_v23 = vld [vmem:[%s7619_s1 + $0x78] sm:$0xff]  }
  0xa8   :  { %4253 = vmatpush3.bf16.msra.mxu0 %v6224_v4  ;;  %5243 = vmatpush3.bf16.msra.mxu1 %v6224_v4  ;;  %v182_v13 = vld [vmem:[%s7754_s22 + $0x28] sm:$0xff]  ;;  %v6281_v14 = vunpack.c.l.s8.bf16 %v178_v12  ;;  %v6330_v24 = vld [vmem:[%s7619_s1 + $0x38] sm:$0xff]   ;;  %v177_v25 = vld [vmem:[%s7754_s22] sm:$0xff]  ;;  %v6354_v31 = vunpack.c.h.s8.bf16 %v178_v12 }
  0xa9   :  { %4254 = vmatprep.subr.bf16.mxu0 %v6231_v5  ;;  %5236 = vmatprep.subr.bf16.mxu1 %v6231_v5  ;;  %v6283_v15 = vunpack.c.l.s8.bf16 %v182_v13  ;;  %v181_v26 = vld [vmem:[%s7754_s22 + $0x20] sm:$0xff]  ;;  %v230_v28 = vld [vmem:[%s7620_s2 + $0x28] sm:$0xff]  ;;  %v6348_v29 = vunpack.c.l.s8.bf16 %v177_v25  ;;  %v6356_v32 = vunpack.c.h.s8.bf16 %v182_v13  ;;  %v231_v33 = vld [vmem:[%s7620_s2 + $0x30] sm:$0xff]  ;;  %v6380_v41 = vunpack.c.h.s8.bf16 %v177_v25 }
  0xaa   :  { %7755 = vst [vmem:[#allocation24_spill] sm:$0xff] %v6281_v14  ;;  %450 = vmatprep.mubr.bf16.mxu0 %v6281_v14  ;;  %586 = vperm.xlu0 %5425, %v226_v21   ;;  %v229_v27 = vld [vmem:[%s7620_s2 + $0x20] sm:$0xff]  ;;  %v6350_v30 = vunpack.c.l.s8.bf16 %v181_v26  ;;  %v232_v34 = vld [vmem:[%s7620_s2 + $0x38] sm:$0xff]  ;;  %v5444_v38 = vld [vmem:[#allocation5 + $0x8] sm:$0xff]   ;;  %v6382_v42 = vunpack.c.h.s8.bf16 %v181_v26 }
  0xab   :  { %482 = vmatprep.mubr.bf16.mxu1 %v6283_v15  ;;  %596 = vperm.xlu1 %5426, %v228_v22   ;;  %v5443_v35 = vld [vmem:[#allocation5] sm:$0xff]   ;;  %v180_v36 = vld [vmem:[%s7754_s22 + $0x18] sm:$0xff]  ;;  %v234_v40 = vld [vmem:[%s7620_s2 + $0x48] sm:$0xff] }
  0xac   :  { %4255 = vmatpush3.bf16.msra.mxu0 %v6238_v6  ;;  %5244 = vmatpush3.bf16.msra.mxu1 %v6238_v6  ;;  %v184_v37 = vld [vmem:[%s7754_s22 + $0x38] sm:$0xff]  ;;  %v233_v39 = vld [vmem:[%s7620_s2 + $0x40] sm:$0xff]  ;;  %v6384_v43 = vunpack.c.l.s8.bf16 %v180_v36  ;;  %v235_v45 = vld [vmem:[%s7620_s2 + $0x50] sm:$0xff]  ;;  %v6414_v54 = vunpack.c.h.s8.bf16 %v180_v36 }
  0xad   :  { %4256 = vmatprep.subr.bf16.mxu0 %v6245_v7  ;;  %5237 = vmatprep.subr.bf16.mxu1 %v6245_v7  ;;  %v6386_v44 = vunpack.c.l.s8.bf16 %v184_v37  ;;  %v236_v46 = vld [vmem:[%s7620_s2 + $0x58] sm:$0xff]  ;;  %v5445_v47 = vld [vmem:[#allocation5 + $0x10] sm:$0xff]   ;;  %v237_v50 = vld [vmem:[%s7620_s2 + $0x60] sm:$0xff]  ;;  %v6416_v55 = vunpack.c.h.s8.bf16 %v184_v37 }
  0xae   :  { %601 = vperm.xlu0 %5425, %v229_v27   ;;  %v179_v48 = vld [vmem:[%s7754_s22 + $0x10] sm:$0xff]  ;;  %v238_v51 = vld [vmem:[%s7620_s2 + $0x68] sm:$0xff]  ;;  %v240_v57 = vld [vmem:[%s7620_s2 + $0x78] sm:$0xff] }
  0xaf   :  { %606 = vperm.xlu1 %5426, %v230_v28   ;;  %v183_v49 = vld [vmem:[%s7754_s22 + $0x30] sm:$0xff]  ;;  %v6410_v52 = vunpack.c.l.s8.bf16 %v179_v48  ;;  %7756 = vst [vmem:[#allocation25_spill] sm:$0xff] %v6416_v55  ;;  %v5446_v58 = vld [vmem:[#allocation5 + $0x18] sm:$0xff]   ;;  %v186_v59 = vld [vmem:[%s7754_s22 + $0x48] sm:$0xff]  ;;  %v6437_v63 = vunpack.c.h.s8.bf16 %v179_v48 }
  0xb0   :  { %4257 = vmatpush3.bf16.msra.mxu0 %v6252_v8  ;;  %5245 = vmatpush3.bf16.msra.mxu1 %v6252_v8  ;;  %v6412_v53 = vunpack.c.l.s8.bf16 %v183_v49  ;;  %v239_v56 = vld [vmem:[%s7620_s2 + $0x70] sm:$0xff]  ;;  %v241_v60 = vld [vmem:[%s7620_s2 + $0x80] sm:$0xff]  ;;  %v242_v61 = vld [vmem:[%s7620_s2 + $0x88] sm:$0xff]  ;;  %v6439_v0 = vunpack.c.h.s8.bf16 %v183_v49  ;;  %v6441_v12 = vunpack.c.l.s8.bf16 %v186_v59  ;;  %v6464_v28 = vunpack.c.h.s8.bf16 %v186_v59 }
  0xb1   :  { %4258 = vmatprep.subr.bf16.mxu0 %v6259_v9  ;;  %5238 = vmatprep.subr.bf16.mxu1 %v6259_v9  ;;  %v5447_v62 = vld [vmem:[#allocation5 + $0x20] sm:$0xff]   ;;  %v243_v13 = vld [vmem:[%s7620_s2 + $0x90] sm:$0xff]  ;;  %v244_v18 = vld [vmem:[%s7620_s2 + $0x98] sm:$0xff] }
  0xb2   :  { %611 = vperm.xlu0 %5425, %v231_v33   ;;  %7757 = vst [vmem:[#allocation26_spill] sm:$0xff] %v6439_v0  ;;  %7758 = vst [vmem:[#allocation27_spill] sm:$0xff] %v6441_v12  ;;  %v5448_v19 = vld [vmem:[#allocation5 + $0x28] sm:$0xff]   ;;  %v185_v21 = vld [vmem:[%s7754_s22 + $0x40] sm:$0xff] }
  0xb3   :  { %616 = vperm.xlu1 %5426, %v232_v34   ;;  %v245_v22 = vld [vmem:[%s7620_s2 + $0xa0] sm:$0xff]  ;;  %v246_v25 = vld [vmem:[%s7620_s2 + $0xa8] sm:$0xff]  ;;  %v5449_v26 = vld [vmem:[#allocation5 + $0x30] sm:$0xff]   ;;  %v6462_v27 = vunpack.c.l.s8.bf16 %v185_v21  ;;  %7760 = vst [vmem:[#allocation29_spill] sm:$0xff] %v6464_v28 }
  0xb4   :  { %4259 = vmatpush3.bf16.msra.mxu0 %v6266_v10  ;;  %5246 = vmatpush3.bf16.msra.mxu1 %v6266_v10  ;;  %v247_v33 = vld [vmem:[%s7620_s2 + $0xb0] sm:$0xff]  ;;  %v248_v34 = vld [vmem:[%s7620_s2 + $0xb8] sm:$0xff]  ;;  %v249_v37 = vld [vmem:[%s7620_s2 + $0xc0] sm:$0xff] }
  0xb5   :  { %4260 = vmatprep.subr.bf16.mxu0 %v6273_v11  ;;  %5239 = vmatprep.subr.bf16.mxu1 %v6273_v11  ;;  %7759 = vst [vmem:[#allocation28_spill] sm:$0xff] %v6462_v27  ;;  %v188_v36 = vld [vmem:[%s7754_s22 + $0x58] sm:$0xff]  ;;  %v187_v48 = vld [vmem:[%s7754_s22 + $0x50] sm:$0xff]  ;;  %v253_v49 = vld [vmem:[%s7620_s2 + $0xe0] sm:$0xff] }
  0xb6   :  { %621 = vperm.xlu0 %5425, %v233_v39   ;;  %v5451_v39 = vld [vmem:[#allocation2] sm:$0xff]   ;;  %v190_v59 = vld [vmem:[%s7754_s22 + $0x68] sm:$0xff] }
  0xb7   :  { %626 = vperm.xlu1 %5426, %v234_v40   ;;  %v6483_v40 = vunpack.c.h.s8.bf16 %v185_v21 }
  0xb8   :  { %4261 = vmatpush3.bf16.msra.mxu0 %v6290_v16  ;;  %5247 = vmatpush3.bf16.msra.mxu1 %v6290_v16 }
  0xb9   :  { %4262 = vmatprep.subr.bf16.mxu0 %v6297_v17  ;;  %5240 = vmatprep.subr.bf16.mxu1 %v6297_v17  ;;  %7761 = vst [vmem:[#allocation30_spill] sm:$0xff] %v6483_v40 }
  0xba   :  { %631 = vperm.xlu0 %5425, %v235_v45   ;;  %v6485_v45 = vunpack.c.l.s8.bf16 %v188_v36 }
  0xbb   :  { %636 = vperm.xlu1 %5426, %v236_v46   ;;  %v251_v46 = vld [vmem:[%s7620_s2 + $0xd0] sm:$0xff] }
  0xbc   :  { %4263 = vmatpush3.bf16.msra.mxu0 %v6312_v20  ;;  %5248 = vmatpush3.bf16.msra.mxu1 %v6312_v20  ;;  %7762 = vst [vmem:[#allocation31_spill] sm:$0xff] %v6485_v45 }
  0xbd   :  { %4264 = vmatprep.subr.bf16.mxu0 %v6325_v23  ;;  %5241 = vmatprep.subr.bf16.mxu1 %v6325_v23 }
  0xbe   :  { %641 = vperm.xlu0 %5425, %v237_v50   ;;  %v254_v50 = vld [vmem:[%s7620_s2 + $0xe8] sm:$0xff] }
  0xbf   :  { %646 = vperm.xlu1 %5426, %v238_v51   ;;  %v6504_v51 = vunpack.c.l.s8.bf16 %v187_v48 }
  0xc0   :  { %4265 = vmatpush3.bf16.msra.mxu0 %v6330_v24  ;;  %5249 = vmatpush3.bf16.msra.mxu1 %v6330_v24 }
  0xc1   :  { %4802 = vmatprep.subr.bf16.mxu1 %v5443_v35  ;;  %7763 = vst [vmem:[#allocation32_spill] sm:$0xff] %v6504_v51 }
  0xc2   :  { %651 = vperm.xlu0 %5425, %v239_v56   ;;  %v6506_v56 = vunpack.c.h.s8.bf16 %v188_v36  ;;  %v5453_v36 = vld [vmem:[#allocation2 + $0x10] sm:$0xff]  }
  0xc3   :  { %451 = vmatmul.mubr.bf16.vlgmr.msra.gmra.mrb[0].mxu0 %v6348_v29  ;;  %483 = vmatmul.mubr.bf16.vlgmr.msra.gmra.mrb[0].mxu1 %v6350_v30 }
  0xc4   :  { %458 = vmatprep.mubr.bf16.mxu0 %v6354_v31  ;;  %490 = vmatprep.mubr.bf16.mxu1 %v6356_v32  ;;  %7764 = vst [vmem:[#allocation33_spill] sm:$0xff] %v6506_v56 }
  0xc5   :  { %4803 = vmatpush3.bf16.msra.mxu1 %v5443_v35  ;;  %656 = vperm.xlu1 %5426, %v240_v57   ;;  %v5450_v35 = vld [vmem:[#allocation5 + $0x38] sm:$0xff]   ;;  %v255_v57 = vld [vmem:[%s7620_s2 + $0xf0] sm:$0xff] }
  0xc6   :  { %4804 = vmatprep.subr.bf16.mxu1 %v5444_v38  ;;  %661 = vperm.xlu0 %5425, %v241_v60   ;;  %v6519_v60 = vunpack.c.h.s8.bf16 %v187_v48 }
  0xc8   :  { %7765 = vst [vmem:[#allocation34_spill] sm:$0xff] %v6519_v60 }
  0xc9   :  { %4805 = vmatpush3.bf16.msra.mxu1 %v5444_v38  ;;  %666 = vperm.xlu1 %5426, %v242_v61   ;;  %v250_v38 = vld [vmem:[%s7620_s2 + $0xc8] sm:$0xff]  ;;  %v6521_v61 = vunpack.c.l.s8.bf16 %v190_v59 }
  0xca   :  { %4806 = vmatprep.subr.bf16.mxu1 %v5445_v47  ;;  %671 = vperm.xlu0 %5425, %v243_v13  }
  0xcb   :  { %459 = vmatmul.mubr.bf16.gmra.mrb[4].mxu0 %v6380_v41  ;;  %491 = vmatmul.mubr.bf16.gmra.mrb[4].mxu1 %v6382_v42  ;;  %7766 = vst [vmem:[#allocation35_spill] sm:$0xff] %v6521_v61 }
  0xcc   :  { %466 = vmatprep.mubr.bf16.mxu0 %v6384_v43  ;;  %498 = vmatprep.mubr.bf16.mxu1 %v6386_v44 }
  0xcd   :  { %4807 = vmatpush3.bf16.msra.mxu1 %v5445_v47  ;;  %676 = vperm.xlu1 %5426, %v244_v18   ;;  %v252_v47 = vld [vmem:[%s7620_s2 + $0xd8] sm:$0xff]  ;;  %v6530_v18 = vunpack.c.h.s8.bf16 %v190_v59 }
  0xce   :  { %4808 = vmatprep.subr.bf16.mxu1 %v5446_v58  ;;  %681 = vperm.xlu0 %5425, %v245_v22  }
  0xcf   :  { %7768 = vst [vmem:[#allocation37_spill] sm:$0xff] %v6530_v18 }
  0xd1   :  { %4809 = vmatpush3.bf16.msra.mxu1 %v5446_v58  ;;  %686 = vperm.xlu1 %5426, %v246_v25   ;;  %v256_v58 = vld [vmem:[%s7620_s2 + $0xf8] sm:$0xff]  ;;  %v191_v25 = vld [vmem:[%s7754_s22 + $0x70] sm:$0xff] }
  0xd2   :  { %4810 = vmatprep.subr.bf16.mxu1 %v5447_v62  ;;  %691 = vperm.xlu0 %5425, %v247_v33  }
  0xd3   :  { %467 = vmatmul.mubr.bf16.gmra.mrb[8].mxu0 %v6410_v52  ;;  %499 = vmatmul.mubr.bf16.gmra.mrb[8].mxu1 %v6412_v53 }
  0xd4   :  { %474 = vmatprep.mubr.bf16.mxu0 %v6414_v54  ;;  %506 = vmatprep.mubr.bf16.mxu1 %v6416_v55 }
  0xd5   :  { %4811 = vmatpush3.bf16.msra.mxu1 %v5447_v62  ;;  %696 = vperm.xlu1 %5426, %v248_v34   ;;  %v189_v62 = vld [vmem:[%s7754_s22 + $0x60] sm:$0xff]  ;;  %v6552_v34 = vunpack.c.h.s8.bf16 %v191_v25 }
  0xd6   :  { %4812 = vmatprep.subr.bf16.mxu1 %v5448_v19  ;;  %701 = vperm.xlu0 %5425, %v249_v37   ;;  %v6528_v13 = vunpack.c.l.s8.bf16 %v189_v62  ;;  %v6537_v21 = vunpack.c.h.s8.bf16 %v189_v62  ;;  %v5454_v37 = vld [vmem:[#allocation2 + $0x18] sm:$0xff]  }
  0xd7   :  { %7773 = vst [vmem:[#allocation42_spill] sm:$0xff] %v6552_v34 }
  0xd8   :  { %7767 = vst [vmem:[#allocation36_spill] sm:$0xff] %v6528_v13  ;;  %7769 = vst [vmem:[#allocation38_spill] sm:$0xff] %v6537_v21 }
  0xd9   :  { %4813 = vmatpush3.bf16.msra.mxu1 %v5448_v19  ;;  %706 = vperm.xlu1 %5426, %v250_v38   ;;  %v192_v19 = vld [vmem:[%s7754_s22 + $0x78] sm:$0xff]  ;;  %v5455_v38 = vld [vmem:[#allocation2 + $0x20] sm:$0xff]  }
  0xda   :  { %4814 = vmatprep.subr.bf16.mxu1 %v5449_v26  ;;  %711 = vperm.xlu0 %5425, %v251_v46   ;;  %v6539_v22 = vunpack.c.l.s8.bf16 %v192_v19  ;;  %v6548_v33 = vunpack.c.h.s8.bf16 %v192_v19 }
  0xdb   :  { %475 = vmatmul.mubr.bf16.gmra.mrb[12].mxu0 %v6437_v63  ;;  %507 = vmatmul.mubr.bf16.gmra.mrb[12].mxu1 %v6439_v0 }
  0xdc   :  { %514 = vmatprep.mubr.bf16.mxu1 %v6441_v12  ;;  %1548 = vmatprep.mubr.bf16.mxu0 %v6281_v14  ;;  %7770 = vst [vmem:[#allocation39_spill] sm:$0xff] %v6539_v22  ;;  %7772 = vst [vmem:[#allocation41_spill] sm:$0xff] %v6548_v33 }
  0xdd   :  { %4815 = vmatpush3.bf16.msra.mxu1 %v5449_v26  ;;  %716 = vperm.xlu1 %5426, %v252_v47   ;;  %v6546_v26 = vunpack.c.l.s8.bf16 %v191_v25 }
  0xde   :  { %4816 = vmatprep.subr.bf16.mxu1 %v5450_v35  ;;  %721 = vperm.xlu0 %5425, %v253_v49  }
  0xdf   :  { %7771 = vst [vmem:[#allocation40_spill] sm:$0xff] %v6546_v26 }
  0xe1   :  { %4817 = vmatpush3.bf16.msra.mxu1 %v5450_v35  ;;  %726 = vperm.xlu1 %5426, %v254_v50   ;;  %v5452_v35 = vld [vmem:[#allocation2 + $0x8] sm:$0xff]  }
  0xe2   :  { %4850 = vmatprep.subr.bf16.mxu1 %v5451_v39  ;;  %731 = vperm.xlu0 %5425, %v255_v57  }
  0xe3   :  { %515 = vmatmul.mubr.bf16.gmra.mrb[16].mxu1 %v6462_v27 }
  0xe4   :  { %522 = vmatprep.mubr.bf16.mxu1 %v6464_v28 }
  0xe5   :  { %736 = vperm.xlu1 %5426, %v256_v58  }
  0xeb   :  { %523 = vmatmul.mubr.bf16.gmra.mrb[20].mxu1 %v6483_v40 }
  0xec   :  { %530 = vmatprep.mubr.bf16.mxu1 %v6485_v45 }
  0xf3   :  { %531 = vmatmul.mubr.bf16.gmra.mrb[24].mxu1 %v6504_v51 }
  0xf4   :  { %538 = vmatprep.mubr.bf16.mxu1 %v6506_v56 }
  0xfb   :  { %539 = vmatmul.mubr.bf16.gmra.mrb[28].mxu1 %v6519_v60 }
  0xfc   :  { %546 = vmatprep.mubr.bf16.mxu1 %v6521_v61 }
 0x103   :  { %547 = vmatmul.mubr.bf16.gmra.mrb[32].mxu1 %v6528_v13 }
 0x104   :  { %554 = vmatprep.mubr.bf16.mxu1 %v6530_v18 }
 0x10b   :  { %555 = vmatmul.mubr.bf16.gmra.mrb[36].mxu1 %v6537_v21 }
 0x10c   :  { %562 = vmatprep.mubr.bf16.mxu1 %v6539_v22 }
 0x113   :  { %563 = vmatmul.mubr.bf16.gmra.mrb[40].mxu1 %v6546_v26 }
 0x114   :  { %570 = vmatprep.mubr.bf16.mxu1 %v6548_v33 }
 0x11b   :  { %571 = vmatmul.mubr.bf16.gmra.mrb[44].mxu1 %v6552_v34 }
 0x11c   :  { %4818 = vmatprep.mubr.bf16.mxu1 %v6210_v2  ;;  %v5456_v2 = vld [vmem:[#allocation2 + $0x28] sm:$0xff]  }
 0x123   :  { %4819 = vmatmul.mubr.bf16.vlgmr.msra.gmra.mrb[48].mxu1 %v6224_v4  ;;  %v5457_v4 = vld [vmem:[#allocation2 + $0x30] sm:$0xff]  }
 0x124   :  { %4822 = vmatprep.mubr.bf16.mxu1 %v6238_v6  ;;  %4851 = vmatpush3.bf16.msra.mxu1 %v5451_v39  ;;  %v5458_v6 = vld [vmem:[#allocation2 + $0x38] sm:$0xff]  }
 0x125   :  { %4852 = vmatprep.subr.bf16.mxu1 %v5452_v35 }
 0x128   :  { %4853 = vmatpush3.bf16.msra.mxu1 %v5452_v35 }
 0x129   :  { %4854 = vmatprep.subr.bf16.mxu1 %v5453_v36 }
 0x12b   :  { %4823 = vmatmul.mubr.bf16.gmra.mrb[52].mxu1 %v6252_v8  ;;  %v6571_v8 = vpop.permute.xlu0 %581 }
 0x12c   :  { %4826 = vmatprep.mubr.bf16.mxu1 %v6266_v10  ;;  %4855 = vmatpush3.bf16.msra.mxu1 %v5453_v36  ;;  %7774 = vst [vmem:[#allocation43_spill] sm:$0xff] %v6571_v8 }
 0x12d   :  { %4856 = vmatprep.subr.bf16.mxu1 %v5454_v37 }
 0x12f   :  { %v6575_v10 = vpop.permute.xlu0 %586 }
 0x130   :  { %4857 = vmatpush3.bf16.msra.mxu1 %v5454_v37  ;;  %7776 = vst [vmem:[#allocation45_spill] sm:$0xff] %v6575_v10 }
 0x131   :  { %4858 = vmatprep.subr.bf16.mxu1 %v5455_v38 }
 0x133   :  { %4827 = vmatmul.mubr.bf16.gmra.mrb[56].mxu1 %v6290_v16 }
 0x134   :  { %4830 = vmatprep.mubr.bf16.mxu1 %v6312_v20  ;;  %4859 = vmatpush3.bf16.msra.mxu1 %v5455_v38 }
 0x135   :  { %4860 = vmatprep.subr.bf16.mxu1 %v5456_v2 }
 0x138   :  { %4861 = vmatpush3.bf16.msra.mxu1 %v5456_v2 }
 0x139   :  { %4862 = vmatprep.subr.bf16.mxu1 %v5457_v4 }
 0x13b   :  { %4831 = vmatmul.mubr.bf16.gmra.mrb[60].mxu1 %v6330_v24 }
 0x13c   :  { %4834 = vmatprep.mubr.bf16.mxu1 %v6205_v1  ;;  %4863 = vmatpush3.bf16.msra.mxu1 %v5457_v4  ;;  %v6573_v1 = vpop.permute.xlu1 %591 }
 0x13d   :  { %4864 = vmatprep.subr.bf16.mxu1 %v5458_v6  ;;  %7775 = vst [vmem:[#allocation44_spill] sm:$0xff] %v6573_v1 }
 0x140   :  { %4865 = vmatpush3.bf16.msra.mxu1 %v5458_v6  ;;  %v6577_v16 = vpop.permute.xlu1 %596 }
 0x141   :  { %7777 = vst [vmem:[#allocation46_spill] sm:$0xff] %v6577_v16 }
 0x143   :  { %4835 = vmatmul.mubr.bf16.gmra.mrb[64].mxu1 %v6217_v3  ;;  %v6579_v3 = vpop.permute.xlu0 %601 }
 0x144   :  { %4838 = vmatprep.mubr.bf16.mxu1 %v6231_v5  ;;  %7778 = vst [vmem:[#allocation47_spill] sm:$0xff] %v6579_v3  ;;  %v6581_v5 = vpop.permute.xlu1 %606 }
 0x145   :  { %7779 = vst [vmem:[#allocation48_spill] sm:$0xff] %v6581_v5 }
 0x14b   :  { %4839 = vmatmul.mubr.bf16.gmra.mrb[68].mxu1 %v6245_v7  ;;  %v6583_v7 = vpop.permute.xlu0 %611 }
 0x14c   :  { %4842 = vmatprep.mubr.bf16.mxu1 %v6259_v9  ;;  %7780 = vst [vmem:[#allocation49_spill] sm:$0xff] %v6583_v7  ;;  %v6585_v9 = vpop.permute.xlu1 %616 }
 0x14d   :  { %7781 = vst [vmem:[#allocation50_spill] sm:$0xff] %v6585_v9 }
 0x14f   :  { %v6588_v59 = vpop.permute.xlu0 %621 }
 0x150   :  { %7782 = vst [vmem:[#allocation51_spill] sm:$0xff] %v6588_v59  ;;  %v6590_v62 = vpop.permute.xlu1 %626 }
 0x151   :  { %7783 = vst [vmem:[#allocation52_spill] sm:$0xff] %v6590_v62 }
 0x153   :  { %4843 = vmatmul.mubr.bf16.gmra.mrb[72].mxu1 %v6273_v11 }
 0x154   :  { %4846 = vmatprep.mubr.bf16.mxu1 %v6297_v17 }
 0x15b   :  { %4847 = vmatmul.mubr.bf16.gmra.mrb[76].mxu1 %v6325_v23 }
 0x196   :  { %v4290_v11 = vpop.f32.mrb[0].mxu1  ;;  %v4266_v17 = vpop.f32.mrb[0].mxu0 }
 0x197   :  { %v4291_v20 = vpop.f32.mrb[1].mxu1  ;;  %v4267_v23 = vpop.f32.mrb[1].mxu0 }
 0x198   :  { %v4292_v24 = vadd.f32 %v4291_v20, %v4290_v11  ;;  %v4293_v39 = vpop.f32.mrb[2].mxu1  ;;  %v4268_v46 = vadd.f32 %v4267_v23, %v4266_v17  ;;  %v4269_v47 = vpop.f32.mrb[2].mxu0 }
 0x199   :  { %v4294_v48 = vpop.f32.mrb[3].mxu1  ;;  %v4270_v49 = vpop.f32.mrb[3].mxu0 }
 0x19a   :  { %v4295_v50 = vadd.f32 %v4294_v48, %v4293_v39  ;;  %v739_v57 = vmul.f32 %v4268_v46, %v6571_v8  ;;  %v4271_v58 = vadd.f32 %v4270_v49, %v4269_v47  ;;  %v6593_v19 = vmul.f32 %v4292_v24, %v6588_v59  ;;  %v6602_v49 = vpop.permute.xlu0 %631 }
 0x19b   :  { %7784 = vst [vmem:[#allocation53_spill] sm:$0xff] %v6602_v49 }
 0x19c   :  { %v6596_v25 = vmul.f32 %v4295_v50, %v6590_v62  ;;  %v740_v35 = vmul.f32 %v4271_v58, %v6575_v10  ;;  %v6604_v50 = vpop.permute.xlu1 %636 }
 0x19d   :  { %7785 = vst [vmem:[#allocation54_spill] sm:$0xff] %v6604_v50 }
 0x19e   :  { %v4272_v36 = vpop.f32.mrb[4].mxu0  ;;  %v4296_v37 = vpop.f32.mrb[4].mxu1  ;;  %v771_v38 = vpack.c.bf16 %v740_v35, %v739_v57 }
 0x19f   :  { %v4273_v4 = vpop.f32.mrb[5].mxu0  ;;  %v4297_v6 = vpop.f32.mrb[5].mxu1 }
 0x1a0   :  { %v4274_v11 = vadd.f32 %v4273_v4, %v4272_v36  ;;  %v4298_v17 = vadd.f32 %v4297_v6, %v4296_v37  ;;  %v4275_v20 = vpop.f32.mrb[6].mxu0  ;;  %v4299_v23 = vpop.f32.mrb[6].mxu1  ;;  %4866 = vmatprep.mubr.bf16.mxu1 %v771_v38 }
 0x1a1   :  { %v4276_v24 = vpop.f32.mrb[7].mxu0  ;;  %v4300_v39 = vpop.f32.mrb[7].mxu1 }
 0x1a2   :  { %v741_v46 = vmul.f32 %v4274_v11, %v6573_v1  ;;  %v4277_v47 = vadd.f32 %v4276_v24, %v4275_v20  ;;  %v4301_v48 = vadd.f32 %v4300_v39, %v4299_v23  ;;  %v6607_v57 = vmul.f32 %v4298_v17, %v6602_v49  ;;  %v6613_v59 = vpop.permute.xlu0 %641 }
 0x1a3   :  { %7786 = vst [vmem:[#allocation55_spill] sm:$0xff] %v6613_v59 }
 0x1a4   :  { %v742_v58 = vmul.f32 %v4277_v47, %v6577_v16  ;;  %v750_v35 = vmul.f32 %v4301_v48, %v6604_v50 }
 0x1a6   :  { %v772_v36 = vpack.c.bf16 %v742_v58, %v741_v46  ;;  %v4302_v37 = vpop.f32.mrb[8].mxu1  ;;  %v4278_v38 = vpop.f32.mrb[8].mxu0  ;;  %v776_v4 = vpack.c.bf16 %v750_v35, %v6607_v57 }
 0x1a7   :  { %v4303_v6 = vpop.f32.mrb[9].mxu1  ;;  %v4279_v11 = vpop.f32.mrb[9].mxu0 }
 0x1a8   :  { %v4304_v20 = vadd.f32 %v4303_v6, %v4302_v37  ;;  %v4305_v23 = vpop.f32.mrb[10].mxu1  ;;  %4867 = vmatmul.mubr.bf16.vlgmr.msra.gmra.mrb[48].mxu1 %v772_v36  ;;  %v4280_v24 = vadd.f32 %v4279_v11, %v4278_v38  ;;  %v4281_v39 = vpop.f32.mrb[10].mxu0 }
 0x1a9   :  { %v4306_v2 = vpop.f32.mrb[11].mxu1  ;;  %v4282_v62 = vpop.f32.mrb[11].mxu0 }
 0x1aa   :  { %v4307_v17 = vadd.f32 %v4306_v2, %v4305_v23  ;;  %v743_v49 = vmul.f32 %v4280_v24, %v6579_v3  ;;  %v4283_v47 = vadd.f32 %v4282_v62, %v4281_v39  ;;  %v6615_v46 = vpop.permute.xlu1 %646  ;;  %v751_v48 = vmul.f32 %v4304_v20, %v6613_v59 }
 0x1ab   :  { %7787 = vst [vmem:[#allocation56_spill] sm:$0xff] %v6615_v46 }
 0x1ac   :  { %v752_v57 = vmul.f32 %v4307_v17, %v6615_v46  ;;  %v744_v58 = vmul.f32 %v4283_v47, %v6581_v5  ;;  %v6621_v17 = vpop.permute.xlu0 %651 }
 0x1ad   :  { %7788 = vst [vmem:[#allocation57_spill] sm:$0xff] %v6621_v17 }
 0x1ae   :  { %v4284_v35 = vpop.f32.mrb[12].mxu0  ;;  %v4308_v36 = vpop.f32.mrb[12].mxu1  ;;  %v773_v37 = vpack.c.bf16 %v744_v58, %v743_v49  ;;  %v777_v38 = vpack.c.bf16 %v752_v57, %v751_v48 }
 0x1af   :  { %v4285_v6 = vpop.f32.mrb[13].mxu0  ;;  %v4309_v11 = vpop.f32.mrb[13].mxu1 }
 0x1b0   :  { %v4286_v2 = vadd.f32 %v4285_v6, %v4284_v35  ;;  %v4310_v23 = vadd.f32 %v4309_v11, %v4308_v36  ;;  %v4287_v24 = vpop.f32.mrb[14].mxu0  ;;  %v4311_v62 = vpop.f32.mrb[14].mxu1  ;;  %4870 = vmatprep.mubr.bf16.mxu1 %v773_v37 }
 0x1b1   :  { %v4288_v39 = vpop.f32.mrb[15].mxu0  ;;  %v4312_v50 = vpop.f32.mrb[15].mxu1 }
 0x1b2   :  { %v745_v3 = vmul.f32 %v4286_v2, %v6583_v7  ;;  %v4289_v20 = vadd.f32 %v4288_v39, %v4287_v24  ;;  %v4313_v59 = vadd.f32 %v4312_v50, %v4311_v62  ;;  %v6623_v47 = vpop.permute.xlu1 %656  ;;  %v753_v49 = vmul.f32 %v4310_v23, %v6621_v17  ;;  %v6631_v62 = vpop.permute.xlu0 %661 }
 0x1b3   :  { %7789 = vst [vmem:[#allocation58_spill] sm:$0xff] %v6623_v47  ;;  %v7790_v50 = vpack.c.bf16 %v6596_v25, %v6593_v19  ;;  %7791 = vst [vmem:[#allocation59_spill] sm:$0xff] %v6631_v62 }
 0x1b4   :  { %v746_v48 = vmul.f32 %v4289_v20, %v6585_v9  ;;  %v754_v57 = vmul.f32 %v4313_v59, %v6623_v47 }
 0x1b6   :  { %v4314_v58 = vpop.f32.mrb[16].mxu1  ;;  %v774_v35 = vpack.c.bf16 %v746_v48, %v745_v3  ;;  %v778_v36 = vpack.c.bf16 %v754_v57, %v753_v49  ;;  %v6633_v23 = vpop.permute.xlu1 %666 }
 0x1b7   :  { %v4315_v37 = vpop.f32.mrb[17].mxu1  ;;  %7792 = vst [vmem:[#allocation60_spill] sm:$0xff] %v6633_v23  ;;  %v6637_v19 = vpop.permute.xlu0 %671 }
 0x1b8   :  { %v4316_v6 = vadd.f32 %v4315_v37, %v4314_v58  ;;  %v4317_v11 = vpop.f32.mrb[18].mxu1  ;;  %4871 = vmatmul.mubr.bf16.gmra.mrb[52].mxu1 %v774_v35  ;;  %7793 = vst [vmem:[#allocation61_spill] sm:$0xff] %v6637_v19 }
 0x1b9   :  { %v4318_v2 = vpop.f32.mrb[19].mxu1  ;;  %4874 = vmatprep.mubr.bf16.mxu1 %v7790_v50 }
 0x1ba   :  { %v4319_v24 = vadd.f32 %v4318_v2, %v4317_v11  ;;  %v755_v39 = vmul.f32 %v4316_v6, %v6631_v62  ;;  %v6639_v25 = vpop.permute.xlu1 %676 }
 0x1bb   :  { %7794 = vst [vmem:[#allocation62_spill] sm:$0xff] %v6639_v25 }
 0x1bc   :  { %v756_v59 = vmul.f32 %v4319_v24, %v6633_v23  ;;  %v5463_v23 = vld [vmem:[#allocation8 + $0x20] sm:$0xff]  }
 0x1be   :  { %v4320_v3 = vpop.f32.mrb[20].mxu1  ;;  %v779_v20 = vpack.c.bf16 %v756_v59, %v755_v39 }
 0x1bf   :  { %v4321_v49 = vpop.f32.mrb[21].mxu1 }
 0x1c0   :  { %v4322_v48 = vadd.f32 %v4321_v49, %v4320_v3  ;;  %v4323_v57 = vpop.f32.mrb[22].mxu1  ;;  %4875 = vmatmul.mubr.bf16.gmra.mrb[56].mxu1 %v776_v4  ;;  %v6643_v3 = vpop.permute.xlu0 %681 }
 0x1c1   :  { %v4324_v58 = vpop.f32.mrb[23].mxu1  ;;  %4878 = vmatprep.mubr.bf16.mxu1 %v777_v38  ;;  %7795 = vst [vmem:[#allocation63_spill] sm:$0xff] %v6643_v3  ;;  %v6645_v38 = vpop.permute.xlu1 %686 }
 0x1c2   :  { %v4325_v35 = vadd.f32 %v4324_v58, %v4323_v57  ;;  %v757_v37 = vmul.f32 %v4322_v48, %v6637_v19  ;;  %7796 = vst [vmem:[#allocation64_spill] sm:$0xff] %v6645_v38 }
 0x1c4   :  { %v758_v11 = vmul.f32 %v4325_v35, %v6639_v25 }
 0x1c6   :  { %v4326_v6 = vpop.f32.mrb[24].mxu1  ;;  %v780_v2 = vpack.c.bf16 %v758_v11, %v757_v37 }
 0x1c7   :  { %v4327_v50 = vpop.f32.mrb[25].mxu1 }
 0x1c8   :  { %v4328_v24 = vadd.f32 %v4327_v50, %v4326_v6  ;;  %v4329_v39 = vpop.f32.mrb[26].mxu1  ;;  %4879 = vmatmul.mubr.bf16.gmra.mrb[60].mxu1 %v778_v36  ;;  %v6649_v6 = vpop.permute.xlu0 %691 }
 0x1c9   :  { %v4330_v59 = vpop.f32.mrb[27].mxu1  ;;  %4882 = vmatprep.mubr.bf16.mxu1 %v779_v20  ;;  %7797 = vst [vmem:[#allocation65_spill] sm:$0xff] %v6649_v6  ;;  %v6651_v20 = vpop.permute.xlu1 %696 }
 0x1ca   :  { %v4331_v4 = vadd.f32 %v4330_v59, %v4329_v39  ;;  %v759_v49 = vmul.f32 %v4328_v24, %v6643_v3  ;;  %7798 = vst [vmem:[#allocation66_spill] sm:$0xff] %v6651_v20  ;;  %v5462_v3 = vld [vmem:[#allocation8 + $0x18] sm:$0xff]  }
 0x1cc   :  { %v760_v57 = vmul.f32 %v4331_v4, %v6645_v38 }
 0x1ce   :  { %v4332_v48 = vpop.f32.mrb[28].mxu1  ;;  %v781_v58 = vpack.c.bf16 %v760_v57, %v759_v49 }
 0x1cf   :  { %v4333_v35 = vpop.f32.mrb[29].mxu1 }
 0x1d0   :  { %v4334_v25 = vadd.f32 %v4333_v35, %v4332_v48  ;;  %v4335_v37 = vpop.f32.mrb[30].mxu1  ;;  %4883 = vmatmul.mubr.bf16.gmra.mrb[64].mxu1 %v780_v2  ;;  %v6655_v2 = vpop.permute.xlu0 %701 }
 0x1d1   :  { %v4336_v11 = vpop.f32.mrb[31].mxu1  ;;  %4886 = vmatprep.mubr.bf16.mxu1 %v781_v58  ;;  %7799 = vst [vmem:[#allocation67_spill] sm:$0xff] %v6655_v2  ;;  %v6657_v58 = vpop.permute.xlu1 %706 }
 0x1d2   :  { %v4337_v36 = vadd.f32 %v4336_v11, %v4335_v37  ;;  %v761_v50 = vmul.f32 %v4334_v25, %v6649_v6  ;;  %7800 = vst [vmem:[#allocation68_spill] sm:$0xff] %v6657_v58 }
 0x1d4   :  { %v762_v39 = vmul.f32 %v4337_v36, %v6651_v20 }
 0x1d6   :  { %v4338_v24 = vpop.f32.mrb[32].mxu1  ;;  %v782_v59 = vpack.c.bf16 %v762_v39, %v761_v50 }
 0x1d7   :  { %v4339_v4 = vpop.f32.mrb[33].mxu1 }
 0x1d8   :  { %v4340_v38 = vadd.f32 %v4339_v4, %v4338_v24  ;;  %v4341_v49 = vpop.f32.mrb[34].mxu1  ;;  %4887 = vmatmul.mubr.bf16.gmra.mrb[68].mxu1 %v782_v59  ;;  %v6661_v24 = vpop.permute.xlu0 %711 }
 0x1d9   :  { %v4342_v57 = vpop.f32.mrb[35].mxu1  ;;  %7801 = vst [vmem:[#allocation69_spill] sm:$0xff] %v6661_v24  ;;  %v6663_v59 = vpop.permute.xlu1 %716 }
 0x1da   :  { %v4343_v48 = vadd.f32 %v4342_v57, %v4341_v49  ;;  %v763_v35 = vmul.f32 %v4340_v38, %v6655_v2  ;;  %7802 = vst [vmem:[#allocation70_spill] sm:$0xff] %v6663_v59 }
 0x1dc   :  { %v764_v37 = vmul.f32 %v4343_v48, %v6657_v58 }
 0x1de   :  { %v4344_v11 = vpop.f32.mrb[36].mxu1  ;;  %v783_v25 = vpack.c.bf16 %v764_v37, %v763_v35  ;;  %v6667_v37 = vpop.permute.xlu0 %721 }
 0x1df   :  { %v4345_v6 = vpop.f32.mrb[37].mxu1  ;;  %7803 = vst [vmem:[#allocation71_spill] sm:$0xff] %v6667_v37 }
 0x1e0   :  { %v4346_v36 = vadd.f32 %v4345_v6, %v4344_v11  ;;  %v4347_v20 = vpop.f32.mrb[38].mxu1  ;;  %4890 = vmatprep.mubr.bf16.mxu1 %v783_v25  ;;  %v6669_v11 = vpop.permute.xlu1 %726 }
 0x1e1   :  { %v4348_v50 = vpop.f32.mrb[39].mxu1  ;;  %7804 = vst [vmem:[#allocation72_spill] sm:$0xff] %v6669_v11 }
 0x1e2   :  { %v4349_v39 = vadd.f32 %v4348_v50, %v4347_v20  ;;  %v765_v4 = vmul.f32 %v4346_v36, %v6661_v24 }
 0x1e4   :  { %v766_v49 = vmul.f32 %v4349_v39, %v6663_v59 }
 0x1e6   :  { %v4350_v57 = vpop.f32.mrb[40].mxu1  ;;  %v784_v38 = vpack.c.bf16 %v766_v49, %v765_v4  ;;  %v6673_v49 = vpop.permute.xlu0 %731 }
 0x1e7   :  { %v4351_v2 = vpop.f32.mrb[41].mxu1  ;;  %7805 = vst [vmem:[#allocation73_spill] sm:$0xff] %v6673_v49 }
 0x1e8   :  { %v4352_v48 = vadd.f32 %v4351_v2, %v4350_v57  ;;  %v4353_v58 = vpop.f32.mrb[42].mxu1  ;;  %4891 = vmatmul.mubr.bf16.gmra.mrb[72].mxu1 %v784_v38  ;;  %v6675_v57 = vpop.permute.xlu1 %736 }
 0x1e9   :  { %v4354_v35 = vpop.f32.mrb[43].mxu1  ;;  %7806 = vst [vmem:[#allocation74_spill] sm:$0xff] %v6675_v57 }
 0x1ea   :  { %v4355_v6 = vadd.f32 %v4354_v35, %v4353_v58  ;;  %v767_v20 = vmul.f32 %v4352_v48, %v6667_v37  ;;  %v5459_v48 = vld [vmem:[#allocation8] sm:$0xff]  }
 0x1eb   :  { %4898 = vmatprep.subr.bf16.mxu1 %v5459_v48 }
 0x1ec   :  { %v768_v25 = vmul.f32 %v4355_v6, %v6669_v11  ;;  %4899 = vmatpush3.bf16.msra.mxu1 %v5459_v48 }
 0x1ee   :  { %v4356_v50 = vpop.f32.mrb[44].mxu1  ;;  %v785_v36 = vpack.c.bf16 %v768_v25, %v767_v20 }
 0x1ef   :  { %v4357_v24 = vpop.f32.mrb[45].mxu1 }
 0x1f0   :  { %v4358_v39 = vadd.f32 %v4357_v24, %v4356_v50  ;;  %v4359_v59 = vpop.f32.mrb[46].mxu1  ;;  %4894 = vmatprep.mubr.bf16.mxu1 %v785_v36  ;;  %v6682_v24 = vld [vmem:[%s7623_s5] ss:$0 sm:$0xff] }
 0x1f1   :  { %v4360_v4 = vpop.f32.mrb[47].mxu1 }
 0x1f2   :  { %v4361_v2 = vadd.f32 %v4360_v4, %v4359_v59  ;;  %v769_v58 = vmul.f32 %v4358_v39, %v6673_v49  ;;  %v5461_v49 = vld [vmem:[#allocation8 + $0x10] sm:$0xff]  }
 0x1f4   :  { %v770_v38 = vmul.f32 %v4361_v2, %v6675_v57  ;;  %v5460_v57 = vld [vmem:[#allocation8 + $0x8] sm:$0xff]  }
 0x1f5   :  { %4900 = vmatprep.subr.bf16.mxu1 %v5460_v57 }
 0x1f6   :  { %v786_v35 = vpack.c.bf16 %v770_v38, %v769_v58  ;;  %4901 = vmatpush3.bf16.msra.mxu1 %v5460_v57 }
 0x1f7   :  { %4902 = vmatprep.subr.bf16.mxu1 %v5461_v49 }
 0x1f8   :  { %4895 = vmatmul.mubr.bf16.gmra.mrb[76].mxu1 %v786_v35 }
 0x1fa   :  { %4903 = vmatpush3.bf16.msra.mxu1 %v5461_v49 }
 0x1fb   :  { %4904 = vmatprep.subr.bf16.mxu1 %v5462_v3 }
 0x1fe   :  { %4905 = vmatpush3.bf16.msra.mxu1 %v5462_v3  ;;  %v5465_v3 = vld [vmem:[#allocation8 + $0x30] sm:$0xff]  }
 0x1ff   :  { %4906 = vmatprep.subr.bf16.mxu1 %v5463_v23 }
 0x202   :  { %4907 = vmatpush3.bf16.msra.mxu1 %v5463_v23  ;;  %v5466_v23 = vld [vmem:[#allocation8 + $0x38] sm:$0xff]  }
 0x27b   :  { %v4868_v6 = vpop.f32.mrb[48].mxu1 }
 0x27c   :  { %v6685_v59 = vadd.f32 %v4868_v6, %v6682_v24  ;;  %v1078_v20 = vpop.f32.mrb[49].mxu1 }
 0x27d   :  { %v6688_v25 = vadd.f32 %v6682_v24, %v1078_v20  ;;  %v4869_v50 = vpop.f32.mrb[50].mxu1 }
 0x27e   :  { %v1081_v36 = vpop.f32.mrb[51].mxu1  ;;  %v1245_v39 = vmul.f32 %v6685_v59, %v6685_v59  ;;  %v6693_v4 = vadd.f32 %v4869_v50, %v6682_v24 }
 0x27f   :  { %v1243_v2 = vmul.f32 %v6688_v25, %v6688_v25  ;;  %v6698_v58 = vadd.f32 %v6682_v24, %v1081_v36 }
 0x280   :  { %1279 = vadd.xlane.f32.xlu1 %v1245_v39  ;;  %v1246_v38 = vmul.f32 %v6693_v4, %v6693_v4 }
 0x281   :  { %1275 = vadd.xlane.f32.xlu0 %v1243_v2  ;;  %v1244_v35 = vmul.f32 %v6698_v58, %v6698_v58 }
 0x285   :  { %1281 = vadd.xlane.f32.xlu0 %v1246_v38 }
 0x289   :  { %1277 = vadd.xlane.f32.xlu0 %v1244_v35 }
 0x28b   :  { %v4872_v48 = vpop.f32.mrb[52].mxu1 }
 0x28c   :  { %v6705_v6 = vadd.f32 %v4872_v48, %v6682_v24  ;;  %v1094_v20 = vpop.f32.mrb[53].mxu1 }
 0x28d   :  { %v4873_v50 = vpop.f32.mrb[54].mxu1  ;;  %v6708_v39 = vadd.f32 %v6682_v24, %v1094_v20 }
 0x28e   :  { %v6711_v36 = vadd.f32 %v4873_v50, %v6682_v24  ;;  %v1097_v2 = vpop.f32.mrb[55].mxu1  ;;  %v1249_v38 = vmul.f32 %v6705_v6, %v6705_v6 }
 0x28f   :  { %v6716_v35 = vadd.f32 %v6682_v24, %v1097_v2  ;;  %v1247_v20 = vmul.f32 %v6708_v39, %v6708_v39 }
 0x290   :  { %1287 = vadd.xlane.f32.xlu1 %v1249_v38  ;;  %v1250_v48 = vmul.f32 %v6711_v36, %v6711_v36 }
 0x291   :  { %v1248_v2 = vmul.f32 %v6716_v35, %v6716_v35 }
 0x292   :  { %1289 = vadd.xlane.f32.xlu0 %v1250_v48 }
 0x293   :  { %v4876_v50 = vpop.f32.mrb[56].mxu1 }
 0x294   :  { %v6723_v11 = vadd.f32 %v4876_v50, %v6682_v24  ;;  %1283 = vadd.xlane.f32.xlu1 %v1247_v20  ;;  %v1110_v37 = vpop.f32.mrb[57].mxu1 }
 0x295   :  { %v4877_v38 = vpop.f32.mrb[58].mxu1  ;;  %v6728_v57 = vadd.f32 %v6682_v24, %v1110_v37 }
 0x296   :  { %v6731_v48 = vadd.f32 %v4877_v38, %v6682_v24  ;;  %1285 = vadd.xlane.f32.xlu0 %v1248_v2  ;;  %v1113_v19 = vpop.f32.mrb[59].mxu1  ;;  %v1253_v50 = vmul.f32 %v6723_v11, %v6723_v11 }
 0x297   :  { %v6736_v20 = vadd.f32 %v6682_v24, %v1113_v19  ;;  %v1251_v37 = vmul.f32 %v6728_v57, %v6728_v57 }
 0x298   :  { %1295 = vadd.xlane.f32.xlu1 %v1253_v50  ;;  %v1254_v49 = vmul.f32 %v6731_v48, %v6731_v48  ;;  %v5464_v50 = vld [vmem:[#allocation8 + $0x28] sm:$0xff]  }
 0x299   :  { %v1252_v62 = vmul.f32 %v6736_v20, %v6736_v20  ;;  %4908 = vmatprep.subr.bf16.mxu1 %v5464_v50 }
 0x29a   :  { %1297 = vadd.xlane.f32.xlu0 %v1254_v49  ;;  %4909 = vmatpush3.bf16.msra.mxu1 %v5464_v50 }
 0x29b   :  { %v6742_v38 = vpop.f32.mrb[60].mxu1  ;;  %4910 = vmatprep.subr.bf16.mxu1 %v5465_v3 }
 0x29c   :  { %1291 = vadd.xlane.f32.xlu1 %v1251_v37  ;;  %v1126_v2 = vpop.f32.mrb[61].mxu1 }
 0x29d   :  { %v6746_v19 = vpop.f32.mrb[62].mxu1 }
 0x29e   :  { %1293 = vadd.xlane.f32.xlu0 %v1252_v62  ;;  %v1129_v47 = vpop.f32.mrb[63].mxu1  ;;  %4911 = vmatpush3.bf16.msra.mxu1 %v5465_v3 }
 0x29f   :  { %4912 = vmatprep.subr.bf16.mxu1 %v5466_v23 }
 0x2a2   :  { %4913 = vmatpush3.bf16.msra.mxu1 %v5466_v23 }
 0x2a3   :  { %v4884_v49 = vpop.f32.mrb[64].mxu1 }
 0x2a4   :  { %v6749_v17 = vadd.f32 %v4884_v49, %v6682_v24  ;;  %v1142_v46 = vpop.f32.mrb[65].mxu1 }
 0x2a5   :  { %v6752_v37 = vadd.f32 %v6682_v24, %v1142_v46  ;;  %v4885_v9 = vpop.f32.mrb[66].mxu1 }
 0x2a6   :  { %v1145_v7 = vpop.f32.mrb[67].mxu1  ;;  %v1261_v62 = vmul.f32 %v6749_v17, %v6749_v17  ;;  %v6757_v5 = vadd.f32 %v4885_v9, %v6682_v24 }
 0x2a7   :  { %v6760_v50 = vadd.f32 %v6682_v24, %v1145_v7  ;;  %v1259_v49 = vmul.f32 %v6752_v37, %v6752_v37 }
 0x2a8   :  { %1311 = vadd.xlane.f32.xlu1 %v1261_v62  ;;  %v1262_v16 = vmul.f32 %v6757_v5, %v6757_v5 }
 0x2a9   :  { %1307 = vadd.xlane.f32.xlu0 %v1259_v49  ;;  %v1260_v46 = vmul.f32 %v6760_v50, %v6760_v50 }
 0x2ab   :  { %v4888_v3 = vpop.f32.mrb[68].mxu1 }
 0x2ac   :  { %v6769_v9 = vadd.f32 %v4888_v3, %v6682_v24  ;;  %1309 = vadd.xlane.f32.xlu1 %v1260_v46  ;;  %v1158_v7 = vpop.f32.mrb[69].mxu1 }
 0x2ad   :  { %1313 = vadd.xlane.f32.xlu0 %v1262_v16  ;;  %v4889_v1 = vpop.f32.mrb[70].mxu1  ;;  %v6772_v10 = vadd.f32 %v6682_v24, %v1158_v7 }
 0x2ae   :  { %v6775_v23 = vadd.f32 %v4889_v1, %v6682_v24  ;;  %v1161_v62 = vpop.f32.mrb[71].mxu1  ;;  %v1265_v49 = vmul.f32 %v6769_v9, %v6769_v9 }
 0x2af   :  { %v6780_v8 = vadd.f32 %v6682_v24, %v1161_v62  ;;  %v1263_v16 = vmul.f32 %v6772_v10, %v6772_v10 }
 0x2b0   :  { %1319 = vadd.xlane.f32.xlu1 %v1265_v49  ;;  %v1266_v46 = vmul.f32 %v6775_v23, %v6775_v23 }
 0x2b1   :  { %v1264_v1 = vmul.f32 %v6780_v8, %v6780_v8 }
 0x2b2   :  { %1321 = vadd.xlane.f32.xlu0 %v1266_v46 }
 0x2b4   :  { %1315 = vadd.xlane.f32.xlu1 %v1263_v16 }
 0x2b6   :  { %1317 = vadd.xlane.f32.xlu0 %v1264_v1 }
 0x2bb   :  { %v4892_v3 = vpop.f32.mrb[72].mxu1 }
 0x2bc   :  { %v6789_v7 = vadd.f32 %v4892_v3, %v6682_v24  ;;  %v1174_v14 = vpop.f32.mrb[73].mxu1  ;;  %v6805_v3 = vadd.f32 %v6682_v24, %v1126_v2 }
 0x2bd   :  { %v4893_v62 = vpop.f32.mrb[74].mxu1  ;;  %v6792_v49 = vadd.f32 %v6682_v24, %v1174_v14 }
 0x2be   :  { %v6795_v34 = vadd.f32 %v4893_v62, %v6682_v24  ;;  %v1177_v46 = vpop.f32.mrb[75].mxu1  ;;  %v1269_v16 = vmul.f32 %v6789_v7, %v6789_v7  ;;  %v6810_v62 = vadd.f32 %v6682_v24, %v1129_v47 }
 0x2bf   :  { %v6800_v33 = vadd.f32 %v6682_v24, %v1177_v46  ;;  %v1267_v14 = vmul.f32 %v6792_v49, %v6792_v49  ;;  %v1255_v46 = vmul.f32 %v6805_v3, %v6805_v3 }
 0x2c0   :  { %1327 = vadd.xlane.f32.xlu1 %v1269_v16  ;;  %v1270_v1 = vmul.f32 %v6795_v34, %v6795_v34  ;;  %v1256_v2 = vmul.f32 %v6810_v62, %v6810_v62 }
 0x2c1   :  { %v1268_v26 = vmul.f32 %v6800_v33, %v6800_v33 }
 0x2c2   :  { %1329 = vadd.xlane.f32.xlu0 %v1270_v1 }
 0x2c4   :  { %1323 = vadd.xlane.f32.xlu1 %v1267_v14 }
 0x2c6   :  { %1325 = vadd.xlane.f32.xlu0 %v1268_v26 }
 0x2c8   :  { %1299 = vadd.xlane.f32.xlu1 %v1255_v46 }
 0x2ca   :  { %1301 = vadd.xlane.f32.xlu0 %v1256_v2 }
 0x2cb   :  { %v4896_v16 = vpop.f32.mrb[76].mxu1 }
 0x2cc   :  { %v1190_v1 = vpop.f32.mrb[77].mxu1  ;;  %v6822_v14 = vadd.f32 %v4896_v16, %v6682_v24 }
 0x2cd   :  { %v6819_v22 = vadd.f32 %v6682_v24, %v1190_v1  ;;  %v4897_v47 = vpop.f32.mrb[78].mxu1  ;;  %v6836_v1 = vadd.f32 %v6742_v38, %v6682_v24 }
 0x2ce   :  { %v1193_v21 = vpop.f32.mrb[79].mxu1  ;;  %v6830_v18 = vadd.f32 %v4897_v47, %v6682_v24  ;;  %v1273_v16 = vmul.f32 %v6822_v14, %v6822_v14 }
 0x2cf   :  { %v6825_v26 = vadd.f32 %v6682_v24, %v1193_v21  ;;  %v1271_v46 = vmul.f32 %v6819_v22, %v6819_v22  ;;  %v6842_v21 = vadd.f32 %v6746_v19, %v6682_v24 }
 0x2d0   :  { %v1274_v47 = vmul.f32 %v6830_v18, %v6830_v18 }
 0x2d1   :  { %1331 = vadd.xlane.f32.xlu1 %v1271_v46  ;;  %v1272_v2 = vmul.f32 %v6825_v26, %v6825_v26  ;;  %v1257_v46 = vmul.f32 %v6836_v1, %v6836_v1  ;;  %v1258_v38 = vmul.f32 %v6842_v21, %v6842_v21 }
 0x2d3   :  { %1333 = vadd.xlane.f32.xlu0 %v1272_v2 }
 0x2d5   :  { %1335 = vadd.xlane.f32.xlu1 %v1273_v16 }
 0x2d7   :  { %1337 = vadd.xlane.f32.xlu0 %v1274_v47 }
 0x2d9   :  { %1303 = vadd.xlane.f32.xlu1 %v1257_v46 }
 0x2db   :  { %1305 = vadd.xlane.f32.xlu0 %v1258_v38 }
 0x30d   :  { %v1280_v13 = vpop.xlane.xlu1 %1279 }
 0x30e   :  { %v1276_v2 = vpop.xlane.xlu0 %1275  ;;  %v1341_v60 = vmax.f32 %v1280_v13, 1e-24 }
 0x30f   :  { %v1339_v61 = vmax.f32 %v1276_v2, 1e-24 }
 0x311   :  { %5515 = vrsqrt.f32 %v1339_v61 }
 0x312   :  { %v1282_v56 = vpop.xlane.xlu0 %1281 }
 0x313   :  { %v1342_v24 = vmax.f32 %v1282_v56, 1e-24 }
 0x315   :  { %5517 = vrsqrt.f32 %v1342_v24 }
 0x316   :  { %5519 = vrsqrt.f32 %v1341_v60  ;;  %v1278_v19 = vpop.xlane.xlu0 %1277 }
 0x317   :  { %v1340_v16 = vmax.f32 %v1278_v19, 1e-24 }
 0x319   :  { %5521 = vrsqrt.f32 %v1340_v16 }
 0x31b   :  { %v5516_v51 = vpop.eup %5515 }
 0x31c   :  { %v1403_v56 = vmul.f32 %v5516_v51, %v6688_v25 }
 0x31d   :  { %v1288_v47 = vpop.xlane.xlu1 %1287 }
 0x31e   :  { %v1345_v46 = vmax.f32 %v1288_v47, 1e-24 }
 0x31f   :  { %v5518_v45 = vpop.eup %5517  ;;  %v1290_v40 = vpop.xlane.xlu0 %1289 }
 0x320   :  { %v5520_v28 = vpop.eup %5519  ;;  %v1346_v27 = vmax.f32 %v1290_v40, 1e-24  ;;  %v1406_v38 = vmul.f32 %v5518_v45, %v6693_v4  ;;  %v1435_v40 = vmax.f32 %v1403_v56, 0.0 }
 0x321   :  { %v1284_v12 = vpop.xlane.xlu1 %1283  ;;  %v1405_v60 = vmul.f32 %v5520_v28, %v6685_v59 }
 0x322   :  { %5523 = vrsqrt.f32 %v1346_v27  ;;  %v1343_v13 = vmax.f32 %v1284_v12, 1e-24  ;;  %v1438_v16 = vmax.f32 %v1406_v38, 0.0 }
 0x323   :  { %v5522_v61 = vpop.eup %5521  ;;  %5525 = vrsqrt.f32 %v1345_v46  ;;  %v1286_v2 = vpop.xlane.xlu0 %1285  ;;  %v1437_v45 = vmax.f32 %v1405_v60, 0.0 }
 0x324   :  { %5527 = vrsqrt.f32 %v1343_v13  ;;  %v1344_v24 = vmax.f32 %v1286_v2, 1e-24  ;;  %v1404_v19 = vmul.f32 %v5522_v61, %v6698_v58 }
 0x325   :  { %v1296_v47 = vpop.xlane.xlu1 %1295  ;;  %v6856_v25 = vpack.c.bf16 %v1438_v16, %v1437_v45 }
 0x326   :  { %5529 = vrsqrt.f32 %v1344_v24  ;;  %v1436_v0 = vmax.f32 %v1404_v19, 0.0  ;;  %v1349_v4 = vmax.f32 %v1296_v47, 1e-24 }
 0x327   :  { %v1298_v27 = vpop.xlane.xlu0 %1297  ;;  %7808 = vst [vmem:[#allocation76_spill] sm:$0xff] %v6856_v25 }
 0x328   :  { %v1350_v12 = vmax.f32 %v1298_v27, 1e-24  ;;  %v6854_v55 = vpack.c.bf16 %v1436_v0, %v1435_v40 }
 0x329   :  { %v1292_v51 = vpop.xlane.xlu1 %1291 }
 0x32a   :  { %7807 = vst [vmem:[#allocation75_spill] sm:$0xff] %v6854_v55  ;;  %5531 = vrsqrt.f32 %v1350_v12  ;;  %v1347_v28 = vmax.f32 %v1292_v51, 1e-24  ;;  %4914 = vmatprep.mubr.bf16.mxu1 %v6854_v55 }
 0x32b   :  { %5533 = vrsqrt.f32 %v1349_v4  ;;  %4915 = vmatmul.mubr.bf16.vlgmr.msra.gmra.mrb[80].mxu1 %v6856_v25  ;;  %v1294_v59 = vpop.xlane.xlu0 %1293 }
 0x32c   :  { %v5524_v58 = vpop.eup %5523  ;;  %5535 = vrsqrt.f32 %v1347_v28  ;;  %v1348_v46 = vmax.f32 %v1294_v59, 1e-24 }
 0x32d   :  { %v5526_v38 = vpop.eup %5525  ;;  %v1410_v0 = vmul.f32 %v5524_v58, %v6711_v36 }
 0x32e   :  { %v5528_v13 = vpop.eup %5527  ;;  %5537 = vrsqrt.f32 %v1348_v46  ;;  %v1409_v60 = vmul.f32 %v5526_v38, %v6705_v6 }
 0x32f   :  { %v1407_v56 = vmul.f32 %v5528_v13, %v6708_v39  ;;  %v1442_v24 = vmax.f32 %v1410_v0, 0.0 }
 0x330   :  { %v5530_v61 = vpop.eup %5529  ;;  %v1441_v40 = vmax.f32 %v1409_v60, 0.0 }
 0x331   :  { %v1408_v2 = vmul.f32 %v5530_v61, %v6716_v35  ;;  %v1439_v19 = vmax.f32 %v1407_v56, 0.0 }
 0x332   :  { %v6866_v36 = vpack.c.bf16 %v1442_v24, %v1441_v40 }
 0x333   :  { %v1440_v16 = vmax.f32 %v1408_v2, 0.0 }
 0x334   :  { %v5532_v47 = vpop.eup %5531  ;;  %7810 = vst [vmem:[#allocation78_spill] sm:$0xff] %v6866_v36 }
 0x335   :  { %v5534_v45 = vpop.eup %5533  ;;  %v1312_v4 = vpop.xlane.xlu1 %1311  ;;  %v6864_v27 = vpack.c.bf16 %v1440_v16, %v1439_v19  ;;  %v1414_v39 = vmul.f32 %v5532_v47, %v6731_v48 }
 0x336   :  { %v5536_v12 = vpop.eup %5535  ;;  %v1357_v51 = vmax.f32 %v1312_v4, 1e-24  ;;  %v1308_v28 = vpop.xlane.xlu0 %1307  ;;  %v1413_v58 = vmul.f32 %v5534_v45, %v6723_v11 }
 0x337   :  { %7809 = vst [vmem:[#allocation77_spill] sm:$0xff] %v6864_v27  ;;  %v1355_v59 = vmax.f32 %v1308_v28, 1e-24  ;;  %4918 = vmatprep.mubr.bf16.mxu1 %v6864_v27  ;;  %v1411_v6 = vmul.f32 %v5536_v12, %v6728_v57  ;;  %v1446_v56 = vmax.f32 %v1414_v39, 0.0 }
 0x338   :  { %v5538_v35 = vpop.eup %5537  ;;  %5539 = vrsqrt.f32 %v1357_v51  ;;  %4919 = vmatmul.mubr.bf16.gmra.mrb[84].mxu1 %v6866_v36  ;;  %v1445_v2 = vmax.f32 %v1413_v58, 0.0 }
 0x339   :  { %5541 = vrsqrt.f32 %v1355_v59  ;;  %v1310_v46 = vpop.xlane.xlu1 %1309  ;;  %v1412_v38 = vmul.f32 %v5538_v35, %v6736_v20  ;;  %v1443_v48 = vmax.f32 %v1411_v6, 0.0 }
 0x33a   :  { %v1356_v13 = vmax.f32 %v1310_v46, 1e-24  ;;  %v1314_v0 = vpop.xlane.xlu0 %1313  ;;  %v6876_v19 = vpack.c.bf16 %v1446_v56, %v1445_v2 }
 0x33b   :  { %v1358_v61 = vmax.f32 %v1314_v0, 1e-24  ;;  %v1444_v60 = vmax.f32 %v1412_v38, 0.0 }
 0x33c   :  { %5543 = vrsqrt.f32 %v1356_v13  ;;  %7812 = vst [vmem:[#allocation80_spill] sm:$0xff] %v6876_v19 }
 0x33d   :  { %5545 = vrsqrt.f32 %v1358_v61  ;;  %v1320_v57 = vpop.xlane.xlu1 %1319  ;;  %v6874_v24 = vpack.c.bf16 %v1444_v60, %v1443_v48 }
 0x33e   :  { %v1361_v16 = vmax.f32 %v1320_v57, 1e-24 }
 0x33f   :  { %7811 = vst [vmem:[#allocation79_spill] sm:$0xff] %v6874_v24  ;;  %4922 = vmatprep.mubr.bf16.mxu1 %v6874_v24  ;;  %v1322_v11 = vpop.xlane.xlu0 %1321 }
 0x340   :  { %v1362_v47 = vmax.f32 %v1322_v11, 1e-24  ;;  %4923 = vmatmul.mubr.bf16.gmra.mrb[88].mxu1 %v6876_v19 }
 0x341   :  { %v1316_v20 = vpop.xlane.xlu1 %1315 }
 0x342   :  { %v5540_v40 = vpop.eup %5539  ;;  %5547 = vrsqrt.f32 %v1362_v47  ;;  %v1359_v45 = vmax.f32 %v1316_v20, 1e-24 }
 0x343   :  { %v5542_v4 = vpop.eup %5541  ;;  %5549 = vrsqrt.f32 %v1361_v16  ;;  %v1318_v12 = vpop.xlane.xlu0 %1317  ;;  %v1421_v59 = vmul.f32 %v5540_v40, %v6749_v17 }
 0x344   :  { %5551 = vrsqrt.f32 %v1359_v45  ;;  %v1360_v51 = vmax.f32 %v1318_v12, 1e-24  ;;  %v1419_v28 = vmul.f32 %v5542_v4, %v6752_v37 }
 0x345   :  { %v1453_v13 = vmax.f32 %v1421_v59, 0.0 }
 0x346   :  { %v5544_v39 = vpop.eup %5543  ;;  %5553 = vrsqrt.f32 %v1360_v51  ;;  %v1451_v46 = vmax.f32 %v1419_v28, 0.0 }
 0x347   :  { %v5546_v6 = vpop.eup %5545  ;;  %v1420_v35 = vmul.f32 %v5544_v39, %v6760_v50 }
 0x348   :  { %v1422_v58 = vmul.f32 %v5546_v6, %v6757_v5 }
 0x349   :  { %v1452_v38 = vmax.f32 %v1420_v35, 0.0 }
 0x34a   :  { %v1454_v0 = vmax.f32 %v1422_v58, 0.0 }
 0x34b   :  { %v6884_v56 = vpack.c.bf16 %v1452_v38, %v1451_v46 }
 0x34c   :  { %v5548_v61 = vpop.eup %5547  ;;  %v6886_v48 = vpack.c.bf16 %v1454_v0, %v1453_v13 }
 0x34d   :  { %7813 = vst [vmem:[#allocation81_spill] sm:$0xff] %v6884_v56  ;;  %v5550_v60 = vpop.eup %5549  ;;  %4410 = vmatprep.subr.bf16.mxu0 %v6884_v56  ;;  %v1328_v37 = vpop.xlane.xlu1 %1327  ;;  %v1426_v57 = vmul.f32 %v5548_v61, %v6775_v23 }
 0x34e   :  { %7814 = vst [vmem:[#allocation82_spill] sm:$0xff] %v6886_v48  ;;  %v5552_v2 = vpop.eup %5551  ;;  %4411 = vmatpush3.bf16.msra.mxu0 %v6854_v55  ;;  %v1365_v17 = vmax.f32 %v1328_v37, 1e-24  ;;  %v1425_v40 = vmul.f32 %v5550_v60, %v6769_v9 }
 0x34f   :  { %4412 = vmatprep.subr.bf16.mxu0 %v6886_v48  ;;  %v1330_v5 = vpop.xlane.xlu0 %1329  ;;  %v1423_v50 = vmul.f32 %v5552_v2, %v6772_v10  ;;  %v1458_v28 = vmax.f32 %v1426_v57, 0.0 }
 0x350   :  { %v5554_v16 = vpop.eup %5553  ;;  %v1366_v11 = vmax.f32 %v1330_v5, 1e-24  ;;  %v1457_v59 = vmax.f32 %v1425_v40, 0.0 }
 0x351   :  { %v1324_v47 = vpop.xlane.xlu1 %1323  ;;  %v1424_v20 = vmul.f32 %v5554_v16, %v6780_v8  ;;  %v1455_v12 = vmax.f32 %v1423_v50, 0.0 }
 0x352   :  { %5555 = vrsqrt.f32 %v1366_v11  ;;  %v1363_v45 = vmax.f32 %v1324_v47, 1e-24  ;;  %4413 = vmatpush3.bf16.msra.mxu0 %v6856_v25  ;;  %v6899_v9 = vpack.c.bf16 %v1458_v28, %v1457_v59 }
 0x353   :  { %5557 = vrsqrt.f32 %v1365_v17  ;;  %v1326_v4 = vpop.xlane.xlu0 %1325  ;;  %v1456_v51 = vmax.f32 %v1424_v20, 0.0 }
 0x354   :  { %5559 = vrsqrt.f32 %v1363_v45  ;;  %v1364_v10 = vmax.f32 %v1326_v4, 1e-24  ;;  %7816 = vst [vmem:[#allocation84_spill] sm:$0xff] %v6899_v9 }
 0x355   :  { %v1300_v39 = vpop.xlane.xlu1 %1299  ;;  %v6896_v23 = vpack.c.bf16 %v1456_v51, %v1455_v12 }
 0x356   :  { %5561 = vrsqrt.f32 %v1364_v10  ;;  %v1351_v6 = vmax.f32 %v1300_v39, 1e-24 }
 0x357   :  { %7815 = vst [vmem:[#allocation83_spill] sm:$0xff] %v6896_v23  ;;  %4414 = vmatprep.subr.bf16.mxu0 %v6896_v23  ;;  %v1302_v8 = vpop.xlane.xlu0 %1301 }
 0x358   :  { %5563 = vrsqrt.f32 %v1351_v6  ;;  %v1352_v35 = vmax.f32 %v1302_v8, 1e-24  ;;  %4415 = vmatpush3.bf16.msra.mxu0 %v6864_v27 }
 0x359   :  { %4416 = vmatprep.subr.bf16.mxu0 %v6899_v9 }
 0x35a   :  { %5565 = vrsqrt.f32 %v1352_v35 }
 0x35c   :  { %v5556_v58 = vpop.eup %5555  ;;  %4417 = vmatpush3.bf16.msra.mxu0 %v6866_v36 }
 0x35d   :  { %v5558_v46 = vpop.eup %5557  ;;  %v1430_v0 = vmul.f32 %v5556_v58, %v6795_v34 }
 0x35e   :  { %v5560_v38 = vpop.eup %5559  ;;  %v1332_v13 = vpop.xlane.xlu1 %1331  ;;  %v1429_v17 = vmul.f32 %v5558_v46, %v6789_v7 }
 0x35f   :  { %v1367_v61 = vmax.f32 %v1332_v13, 1e-24  ;;  %v1427_v60 = vmul.f32 %v5560_v38, %v6792_v49  ;;  %v1462_v47 = vmax.f32 %v1430_v0, 0.0 }
 0x360   :  { %v5562_v37 = vpop.eup %5561  ;;  %v1334_v2 = vpop.xlane.xlu0 %1333  ;;  %v1461_v49 = vmax.f32 %v1429_v17, 0.0 }
 0x361   :  { %5567 = vrsqrt.f32 %v1367_v61  ;;  %v1368_v5 = vmax.f32 %v1334_v2, 1e-24  ;;  %v1428_v50 = vmul.f32 %v5562_v37, %v6800_v33  ;;  %v1459_v11 = vmax.f32 %v1427_v60, 0.0 }
 0x362   :  { %v5564_v57 = vpop.eup %5563  ;;  %v1336_v16 = vpop.xlane.xlu1 %1335  ;;  %v6912_v33 = vpack.c.bf16 %v1462_v47, %v1461_v49  ;;  %v7827_v49 = vld [vmem:[#allocation29_spill] sm:$0xff] }
 0x363   :  { %5569 = vrsqrt.f32 %v1368_v5  ;;  %v1369_v20 = vmax.f32 %v1336_v16, 1e-24  ;;  %v1460_v40 = vmax.f32 %v1428_v50, 0.0  ;;  %v1415_v34 = vmul.f32 %v5564_v57, %v6805_v3 }
 0x364   :  { %v5566_v45 = vpop.eup %5565  ;;  %v1338_v4 = vpop.xlane.xlu0 %1337  ;;  %7818 = vst [vmem:[#allocation86_spill] sm:$0xff] %v6912_v33 }
 0x365   :  { %5571 = vrsqrt.f32 %v1369_v20  ;;  %v1370_v12 = vmax.f32 %v1338_v4, 1e-24  ;;  %v6909_v51 = vpack.c.bf16 %v1460_v40, %v1459_v11  ;;  %v1416_v7 = vmul.f32 %v5566_v45, %v6810_v62  ;;  %v5468_v11 = vld [vmem:[#allocation7 + $0x8] sm:$0xff]   ;;  %v5469_v40 = vld [vmem:[#allocation7 + $0x10] sm:$0xff]   ;;  %v7825_v45 = vld [vmem:[#allocation27_spill] sm:$0xff] }
 0x366   :  { %v1304_v28 = vpop.xlane.xlu1 %1303  ;;  %v1447_v39 = vmax.f32 %v1415_v34, 0.0  ;;  %v7824_v34 = vld [vmem:[#allocation26_spill] sm:$0xff]  ;;  %v7826_v4 = vld [vmem:[#allocation28_spill] sm:$0xff] }
 0x367   :  { %7817 = vst [vmem:[#allocation85_spill] sm:$0xff] %v6909_v51  ;;  %5573 = vrsqrt.f32 %v1370_v12  ;;  %v1353_v10 = vmax.f32 %v1304_v28, 1e-24  ;;  %4418 = vmatprep.subr.bf16.mxu0 %v6909_v51  ;;  %v1448_v59 = vmax.f32 %v1416_v7, 0.0  ;;  %v7828_v12 = vld [vmem:[#allocation30_spill] sm:$0xff]  ;;  %v7829_v7 = vld [vmem:[#allocation31_spill] sm:$0xff] }
 0x368   :  { %4419 = vmatpush3.bf16.msra.mxu0 %v6874_v24  ;;  %v1306_v3 = vpop.xlane.xlu0 %1305  ;;  %v7830_v28 = vld [vmem:[#allocation32_spill] sm:$0xff] }
 0x369   :  { %5575 = vrsqrt.f32 %v1353_v10  ;;  %v1354_v6 = vmax.f32 %v1306_v3, 1e-24  ;;  %4420 = vmatprep.subr.bf16.mxu0 %v6912_v33  ;;  %v6917_v8 = vpack.c.bf16 %v1448_v59, %v1447_v39  ;;  %v7831_v10 = vld [vmem:[#allocation33_spill] sm:$0xff]  ;;  %v5471_v39 = vld [vmem:[#allocation7 + $0x20] sm:$0xff]   ;;  %v7832_v59 = vld [vmem:[#allocation34_spill] sm:$0xff] }
 0x36a   :  { %v5472_v3 = vld [vmem:[#allocation7 + $0x28] sm:$0xff]  }
 0x36b   :  { %7819 = vst [vmem:[#allocation87_spill] sm:$0xff] %v6917_v8  ;;  %v5568_v35 = vpop.eup %5567  ;;  %5577 = vrsqrt.f32 %v1354_v6  ;;  %4926 = vmatprep.mubr.bf16.mxu1 %v6917_v8  ;;  %v7833_v6 = vld [vmem:[#allocation35_spill] sm:$0xff] }
 0x36c   :  { %4421 = vmatpush3.bf16.msra.mxu0 %v6876_v19  ;;  %v1431_v62 = vmul.f32 %v5568_v35, %v6819_v22  ;;  %v5473_v35 = vld [vmem:[#allocation7 + $0x30] sm:$0xff]  }
 0x36d   :  { %v5570_v58 = vpop.eup %5569 }
 0x36e   :  { %v1432_v46 = vmul.f32 %v5570_v58, %v6825_v26  ;;  %v1463_v13 = vmax.f32 %v1431_v62, 0.0  ;;  %v7834_v62 = vld [vmem:[#allocation36_spill] sm:$0xff]  ;;  %v5474_v58 = vld [vmem:[#allocation7 + $0x38] sm:$0xff]  }
 0x36f   :  { %v5572_v38 = vpop.eup %5571 }
 0x370   :  { %v1464_v0 = vmax.f32 %v1432_v46, 0.0  ;;  %v1433_v61 = vmul.f32 %v5572_v38, %v6822_v14  ;;  %v5467_v14 = vld [vmem:[#allocation7] sm:$0xff]   ;;  %v7835_v46 = vld [vmem:[#allocation37_spill] sm:$0xff]  ;;  %v7836_v38 = vld [vmem:[#allocation38_spill] sm:$0xff] }
 0x371   :  { %v5574_v60 = vpop.eup %5573  ;;  %4946 = vmatprep.subr.bf16.mxu1 %v5467_v14 }
 0x372   :  { %v6924_v37 = vpack.c.bf16 %v1464_v0, %v1463_v13  ;;  %v1434_v2 = vmul.f32 %v5574_v60, %v6830_v18  ;;  %v1465_v5 = vmax.f32 %v1433_v61, 0.0  ;;  %4947 = vmatpush3.bf16.msra.mxu1 %v5467_v14  ;;  %v7837_v13 = vld [vmem:[#allocation39_spill] sm:$0xff]  ;;  %v7838_v0 = vld [vmem:[#allocation40_spill] sm:$0xff]  ;;  %v7839_v61 = vld [vmem:[#allocation41_spill] sm:$0xff] }
 0x373   :  { %v5576_v17 = vpop.eup %5575  ;;  %4948 = vmatprep.subr.bf16.mxu1 %v5468_v11  ;;  %v7840_v60 = vld [vmem:[#allocation42_spill] sm:$0xff]  ;;  %v7842_v14 = vld [vmem:[#allocation43_spill] sm:$0xff] }
 0x374   :  { %7820 = vst [vmem:[#allocation88_spill] sm:$0xff] %v6924_v37  ;;  %4422 = vmatprep.subr.bf16.mxu0 %v6924_v37  ;;  %v1466_v50 = vmax.f32 %v1434_v2, 0.0  ;;  %v1417_v22 = vmul.f32 %v5576_v17, %v6836_v1  ;;  %v5470_v1 = vld [vmem:[#allocation7 + $0x18] sm:$0xff]   ;;  %v7841_v2 = vld [vmem:[#allocation24_spill] sm:$0xff] }
 0x375   :  { %v5578_v57 = vpop.eup %5577  ;;  %4423 = vmatpush3.bf16.msra.mxu0 %v6917_v8 }
 0x376   :  { %v6930_v26 = vpack.c.bf16 %v1466_v50, %v1465_v5  ;;  %v1418_v16 = vmul.f32 %v5578_v57, %v6842_v21  ;;  %v1449_v47 = vmax.f32 %v1417_v22, 0.0  ;;  %4949 = vmatpush3.bf16.msra.mxu1 %v5468_v11  ;;  %v7823_v21 = vld [vmem:[#allocation25_spill] sm:$0xff] }
 0x377   :  { %4950 = vmatprep.subr.bf16.mxu1 %v5469_v40 }
 0x378   :  { %7821 = vst [vmem:[#allocation89_spill] sm:$0xff] %v6930_v26  ;;  %4424 = vmatprep.subr.bf16.mxu0 %v6930_v26  ;;  %v1450_v18 = vmax.f32 %v1418_v16, 0.0 }
 0x37a   :  { %v6934_v20 = vpack.c.bf16 %v1450_v18, %v1449_v47  ;;  %4951 = vmatpush3.bf16.msra.mxu1 %v5469_v40  ;;  %v7843_v47 = vld [vmem:[#allocation45_spill] sm:$0xff] }
 0x37b   :  { %4952 = vmatprep.subr.bf16.mxu1 %v5470_v1 }
 0x37c   :  { %7822 = vst [vmem:[#allocation90_spill] sm:$0xff] %v6934_v20  ;;  %4425 = vmatpush3.bf16.msra.mxu0 %v6934_v20  ;;  %4927 = vmatmul.mubr.bf16.gmra.mrb[92].mxu1 %v6934_v20 }
 0x37d   :  { %4930 = vmatprep.mubr.bf16.mxu1 %v6884_v56 }
 0x37e   :  { %4953 = vmatpush3.bf16.msra.mxu1 %v5470_v1 }
 0x37f   :  { %1549 = vmatmul.mubr.bf16.vlgmr.msra.gmra.mrb[16].mxu0 %v6348_v29  ;;  %4954 = vmatprep.subr.bf16.mxu1 %v5471_v39 }
 0x380   :  { %1556 = vmatprep.mubr.bf16.mxu0 %v6354_v31 }
 0x382   :  { %4955 = vmatpush3.bf16.msra.mxu1 %v5471_v39 }
 0x383   :  { %4956 = vmatprep.subr.bf16.mxu1 %v5472_v3 }
 0x384   :  { %4931 = vmatmul.mubr.bf16.gmra.mrb[96].mxu1 %v6886_v48 }
 0x385   :  { %4934 = vmatprep.mubr.bf16.mxu1 %v6896_v23  ;;  %v7846_v23 = vld [vmem:[#allocation47_spill] sm:$0xff] }
 0x386   :  { %4957 = vmatpush3.bf16.msra.mxu1 %v5472_v3 }
 0x387   :  { %1557 = vmatmul.mubr.bf16.gmra.mrb[20].mxu0 %v6380_v41  ;;  %4958 = vmatprep.subr.bf16.mxu1 %v5473_v35 }
 0x388   :  { %1564 = vmatprep.mubr.bf16.mxu0 %v6384_v43 }
 0x38a   :  { %4959 = vmatpush3.bf16.msra.mxu1 %v5473_v35 }
 0x38b   :  { %4960 = vmatprep.subr.bf16.mxu1 %v5474_v58 }
 0x38c   :  { %4935 = vmatmul.mubr.bf16.gmra.mrb[100].mxu1 %v6899_v9 }
 0x38d   :  { %4938 = vmatprep.mubr.bf16.mxu1 %v6909_v51 }
 0x38e   :  { %4961 = vmatpush3.bf16.msra.mxu1 %v5474_v58 }
 0x38f   :  { %1565 = vmatmul.mubr.bf16.gmra.mrb[24].mxu0 %v6410_v52 }
 0x390   :  { %1572 = vmatprep.mubr.bf16.mxu0 %v6414_v54 }
 0x394   :  { %4939 = vmatmul.mubr.bf16.gmra.mrb[104].mxu1 %v6912_v33  ;;  %v7845_v33 = vld [vmem:[#allocation46_spill] sm:$0xff] }
 0x395   :  { %4942 = vmatprep.mubr.bf16.mxu1 %v6924_v37  ;;  %v7844_v37 = vld [vmem:[#allocation44_spill] sm:$0xff] }
 0x397   :  { %1573 = vmatmul.mubr.bf16.gmra.mrb[28].mxu0 %v6437_v63 }
 0x398   :  { %1580 = vmatprep.mubr.bf16.mxu0 %v6283_v15 }
 0x39c   :  { %4943 = vmatmul.mubr.bf16.gmra.mrb[108].mxu1 %v6930_v26 }
 0x39f   :  { %1581 = vmatmul.mubr.bf16.gmra.mrb[32].mxu0 %v6350_v30 }
 0x3a0   :  { %1588 = vmatprep.mubr.bf16.mxu0 %v6356_v32 }
 0x3a7   :  { %1589 = vmatmul.mubr.bf16.gmra.mrb[36].mxu0 %v6382_v42 }
 0x3a8   :  { %1596 = vmatprep.mubr.bf16.mxu0 %v6386_v44 }
 0x3af   :  { %1597 = vmatmul.mubr.bf16.gmra.mrb[40].mxu0 %v6412_v53 }
 0x3b0   :  { %1604 = vmatprep.mubr.bf16.mxu0 %v7823_v21 }
 0x3b7   :  { %1605 = vmatmul.mubr.bf16.gmra.mrb[44].mxu0 %v7824_v34 }
 0x3b8   :  { %1612 = vmatprep.mubr.bf16.mxu0 %v7825_v45 }
 0x3bf   :  { %1613 = vmatmul.mubr.bf16.gmra.mrb[48].mxu0 %v7826_v4 }
 0x3c0   :  { %1620 = vmatprep.mubr.bf16.mxu0 %v7827_v49 }
 0x3c7   :  { %1621 = vmatmul.mubr.bf16.gmra.mrb[52].mxu0 %v7828_v12 }
 0x3c8   :  { %1628 = vmatprep.mubr.bf16.mxu0 %v7829_v7 }
 0x3cf   :  { %1629 = vmatmul.mubr.bf16.gmra.mrb[56].mxu0 %v7830_v28 }
 0x3d0   :  { %1636 = vmatprep.mubr.bf16.mxu0 %v7831_v10 }
 0x3d7   :  { %1637 = vmatmul.mubr.bf16.gmra.mrb[60].mxu0 %v7832_v59 }
 0x3d8   :  { %1644 = vmatprep.mubr.bf16.mxu0 %v7833_v6 }
 0x3df   :  { %1645 = vmatmul.mubr.bf16.gmra.mrb[64].mxu0 %v7834_v62 }
 0x3e0   :  { %1652 = vmatprep.mubr.bf16.mxu0 %v7835_v46 }
 0x3e7   :  { %1653 = vmatmul.mubr.bf16.gmra.mrb[68].mxu0 %v7836_v38 }
 0x3e8   :  { %1660 = vmatprep.mubr.bf16.mxu0 %v7837_v13 }
 0x3ef   :  { %1661 = vmatmul.mubr.bf16.gmra.mrb[72].mxu0 %v7838_v0 }
 0x3f0   :  { %1668 = vmatprep.mubr.bf16.mxu0 %v7839_v61 }
 0x3f7   :  { %1669 = vmatmul.mubr.bf16.gmra.mrb[76].mxu0 %v7840_v60 }
 0x3f8   :  { %2486 = vmatprep.mubr.bf16.mxu0 %v7841_v2 }
 0x452   :  { %v4426_v17 = vpop.f32.mrb[16].mxu0 }
 0x453   :  { %v4427_v5 = vpop.f32.mrb[17].mxu0 }
 0x454   :  { %v4428_v50 = vadd.f32 %v4427_v5, %v4426_v17  ;;  %v4429_v22 = vpop.f32.mrb[18].mxu0 }
 0x455   :  { %v4430_v57 = vpop.f32.mrb[19].mxu0 }
 0x456   :  { %v4431_v16 = vadd.f32 %v4430_v57, %v4429_v22  ;;  %v1677_v11 = vmul.f32 %v4428_v50, %v7842_v14 }
 0x458   :  { %v1678_v18 = vmul.f32 %v4431_v16, %v7843_v47 }
 0x45a   :  { %v4432_v40 = vpop.f32.mrb[20].mxu0  ;;  %v1709_v1 = vpack.c.bf16 %v1678_v18, %v1677_v11  ;;  %v7847_v18 = vld [vmem:[#allocation48_spill] sm:$0xff] }
 0x45b   :  { %v4433_v39 = vpop.f32.mrb[21].mxu0 }
 0x45c   :  { %v4434_v3 = vadd.f32 %v4433_v39, %v4432_v40  ;;  %v4435_v35 = vpop.f32.mrb[22].mxu0  ;;  %4962 = vmatprep.mubr.bf16.mxu1 %v1709_v1 }
 0x45d   :  { %v4436_v58 = vpop.f32.mrb[23].mxu0 }
 0x45e   :  { %v4437_v26 = vadd.f32 %v4436_v58, %v4435_v35  ;;  %v1679_v2 = vmul.f32 %v4434_v3, %v7844_v37 }
 0x460   :  { %v1680_v51 = vmul.f32 %v4437_v26, %v7845_v33  ;;  %v7849_v33 = vld [vmem:[#allocation50_spill] sm:$0xff] }
 0x462   :  { %v1710_v17 = vpack.c.bf16 %v1680_v51, %v1679_v2  ;;  %v4438_v5 = vpop.f32.mrb[24].mxu0  ;;  %v7848_v51 = vld [vmem:[#allocation49_spill] sm:$0xff] }
 0x463   :  { %v4439_v9 = vpop.f32.mrb[25].mxu0 }
 0x464   :  { %v4440_v22 = vadd.f32 %v4439_v9, %v4438_v5  ;;  %v4441_v57 = vpop.f32.mrb[26].mxu0  ;;  %4963 = vmatmul.mubr.bf16.vlgmr.msra.gmra.mrb[80].mxu1 %v1710_v17 }
 0x465   :  { %v4442_v50 = vpop.f32.mrb[27].mxu0 }
 0x466   :  { %v4443_v16 = vadd.f32 %v4442_v50, %v4441_v57  ;;  %v1681_v11 = vmul.f32 %v4440_v22, %v7846_v23 }
 0x468   :  { %v1682_v40 = vmul.f32 %v4443_v16, %v7847_v18  ;;  %v7850_v18 = vld [vmem:[#allocation51_spill] sm:$0xff] }
 0x46a   :  { %v4444_v39 = vpop.f32.mrb[28].mxu0  ;;  %v1711_v1 = vpack.c.bf16 %v1682_v40, %v1681_v11  ;;  %v7851_v40 = vld [vmem:[#allocation52_spill] sm:$0xff] }
 0x46b   :  { %v4445_v48 = vpop.f32.mrb[29].mxu0 }
 0x46c   :  { %v4446_v35 = vadd.f32 %v4445_v48, %v4444_v39  ;;  %v4447_v58 = vpop.f32.mrb[30].mxu0  ;;  %4966 = vmatprep.mubr.bf16.mxu1 %v1711_v1 }
 0x46d   :  { %v4448_v3 = vpop.f32.mrb[31].mxu0 }
 0x46e   :  { %v4449_v26 = vadd.f32 %v4448_v3, %v4447_v58  ;;  %v1683_v2 = vmul.f32 %v4446_v35, %v7848_v51 }
 0x470   :  { %v1684_v9 = vmul.f32 %v4449_v26, %v7849_v33  ;;  %v7852_v33 = vld [vmem:[#allocation53_spill] sm:$0xff] }
 0x472   :  { %v4450_v5 = vpop.f32.mrb[32].mxu0  ;;  %v1712_v17 = vpack.c.bf16 %v1684_v9, %v1683_v2  ;;  %v7853_v9 = vld [vmem:[#allocation54_spill] sm:$0xff] }
 0x473   :  { %v4451_v37 = vpop.f32.mrb[33].mxu0 }
 0x474   :  { %v4452_v57 = vadd.f32 %v4451_v37, %v4450_v5  ;;  %v4453_v50 = vpop.f32.mrb[34].mxu0  ;;  %4967 = vmatmul.mubr.bf16.gmra.mrb[84].mxu1 %v1712_v17 }
 0x475   :  { %v4454_v22 = vpop.f32.mrb[35].mxu0 }
 0x476   :  { %v4455_v16 = vadd.f32 %v4454_v22, %v4453_v50  ;;  %v1685_v11 = vmul.f32 %v4452_v57, %v7850_v18 }
 0x478   :  { %v1686_v48 = vmul.f32 %v4455_v16, %v7851_v40  ;;  %v7854_v40 = vld [vmem:[#allocation55_spill] sm:$0xff] }
 0x47a   :  { %v4456_v39 = vpop.f32.mrb[36].mxu0  ;;  %v1713_v1 = vpack.c.bf16 %v1686_v48, %v1685_v11  ;;  %v7855_v48 = vld [vmem:[#allocation56_spill] sm:$0xff] }
 0x47b   :  { %v4457_v23 = vpop.f32.mrb[37].mxu0 }
 0x47c   :  { %v4458_v58 = vadd.f32 %v4457_v23, %v4456_v39  ;;  %v4459_v3 = vpop.f32.mrb[38].mxu0  ;;  %4970 = vmatprep.mubr.bf16.mxu1 %v1713_v1 }
 0x47d   :  { %v4460_v35 = vpop.f32.mrb[39].mxu0 }
 0x47e   :  { %v4461_v26 = vadd.f32 %v4460_v35, %v4459_v3  ;;  %v1687_v2 = vmul.f32 %v4458_v58, %v7852_v33 }
 0x480   :  { %v1688_v37 = vmul.f32 %v4461_v26, %v7853_v9  ;;  %v7856_v9 = vld [vmem:[#allocation57_spill] sm:$0xff] }
 0x482   :  { %v4462_v5 = vpop.f32.mrb[40].mxu0  ;;  %v1714_v17 = vpack.c.bf16 %v1688_v37, %v1687_v2  ;;  %v7857_v37 = vld [vmem:[#allocation58_spill] sm:$0xff] }
 0x483   :  { %v4463_v51 = vpop.f32.mrb[41].mxu0 }
 0x484   :  { %v4464_v50 = vadd.f32 %v4463_v51, %v4462_v5  ;;  %v4465_v22 = vpop.f32.mrb[42].mxu0  ;;  %4971 = vmatmul.mubr.bf16.gmra.mrb[88].mxu1 %v1714_v17 }
 0x485   :  { %v4466_v57 = vpop.f32.mrb[43].mxu0 }
 0x486   :  { %v4467_v16 = vadd.f32 %v4466_v57, %v4465_v22  ;;  %v1689_v11 = vmul.f32 %v4464_v50, %v7854_v40 }
 0x488   :  { %v1690_v23 = vmul.f32 %v4467_v16, %v7855_v48  ;;  %v7858_v48 = vld [vmem:[#allocation59_spill] sm:$0xff] }
 0x48a   :  { %v4468_v39 = vpop.f32.mrb[44].mxu0  ;;  %v1715_v1 = vpack.c.bf16 %v1690_v23, %v1689_v11  ;;  %v7859_v23 = vld [vmem:[#allocation60_spill] sm:$0xff] }
 0x48b   :  { %v4469_v18 = vpop.f32.mrb[45].mxu0 }
 0x48c   :  { %v4470_v3 = vadd.f32 %v4469_v18, %v4468_v39  ;;  %v4471_v35 = vpop.f32.mrb[46].mxu0  ;;  %4974 = vmatprep.mubr.bf16.mxu1 %v1715_v1 }
 0x48d   :  { %v4472_v58 = vpop.f32.mrb[47].mxu0 }
 0x48e   :  { %v4473_v26 = vadd.f32 %v4472_v58, %v4471_v35  ;;  %v1691_v2 = vmul.f32 %v4470_v3, %v7856_v9 }
 0x490   :  { %v1692_v51 = vmul.f32 %v4473_v26, %v7857_v37  ;;  %v7860_v37 = vld [vmem:[#allocation61_spill] sm:$0xff] }
 0x492   :  { %v4474_v5 = vpop.f32.mrb[48].mxu0  ;;  %v1716_v17 = vpack.c.bf16 %v1692_v51, %v1691_v2  ;;  %v7861_v51 = vld [vmem:[#allocation62_spill] sm:$0xff] }
 0x493   :  { %v4475_v33 = vpop.f32.mrb[49].mxu0 }
 0x494   :  { %v4476_v22 = vadd.f32 %v4475_v33, %v4474_v5  ;;  %v4477_v57 = vpop.f32.mrb[50].mxu0  ;;  %4975 = vmatmul.mubr.bf16.gmra.mrb[92].mxu1 %v1716_v17 }
 0x495   :  { %v4478_v50 = vpop.f32.mrb[51].mxu0 }
 0x496   :  { %v4479_v16 = vadd.f32 %v4478_v50, %v4477_v57  ;;  %v1693_v11 = vmul.f32 %v4476_v22, %v7858_v48 }
 0x498   :  { %v1694_v18 = vmul.f32 %v4479_v16, %v7859_v23  ;;  %v7862_v23 = vld [vmem:[#allocation63_spill] sm:$0xff] }
 0x49a   :  { %v4480_v39 = vpop.f32.mrb[52].mxu0  ;;  %v1717_v1 = vpack.c.bf16 %v1694_v18, %v1693_v11  ;;  %v7863_v18 = vld [vmem:[#allocation64_spill] sm:$0xff] }
 0x49b   :  { %v4481_v40 = vpop.f32.mrb[53].mxu0 }
 0x49c   :  { %v4482_v35 = vadd.f32 %v4481_v40, %v4480_v39  ;;  %v4483_v58 = vpop.f32.mrb[54].mxu0  ;;  %4978 = vmatprep.mubr.bf16.mxu1 %v1717_v1 }
 0x49d   :  { %v4484_v3 = vpop.f32.mrb[55].mxu0 }
 0x49e   :  { %v4485_v26 = vadd.f32 %v4484_v3, %v4483_v58  ;;  %v1695_v2 = vmul.f32 %v4482_v35, %v7860_v37 }
 0x4a0   :  { %v1696_v33 = vmul.f32 %v4485_v26, %v7861_v51  ;;  %v7864_v51 = vld [vmem:[#allocation65_spill] sm:$0xff] }
 0x4a2   :  { %v4486_v5 = vpop.f32.mrb[56].mxu0  ;;  %v1718_v17 = vpack.c.bf16 %v1696_v33, %v1695_v2  ;;  %v7865_v33 = vld [vmem:[#allocation66_spill] sm:$0xff] }
 0x4a3   :  { %v4487_v9 = vpop.f32.mrb[57].mxu0 }
 0x4a4   :  { %v4488_v57 = vadd.f32 %v4487_v9, %v4486_v5  ;;  %v4489_v50 = vpop.f32.mrb[58].mxu0  ;;  %4979 = vmatmul.mubr.bf16.gmra.mrb[96].mxu1 %v1718_v17 }
 0x4a5   :  { %v4490_v22 = vpop.f32.mrb[59].mxu0 }
 0x4a6   :  { %v4491_v16 = vadd.f32 %v4490_v22, %v4489_v50  ;;  %v1697_v11 = vmul.f32 %v4488_v57, %v7862_v23 }
 0x4a8   :  { %v1698_v40 = vmul.f32 %v4491_v16, %v7863_v18  ;;  %v7866_v18 = vld [vmem:[#allocation67_spill] sm:$0xff] }
 0x4aa   :  { %v4492_v39 = vpop.f32.mrb[60].mxu0  ;;  %v1719_v1 = vpack.c.bf16 %v1698_v40, %v1697_v11  ;;  %v7867_v40 = vld [vmem:[#allocation68_spill] sm:$0xff] }
 0x4ab   :  { %v4493_v48 = vpop.f32.mrb[61].mxu0 }
 0x4ac   :  { %v4494_v58 = vadd.f32 %v4493_v48, %v4492_v39  ;;  %v4495_v3 = vpop.f32.mrb[62].mxu0  ;;  %4982 = vmatprep.mubr.bf16.mxu1 %v1719_v1 }
 0x4ad   :  { %v4496_v35 = vpop.f32.mrb[63].mxu0 }
 0x4ae   :  { %v4497_v26 = vadd.f32 %v4496_v35, %v4495_v3  ;;  %v1699_v2 = vmul.f32 %v4494_v58, %v7864_v51 }
 0x4b0   :  { %v1700_v9 = vmul.f32 %v4497_v26, %v7865_v33  ;;  %v7868_v33 = vld [vmem:[#allocation69_spill] sm:$0xff] }
 0x4b2   :  { %v4498_v5 = vpop.f32.mrb[64].mxu0  ;;  %v1720_v17 = vpack.c.bf16 %v1700_v9, %v1699_v2  ;;  %v7869_v9 = vld [vmem:[#allocation70_spill] sm:$0xff] }
 0x4b3   :  { %v4499_v37 = vpop.f32.mrb[65].mxu0 }
 0x4b4   :  { %v4500_v50 = vadd.f32 %v4499_v37, %v4498_v5  ;;  %v4501_v22 = vpop.f32.mrb[66].mxu0  ;;  %4983 = vmatmul.mubr.bf16.gmra.mrb[100].mxu1 %v1720_v17 }
 0x4b5   :  { %v4502_v57 = vpop.f32.mrb[67].mxu0 }
 0x4b6   :  { %v4503_v16 = vadd.f32 %v4502_v57, %v4501_v22  ;;  %v1701_v11 = vmul.f32 %v4500_v50, %v7866_v18 }
 0x4b8   :  { %v1702_v48 = vmul.f32 %v4503_v16, %v7867_v40  ;;  %v7870_v40 = vld [vmem:[#allocation71_spill] sm:$0xff] }
 0x4ba   :  { %v4504_v39 = vpop.f32.mrb[68].mxu0  ;;  %v1721_v1 = vpack.c.bf16 %v1702_v48, %v1701_v11  ;;  %v7871_v48 = vld [vmem:[#allocation72_spill] sm:$0xff] }
 0x4bb   :  { %v4505_v23 = vpop.f32.mrb[69].mxu0 }
 0x4bc   :  { %v4506_v3 = vadd.f32 %v4505_v23, %v4504_v39  ;;  %v4507_v35 = vpop.f32.mrb[70].mxu0  ;;  %4986 = vmatprep.mubr.bf16.mxu1 %v1721_v1 }
 0x4bd   :  { %v4508_v58 = vpop.f32.mrb[71].mxu0 }
 0x4be   :  { %v4509_v26 = vadd.f32 %v4508_v58, %v4507_v35  ;;  %v1703_v2 = vmul.f32 %v4506_v3, %v7868_v33 }
 0x4c0   :  { %v1704_v37 = vmul.f32 %v4509_v26, %v7869_v9  ;;  %v7872_v9 = vld [vmem:[#allocation73_spill] sm:$0xff] }
 0x4c2   :  { %v4510_v5 = vpop.f32.mrb[72].mxu0  ;;  %v1722_v17 = vpack.c.bf16 %v1704_v37, %v1703_v2  ;;  %v7873_v37 = vld [vmem:[#allocation74_spill] sm:$0xff] }
 0x4c3   :  { %v4511_v51 = vpop.f32.mrb[73].mxu0 }
 0x4c4   :  { %v4512_v22 = vadd.f32 %v4511_v51, %v4510_v5  ;;  %v4513_v57 = vpop.f32.mrb[74].mxu0  ;;  %4987 = vmatmul.mubr.bf16.gmra.mrb[104].mxu1 %v1722_v17  ;;  %v7013_v17 = vld [vmem:[%s7626_s8] ss:$0 sm:$0xff] }
 0x4c5   :  { %v4514_v50 = vpop.f32.mrb[75].mxu0 }
 0x4c6   :  { %v4515_v16 = vadd.f32 %v4514_v50, %v4513_v57  ;;  %v1705_v11 = vmul.f32 %v4512_v22, %v7870_v40  ;;  %v5475_v57 = vld [vmem:[#allocation11] sm:$0xff]   ;;  %v5476_v50 = vld [vmem:[#allocation11 + $0x8] sm:$0xff]  }
 0x4c7   :  { %4994 = vmatprep.subr.bf16.mxu1 %v5475_v57 }
 0x4c8   :  { %v1706_v23 = vmul.f32 %v4515_v16, %v7871_v48  ;;  %4995 = vmatpush3.bf16.msra.mxu1 %v5475_v57 }
 0x4c9   :  { %4996 = vmatprep.subr.bf16.mxu1 %v5476_v50 }
 0x4ca   :  { %v4516_v39 = vpop.f32.mrb[76].mxu0  ;;  %v1723_v1 = vpack.c.bf16 %v1706_v23, %v1705_v11 }
 0x4cb   :  { %v4517_v18 = vpop.f32.mrb[77].mxu0 }
 0x4cc   :  { %v4518_v35 = vadd.f32 %v4517_v18, %v4516_v39  ;;  %v4519_v58 = vpop.f32.mrb[78].mxu0  ;;  %4990 = vmatprep.mubr.bf16.mxu1 %v1723_v1  ;;  %4997 = vmatpush3.bf16.msra.mxu1 %v5476_v50 }
 0x4cd   :  { %v4520_v3 = vpop.f32.mrb[79].mxu0 }
 0x4ce   :  { %v4521_v26 = vadd.f32 %v4520_v3, %v4519_v58  ;;  %v1707_v2 = vmul.f32 %v4518_v35, %v7872_v9 }
 0x4d0   :  { %v1708_v51 = vmul.f32 %v4521_v26, %v7873_v37 }
 0x4d2   :  { %v1724_v5 = vpack.c.bf16 %v1708_v51, %v1707_v2 }
 0x4d4   :  { %4991 = vmatmul.mubr.bf16.gmra.mrb[108].mxu1 %v1724_v5 }
 0x537   :  { %v4964_v22 = vpop.f32.mrb[80].mxu1 }
 0x538   :  { %v7016_v18 = vadd.f32 %v4964_v22, %v7013_v17  ;;  %v2016_v16 = vpop.f32.mrb[81].mxu1 }
 0x539   :  { %v4965_v11 = vpop.f32.mrb[82].mxu1  ;;  %v7019_v23 = vadd.f32 %v7013_v17, %v2016_v16 }
 0x53a   :  { %v7022_v39 = vadd.f32 %v4965_v11, %v7013_v17  ;;  %v2019_v1 = vpop.f32.mrb[83].mxu1  ;;  %v2183_v35 = vmul.f32 %v7016_v18, %v7016_v18 }
 0x53b   :  { %v7027_v58 = vadd.f32 %v7013_v17, %v2019_v1  ;;  %v2181_v26 = vmul.f32 %v7019_v23, %v7019_v23 }
 0x53c   :  { %2217 = vadd.xlane.f32.xlu1 %v2183_v35  ;;  %v2184_v3 = vmul.f32 %v7022_v39, %v7022_v39  ;;  %v5477_v35 = vld [vmem:[#allocation11 + $0x10] sm:$0xff]  }
 0x53d   :  { %v2182_v2 = vmul.f32 %v7027_v58, %v7027_v58  ;;  %4998 = vmatprep.subr.bf16.mxu1 %v5477_v35 }
 0x53e   :  { %2219 = vadd.xlane.f32.xlu0 %v2184_v3  ;;  %4999 = vmatpush3.bf16.msra.mxu1 %v5477_v35 }
 0x540   :  { %2213 = vadd.xlane.f32.xlu1 %v2181_v26 }
 0x542   :  { %2215 = vadd.xlane.f32.xlu0 %v2182_v2 }
 0x547   :  { %v4968_v51 = vpop.f32.mrb[84].mxu1 }
 0x548   :  { %v7036_v5 = vadd.f32 %v4968_v51, %v7013_v17  ;;  %v2032_v22 = vpop.f32.mrb[85].mxu1  ;;  %v5478_v51 = vld [vmem:[#allocation11 + $0x18] sm:$0xff]  }
 0x549   :  { %v4969_v57 = vpop.f32.mrb[86].mxu1  ;;  %v7039_v16 = vadd.f32 %v7013_v17, %v2032_v22  ;;  %5000 = vmatprep.subr.bf16.mxu1 %v5478_v51 }
 0x54a   :  { %v7042_v11 = vadd.f32 %v4969_v57, %v7013_v17  ;;  %v2035_v1 = vpop.f32.mrb[87].mxu1  ;;  %v2187_v50 = vmul.f32 %v7036_v5, %v7036_v5  ;;  %5001 = vmatpush3.bf16.msra.mxu1 %v5478_v51  ;;  %v5479_v57 = vld [vmem:[#allocation11 + $0x20] sm:$0xff]  }
 0x54b   :  { %v7047_v3 = vadd.f32 %v7013_v17, %v2035_v1  ;;  %v2185_v2 = vmul.f32 %v7039_v16, %v7039_v16  ;;  %5002 = vmatprep.subr.bf16.mxu1 %v5479_v57 }
 0x54c   :  { %2225 = vadd.xlane.f32.xlu1 %v2187_v50  ;;  %v2188_v26 = vmul.f32 %v7042_v11, %v7042_v11  ;;  %v5480_v50 = vld [vmem:[#allocation11 + $0x28] sm:$0xff]  }
 0x54d   :  { %v2186_v22 = vmul.f32 %v7047_v3, %v7047_v3 }
 0x54e   :  { %2227 = vadd.xlane.f32.xlu0 %v2188_v26  ;;  %5003 = vmatpush3.bf16.msra.mxu1 %v5479_v57 }
 0x54f   :  { %5004 = vmatprep.subr.bf16.mxu1 %v5480_v50 }
 0x550   :  { %2221 = vadd.xlane.f32.xlu1 %v2185_v2 }
 0x552   :  { %2223 = vadd.xlane.f32.xlu0 %v2186_v22  ;;  %5005 = vmatpush3.bf16.msra.mxu1 %v5480_v50  ;;  %v5481_v22 = vld [vmem:[#allocation11 + $0x30] sm:$0xff]  }
 0x553   :  { %5006 = vmatprep.subr.bf16.mxu1 %v5481_v22 }
 0x556   :  { %5007 = vmatpush3.bf16.msra.mxu1 %v5481_v22 }
 0x557   :  { %v4972_v1 = vpop.f32.mrb[88].mxu1 }
 0x558   :  { %v7056_v37 = vadd.f32 %v4972_v1, %v7013_v17  ;;  %v2048_v26 = vpop.f32.mrb[89].mxu1 }
 0x559   :  { %v4973_v9 = vpop.f32.mrb[90].mxu1  ;;  %v7059_v35 = vadd.f32 %v7013_v17, %v2048_v26 }
 0x55a   :  { %v7062_v2 = vadd.f32 %v4973_v9, %v7013_v17  ;;  %v2051_v48 = vpop.f32.mrb[91].mxu1  ;;  %v2191_v51 = vmul.f32 %v7056_v37, %v7056_v37  ;;  %v5482_v9 = vld [vmem:[#allocation11 + $0x38] sm:$0xff]  }
 0x55b   :  { %v7067_v57 = vadd.f32 %v7013_v17, %v2051_v48  ;;  %v2189_v26 = vmul.f32 %v7059_v35, %v7059_v35  ;;  %5008 = vmatprep.subr.bf16.mxu1 %v5482_v9 }
 0x55c   :  { %2233 = vadd.xlane.f32.xlu1 %v2191_v51  ;;  %v2192_v1 = vmul.f32 %v7062_v2, %v7062_v2  ;;  %5009 = vmatpush3.bf16.msra.mxu1 %v5482_v9 }
 0x55d   :  { %v2190_v40 = vmul.f32 %v7067_v57, %v7067_v57 }
 0x55e   :  { %2235 = vadd.xlane.f32.xlu0 %v2192_v1 }
 0x560   :  { %2229 = vadd.xlane.f32.xlu1 %v2189_v26 }
 0x562   :  { %2231 = vadd.xlane.f32.xlu0 %v2190_v40 }
 0x567   :  { %v7075_v48 = vpop.f32.mrb[92].mxu1 }
 0x568   :  { %v2064_v50 = vpop.f32.mrb[93].mxu1 }
 0x569   :  { %v7077_v51 = vpop.f32.mrb[94].mxu1 }
 0x56a   :  { %v2067_v33 = vpop.f32.mrb[95].mxu1 }
 0x577   :  { %v4980_v56 = vpop.f32.mrb[96].mxu1 }
 0x578   :  { %v7080_v1 = vadd.f32 %v4980_v56, %v7013_v17  ;;  %v2080_v47 = vpop.f32.mrb[97].mxu1 }
 0x579   :  { %v4981_v22 = vpop.f32.mrb[98].mxu1  ;;  %v7083_v26 = vadd.f32 %v7013_v17, %v2080_v47 }
 0x57a   :  { %v7086_v14 = vadd.f32 %v4981_v22, %v7013_v17  ;;  %v2083_v40 = vpop.f32.mrb[99].mxu1  ;;  %v2199_v9 = vmul.f32 %v7080_v1, %v7080_v1 }
 0x57b   :  { %v7091_v20 = vadd.f32 %v7013_v17, %v2083_v40  ;;  %v2197_v8 = vmul.f32 %v7083_v26, %v7083_v26 }
 0x57c   :  { %2249 = vadd.xlane.f32.xlu1 %v2199_v9  ;;  %v2200_v56 = vmul.f32 %v7086_v14, %v7086_v14 }
 0x57d   :  { %v2198_v47 = vmul.f32 %v7091_v20, %v7091_v20 }
 0x57e   :  { %2251 = vadd.xlane.f32.xlu0 %v2200_v56 }
 0x580   :  { %2245 = vadd.xlane.f32.xlu1 %v2197_v8 }
 0x582   :  { %2247 = vadd.xlane.f32.xlu0 %v2198_v47 }
 0x587   :  { %v4984_v22 = vpop.f32.mrb[100].mxu1 }
 0x588   :  { %v7100_v19 = vadd.f32 %v4984_v22, %v7013_v17  ;;  %v2096_v24 = vpop.f32.mrb[101].mxu1 }
 0x589   :  { %v4985_v40 = vpop.f32.mrb[102].mxu1  ;;  %v7103_v9 = vadd.f32 %v7013_v17, %v2096_v24 }
 0x58a   :  { %v7106_v36 = vadd.f32 %v4985_v40, %v7013_v17  ;;  %v2099_v56 = vpop.f32.mrb[103].mxu1  ;;  %v2203_v8 = vmul.f32 %v7100_v19, %v7100_v19 }
 0x58b   :  { %v7111_v27 = vadd.f32 %v7013_v17, %v2099_v56  ;;  %v2201_v22 = vmul.f32 %v7103_v9, %v7103_v9 }
 0x58c   :  { %2257 = vadd.xlane.f32.xlu1 %v2203_v8  ;;  %v2204_v47 = vmul.f32 %v7106_v36, %v7106_v36 }
 0x58d   :  { %v2202_v24 = vmul.f32 %v7111_v27, %v7111_v27 }
 0x58e   :  { %2259 = vadd.xlane.f32.xlu0 %v2204_v47 }
 0x590   :  { %2253 = vadd.xlane.f32.xlu1 %v2201_v22 }
 0x592   :  { %2255 = vadd.xlane.f32.xlu0 %v2202_v24 }
 0x597   :  { %v4988_v40 = vpop.f32.mrb[104].mxu1 }
 0x598   :  { %v7120_v25 = vadd.f32 %v4988_v40, %v7013_v17  ;;  %v2112_v55 = vpop.f32.mrb[105].mxu1  ;;  %v7136_v40 = vadd.f32 %v7013_v17, %v2064_v50 }
 0x599   :  { %v4989_v56 = vpop.f32.mrb[106].mxu1  ;;  %v7123_v8 = vadd.f32 %v7013_v17, %v2112_v55 }
 0x59a   :  { %v7126_v60 = vadd.f32 %v4989_v56, %v7013_v17  ;;  %v2115_v47 = vpop.f32.mrb[107].mxu1  ;;  %v2207_v22 = vmul.f32 %v7120_v25, %v7120_v25  ;;  %v7141_v56 = vadd.f32 %v7013_v17, %v2067_v33 }
 0x59b   :  { %v7131_v61 = vadd.f32 %v7013_v17, %v2115_v47  ;;  %v2205_v55 = vmul.f32 %v7123_v8, %v7123_v8  ;;  %v2193_v47 = vmul.f32 %v7136_v40, %v7136_v40 }
 0x59c   :  { %2265 = vadd.xlane.f32.xlu1 %v2207_v22  ;;  %v2208_v24 = vmul.f32 %v7126_v60, %v7126_v60  ;;  %v2194_v50 = vmul.f32 %v7141_v56, %v7141_v56 }
 0x59d   :  { %v2206_v0 = vmul.f32 %v7131_v61, %v7131_v61 }
 0x59e   :  { %2267 = vadd.xlane.f32.xlu0 %v2208_v24 }
 0x5a0   :  { %2261 = vadd.xlane.f32.xlu1 %v2205_v55 }
 0x5a2   :  { %2263 = vadd.xlane.f32.xlu0 %v2206_v0 }
 0x5a4   :  { %2237 = vadd.xlane.f32.xlu1 %v2193_v47 }
 0x5a6   :  { %2239 = vadd.xlane.f32.xlu0 %v2194_v50 }
 0x5a7   :  { %v4992_v22 = vpop.f32.mrb[108].mxu1 }
 0x5a8   :  { %v2128_v24 = vpop.f32.mrb[109].mxu1  ;;  %v7153_v55 = vadd.f32 %v4992_v22, %v7013_v17 }
 0x5a9   :  { %v7150_v13 = vadd.f32 %v7013_v17, %v2128_v24  ;;  %v4993_v33 = vpop.f32.mrb[110].mxu1  ;;  %v7167_v24 = vadd.f32 %v7075_v48, %v7013_v17 }
 0x5aa   :  { %v2131_v38 = vpop.f32.mrb[111].mxu1  ;;  %v7161_v46 = vadd.f32 %v4993_v33, %v7013_v17  ;;  %v2211_v22 = vmul.f32 %v7153_v55, %v7153_v55 }
 0x5ab   :  { %v7156_v0 = vadd.f32 %v7013_v17, %v2131_v38  ;;  %v2209_v47 = vmul.f32 %v7150_v13, %v7150_v13  ;;  %v7173_v38 = vadd.f32 %v7077_v51, %v7013_v17 }
 0x5ac   :  { %v2212_v33 = vmul.f32 %v7161_v46, %v7161_v46 }
 0x5ad   :  { %2269 = vadd.xlane.f32.xlu1 %v2209_v47  ;;  %v2210_v50 = vmul.f32 %v7156_v0, %v7156_v0  ;;  %v2195_v47 = vmul.f32 %v7167_v24, %v7167_v24  ;;  %v2196_v48 = vmul.f32 %v7173_v38, %v7173_v38 }
 0x5af   :  { %2271 = vadd.xlane.f32.xlu0 %v2210_v50 }
 0x5b1   :  { %2273 = vadd.xlane.f32.xlu1 %v2211_v22 }
 0x5b3   :  { %2275 = vadd.xlane.f32.xlu0 %v2212_v33 }
 0x5b5   :  { %2241 = vadd.xlane.f32.xlu1 %v2195_v47 }
 0x5b7   :  { %2243 = vadd.xlane.f32.xlu0 %v2196_v48 }
 0x5c9   :  { %v2218_v50 = vpop.xlane.xlu1 %2217 }
 0x5ca   :  { %v2279_v62 = vmax.f32 %v2218_v50, 1e-24 }
 0x5cb   :  { %v2220_v6 = vpop.xlane.xlu0 %2219 }
 0x5cc   :  { %v2280_v59 = vmax.f32 %v2220_v6, 1e-24 }
 0x5cd   :  { %v2214_v10 = vpop.xlane.xlu1 %2213 }
 0x5ce   :  { %5579 = vrsqrt.f32 %v2280_v59  ;;  %v2277_v17 = vmax.f32 %v2214_v10, 1e-24 }
 0x5cf   :  { %5581 = vrsqrt.f32 %v2279_v62  ;;  %v2216_v51 = vpop.xlane.xlu0 %2215 }
 0x5d0   :  { %5583 = vrsqrt.f32 %v2277_v17  ;;  %v2278_v22 = vmax.f32 %v2216_v51, 1e-24 }
 0x5d2   :  { %5585 = vrsqrt.f32 %v2278_v22 }
 0x5d8   :  { %v5580_v33 = vpop.eup %5579 }
 0x5d9   :  { %v5582_v28 = vpop.eup %5581  ;;  %v2226_v7 = vpop.xlane.xlu1 %2225  ;;  %v2344_v12 = vmul.f32 %v5580_v33, %v7022_v39 }
 0x5da   :  { %v5584_v47 = vpop.eup %5583  ;;  %v2283_v49 = vmax.f32 %v2226_v7, 1e-24  ;;  %v2343_v6 = vmul.f32 %v5582_v28, %v7016_v18 }
 0x5db   :  { %v2228_v48 = vpop.xlane.xlu0 %2227  ;;  %v2341_v50 = vmul.f32 %v5584_v47, %v7019_v23  ;;  %v2376_v17 = vmax.f32 %v2344_v12, 0.0 }
 0x5dc   :  { %v5586_v4 = vpop.eup %5585  ;;  %v2284_v59 = vmax.f32 %v2228_v48, 1e-24  ;;  %v2375_v21 = vmax.f32 %v2343_v6, 0.0 }
 0x5dd   :  { %v2222_v10 = vpop.xlane.xlu1 %2221  ;;  %v2342_v62 = vmul.f32 %v5586_v4, %v7027_v58  ;;  %v2373_v45 = vmax.f32 %v2341_v50, 0.0 }
 0x5de   :  { %5587 = vrsqrt.f32 %v2284_v59  ;;  %v2281_v51 = vmax.f32 %v2222_v10, 1e-24  ;;  %v7187_v23 = vpack.c.bf16 %v2376_v17, %v2375_v21 }
 0x5df   :  { %5589 = vrsqrt.f32 %v2283_v49  ;;  %v2224_v22 = vpop.xlane.xlu0 %2223  ;;  %v2374_v34 = vmax.f32 %v2342_v62, 0.0 }
 0x5e0   :  { %5591 = vrsqrt.f32 %v2281_v51  ;;  %v2282_v7 = vmax.f32 %v2224_v22, 1e-24 }
 0x5e1   :  { %v7185_v39 = vpack.c.bf16 %v2374_v34, %v2373_v45 }
 0x5e2   :  { %5593 = vrsqrt.f32 %v2282_v7 }
 0x5e3   :  { %5010 = vmatprep.mubr.bf16.mxu1 %v7185_v39 }
 0x5e4   :  { %5011 = vmatmul.mubr.bf16.vlgmr.msra.gmra.mrb[112].mxu1 %v7187_v23 }
 0x5e8   :  { %v5588_v4 = vpop.eup %5587 }
 0x5e9   :  { %v5590_v12 = vpop.eup %5589  ;;  %v2234_v28 = vpop.xlane.xlu1 %2233  ;;  %v2348_v49 = vmul.f32 %v5588_v4, %v7042_v11 }
 0x5ea   :  { %v5592_v18 = vpop.eup %5591  ;;  %v2287_v58 = vmax.f32 %v2234_v28, 1e-24  ;;  %v2347_v45 = vmul.f32 %v5590_v12, %v7036_v5 }
 0x5eb   :  { %v2236_v33 = vpop.xlane.xlu0 %2235  ;;  %v2345_v47 = vmul.f32 %v5592_v18, %v7039_v16  ;;  %v2380_v59 = vmax.f32 %v2348_v49, 0.0 }
 0x5ec   :  { %v5594_v48 = vpop.eup %5593  ;;  %v2288_v34 = vmax.f32 %v2236_v33, 1e-24  ;;  %v2379_v51 = vmax.f32 %v2347_v45, 0.0 }
 0x5ed   :  { %v2230_v21 = vpop.xlane.xlu1 %2229  ;;  %v2346_v50 = vmul.f32 %v5594_v48, %v7047_v3  ;;  %v2377_v62 = vmax.f32 %v2345_v47, 0.0 }
 0x5ee   :  { %5595 = vrsqrt.f32 %v2288_v34  ;;  %v2285_v6 = vmax.f32 %v2230_v21, 1e-24  ;;  %v7197_v16 = vpack.c.bf16 %v2380_v59, %v2379_v51 }
 0x5ef   :  { %5597 = vrsqrt.f32 %v2287_v58  ;;  %v2232_v10 = vpop.xlane.xlu0 %2231  ;;  %v2378_v17 = vmax.f32 %v2346_v50, 0.0 }
 0x5f0   :  { %5599 = vrsqrt.f32 %v2285_v6  ;;  %v2286_v11 = vmax.f32 %v2232_v10, 1e-24 }
 0x5f1   :  { %v7195_v22 = vpack.c.bf16 %v2378_v17, %v2377_v62 }
 0x5f2   :  { %5601 = vrsqrt.f32 %v2286_v11 }
 0x5f3   :  { %5014 = vmatprep.mubr.bf16.mxu1 %v7195_v22 }
 0x5f4   :  { %5015 = vmatmul.mubr.bf16.gmra.mrb[116].mxu1 %v7197_v16 }
 0x5f8   :  { %v5596_v5 = vpop.eup %5595 }
 0x5f9   :  { %v5598_v3 = vpop.eup %5597  ;;  %v2352_v4 = vmul.f32 %v5596_v5, %v7062_v2 }
 0x5fa   :  { %v5600_v7 = vpop.eup %5599  ;;  %v2351_v18 = vmul.f32 %v5598_v3, %v7056_v37 }
 0x5fb   :  { %v2349_v12 = vmul.f32 %v5600_v7, %v7059_v35  ;;  %v2384_v58 = vmax.f32 %v2352_v4, 0.0 }
 0x5fc   :  { %v5602_v28 = vpop.eup %5601  ;;  %v2383_v48 = vmax.f32 %v2351_v18, 0.0 }
 0x5fd   :  { %v2350_v49 = vmul.f32 %v5602_v28, %v7067_v57  ;;  %v2381_v33 = vmax.f32 %v2349_v12, 0.0 }
 0x5fe   :  { %v7207_v45 = vpack.c.bf16 %v2384_v58, %v2383_v48 }
 0x5ff   :  { %v2382_v47 = vmax.f32 %v2350_v49, 0.0 }
 0x601   :  { %v7205_v34 = vpack.c.bf16 %v2382_v47, %v2381_v33 }
 0x603   :  { %5018 = vmatprep.mubr.bf16.mxu1 %v7205_v34 }
 0x604   :  { %5019 = vmatmul.mubr.bf16.gmra.mrb[120].mxu1 %v7207_v45 }
 0x609   :  { %v2250_v2 = vpop.xlane.xlu1 %2249 }
 0x60a   :  { %v2295_v21 = vmax.f32 %v2250_v2, 1e-24 }
 0x60b   :  { %v2252_v35 = vpop.xlane.xlu0 %2251 }
 0x60c   :  { %v2296_v50 = vmax.f32 %v2252_v35, 1e-24 }
 0x60d   :  { %v2246_v6 = vpop.xlane.xlu1 %2245 }
 0x60e   :  { %5603 = vrsqrt.f32 %v2296_v50  ;;  %v2293_v37 = vmax.f32 %v2246_v6, 1e-24 }
 0x60f   :  { %5605 = vrsqrt.f32 %v2295_v21  ;;  %v2248_v57 = vpop.xlane.xlu0 %2247 }
 0x610   :  { %5607 = vrsqrt.f32 %v2293_v37  ;;  %v2294_v59 = vmax.f32 %v2248_v57, 1e-24 }
 0x612   :  { %5609 = vrsqrt.f32 %v2294_v59 }
 0x618   :  { %v5604_v10 = vpop.eup %5603 }
 0x619   :  { %v5606_v62 = vpop.eup %5605  ;;  %v2258_v17 = vpop.xlane.xlu1 %2257  ;;  %v2360_v7 = vmul.f32 %v5604_v10, %v7086_v14 }
 0x61a   :  { %v5608_v11 = vpop.eup %5607  ;;  %v2299_v51 = vmax.f32 %v2258_v17, 1e-24  ;;  %v2359_v49 = vmul.f32 %v5606_v62, %v7080_v1 }
 0x61b   :  { %v2260_v5 = vpop.xlane.xlu0 %2259  ;;  %v2357_v3 = vmul.f32 %v5608_v11, %v7083_v26  ;;  %v2392_v2 = vmax.f32 %v2360_v7, 0.0 }
 0x61c   :  { %v5610_v4 = vpop.eup %5609  ;;  %v2300_v12 = vmax.f32 %v2260_v5, 1e-24  ;;  %v2391_v26 = vmax.f32 %v2359_v49, 0.0 }
 0x61d   :  { %v2254_v28 = vpop.xlane.xlu1 %2253  ;;  %v2358_v18 = vmul.f32 %v5610_v4, %v7091_v20  ;;  %v2389_v47 = vmax.f32 %v2357_v3, 0.0 }
 0x61e   :  { %5611 = vrsqrt.f32 %v2300_v12  ;;  %v2297_v58 = vmax.f32 %v2254_v28, 1e-24  ;;  %v7218_v14 = vpack.c.bf16 %v2392_v2, %v2391_v26 }
 0x61f   :  { %5613 = vrsqrt.f32 %v2299_v51  ;;  %v2256_v33 = vpop.xlane.xlu0 %2255  ;;  %v2390_v48 = vmax.f32 %v2358_v18, 0.0 }
 0x620   :  { %5615 = vrsqrt.f32 %v2297_v58  ;;  %v2298_v21 = vmax.f32 %v2256_v33, 1e-24 }
 0x621   :  { %v7215_v35 = vpack.c.bf16 %v2390_v48, %v2389_v47 }
 0x622   :  { %5617 = vrsqrt.f32 %v2298_v21 }
 0x623   :  { %4570 = vmatprep.subr.bf16.mxu0 %v7215_v35 }
 0x624   :  { %4571 = vmatpush3.bf16.msra.mxu0 %v7185_v39 }
 0x625   :  { %4572 = vmatprep.subr.bf16.mxu0 %v7218_v14 }
 0x628   :  { %v5612_v20 = vpop.eup %5611  ;;  %4573 = vmatpush3.bf16.msra.mxu0 %v7187_v23 }
 0x629   :  { %v5614_v1 = vpop.eup %5613  ;;  %v2266_v50 = vpop.xlane.xlu1 %2265  ;;  %v2364_v10 = vmul.f32 %v5612_v20, %v7106_v36 }
 0x62a   :  { %v5616_v6 = vpop.eup %5615  ;;  %v2303_v37 = vmax.f32 %v2266_v50, 1e-24  ;;  %v2363_v5 = vmul.f32 %v5614_v1, %v7100_v19 }
 0x62b   :  { %v2268_v57 = vpop.xlane.xlu0 %2267  ;;  %v2361_v59 = vmul.f32 %v5616_v6, %v7103_v9  ;;  %v2396_v28 = vmax.f32 %v2364_v10, 0.0 }
 0x62c   :  { %v5618_v62 = vpop.eup %5617  ;;  %v2304_v17 = vmax.f32 %v2268_v57, 1e-24  ;;  %v2395_v36 = vmax.f32 %v2363_v5, 0.0 }
 0x62d   :  { %v2262_v11 = vpop.xlane.xlu1 %2261  ;;  %v2362_v51 = vmul.f32 %v5618_v62, %v7111_v27  ;;  %v2393_v4 = vmax.f32 %v2361_v59, 0.0 }
 0x62e   :  { %5619 = vrsqrt.f32 %v2304_v17  ;;  %v2301_v3 = vmax.f32 %v2262_v11, 1e-24  ;;  %v7230_v33 = vpack.c.bf16 %v2396_v28, %v2395_v36 }
 0x62f   :  { %5621 = vrsqrt.f32 %v2303_v37  ;;  %v2264_v7 = vpop.xlane.xlu0 %2263  ;;  %v2394_v12 = vmax.f32 %v2362_v51, 0.0 }
 0x630   :  { %5623 = vrsqrt.f32 %v2301_v3  ;;  %v2302_v18 = vmax.f32 %v2264_v7, 1e-24 }
 0x631   :  { %v2238_v49 = vpop.xlane.xlu1 %2237  ;;  %v7227_v9 = vpack.c.bf16 %v2394_v12, %v2393_v4 }
 0x632   :  { %5625 = vrsqrt.f32 %v2302_v18  ;;  %v2289_v58 = vmax.f32 %v2238_v49, 1e-24 }
 0x633   :  { %4574 = vmatprep.subr.bf16.mxu0 %v7227_v9  ;;  %v2240_v27 = vpop.xlane.xlu0 %2239 }
 0x634   :  { %5627 = vrsqrt.f32 %v2289_v58  ;;  %v2290_v19 = vmax.f32 %v2240_v27, 1e-24  ;;  %4575 = vmatpush3.bf16.msra.mxu0 %v7195_v22 }
 0x635   :  { %4576 = vmatprep.subr.bf16.mxu0 %v7230_v33 }
 0x636   :  { %5629 = vrsqrt.f32 %v2290_v19 }
 0x638   :  { %v5620_v47 = vpop.eup %5619  ;;  %4577 = vmatpush3.bf16.msra.mxu0 %v7197_v16 }
 0x639   :  { %v5622_v48 = vpop.eup %5621  ;;  %v2368_v26 = vmul.f32 %v5620_v47, %v7126_v60 }
 0x63a   :  { %v5624_v2 = vpop.eup %5623  ;;  %v2270_v21 = vpop.xlane.xlu1 %2269  ;;  %v2367_v37 = vmul.f32 %v5622_v48, %v7120_v25 }
 0x63b   :  { %v2305_v20 = vmax.f32 %v2270_v21, 1e-24  ;;  %v2365_v1 = vmul.f32 %v5624_v2, %v7123_v8  ;;  %v2400_v11 = vmax.f32 %v2368_v26, 0.0 }
 0x63c   :  { %v5626_v50 = vpop.eup %5625  ;;  %v2272_v6 = vpop.xlane.xlu0 %2271  ;;  %v2399_v8 = vmax.f32 %v2367_v37, 0.0 }
 0x63d   :  { %5631 = vrsqrt.f32 %v2305_v20  ;;  %v2306_v57 = vmax.f32 %v2272_v6, 1e-24  ;;  %v2366_v59 = vmul.f32 %v5626_v50, %v7131_v61  ;;  %v2397_v17 = vmax.f32 %v2365_v1, 0.0 }
 0x63e   :  { %v5628_v10 = vpop.eup %5627  ;;  %v2274_v62 = vpop.xlane.xlu1 %2273  ;;  %v7243_v61 = vpack.c.bf16 %v2400_v11, %v2399_v8  ;;  %v5483_v11 = vld [vmem:[#allocation14] sm:$0xff]   ;;  %v7882_v8 = vld [vmem:[#allocation33_spill] sm:$0xff] }
 0x63f   :  { %5633 = vrsqrt.f32 %v2306_v57  ;;  %v2307_v51 = vmax.f32 %v2274_v62, 1e-24  ;;  %v2398_v5 = vmax.f32 %v2366_v59, 0.0  ;;  %v2353_v60 = vmul.f32 %v5628_v10, %v7136_v40 }
 0x640   :  { %v5630_v3 = vpop.eup %5629  ;;  %v2276_v7 = vpop.xlane.xlu0 %2275 }
 0x641   :  { %5635 = vrsqrt.f32 %v2307_v51  ;;  %v2308_v4 = vmax.f32 %v2276_v7, 1e-24  ;;  %v7240_v12 = vpack.c.bf16 %v2398_v5, %v2397_v17  ;;  %v2354_v25 = vmul.f32 %v5630_v3, %v7141_v56  ;;  %v5486_v51 = vld [vmem:[#allocation14 + $0x18] sm:$0xff]   ;;  %v5487_v5 = vld [vmem:[#allocation14 + $0x20] sm:$0xff]  }
 0x642   :  { %v2242_v28 = vpop.xlane.xlu1 %2241  ;;  %v2385_v49 = vmax.f32 %v2353_v60, 0.0  ;;  %v7878_v60 = vld [vmem:[#allocation29_spill] sm:$0xff]  ;;  %v7880_v3 = vld [vmem:[#allocation31_spill] sm:$0xff] }
 0x643   :  { %5637 = vrsqrt.f32 %v2308_v4  ;;  %v2291_v18 = vmax.f32 %v2242_v28, 1e-24  ;;  %4578 = vmatprep.subr.bf16.mxu0 %v7240_v12  ;;  %v2386_v36 = vmax.f32 %v2354_v25, 0.0  ;;  %v5502_v7 = vld [vmem:[#allocation10 + $0x18] sm:$0xff]   ;;  %v5503_v4 = vld [vmem:[#allocation10 + $0x20] sm:$0xff]   ;;  %v7883_v25 = vld [vmem:[#allocation34_spill] sm:$0xff] }
 0x644   :  { %4579 = vmatpush3.bf16.msra.mxu0 %v7205_v34  ;;  %v2244_v40 = vpop.xlane.xlu0 %2243  ;;  %v5504_v28 = vld [vmem:[#allocation10 + $0x28] sm:$0xff]  }
 0x645   :  { %5639 = vrsqrt.f32 %v2291_v18  ;;  %v2292_v58 = vmax.f32 %v2244_v40, 1e-24  ;;  %4580 = vmatprep.subr.bf16.mxu0 %v7243_v61  ;;  %v7248_v27 = vpack.c.bf16 %v2386_v36, %v2385_v49  ;;  %v7884_v18 = vld [vmem:[#allocation35_spill] sm:$0xff]  ;;  %v5505_v49 = vld [vmem:[#allocation10 + $0x30] sm:$0xff]   ;;  %v7885_v36 = vld [vmem:[#allocation36_spill] sm:$0xff] }
 0x646   :  { %v5506_v40 = vld [vmem:[#allocation10 + $0x38] sm:$0xff]  }
 0x647   :  { %v5632_v19 = vpop.eup %5631  ;;  %5641 = vrsqrt.f32 %v2292_v58  ;;  %5022 = vmatprep.mubr.bf16.mxu1 %v7248_v27  ;;  %v7886_v58 = vld [vmem:[#allocation37_spill] sm:$0xff] }
 0x648   :  { %4581 = vmatpush3.bf16.msra.mxu0 %v7207_v45  ;;  %v2369_v56 = vmul.f32 %v5632_v19, %v7150_v13  ;;  %v7887_v19 = vld [vmem:[#allocation38_spill] sm:$0xff] }
 0x649   :  { %v5634_v47 = vpop.eup %5633 }
 0x64a   :  { %v2370_v48 = vmul.f32 %v5634_v47, %v7156_v0  ;;  %v2401_v21 = vmax.f32 %v2369_v56, 0.0  ;;  %v7888_v56 = vld [vmem:[#allocation39_spill] sm:$0xff]  ;;  %v7889_v47 = vld [vmem:[#allocation40_spill] sm:$0xff] }
 0x64b   :  { %v5636_v2 = vpop.eup %5635 }
 0x64c   :  { %v2402_v26 = vmax.f32 %v2370_v48, 0.0  ;;  %v2371_v20 = vmul.f32 %v5636_v2, %v7153_v55  ;;  %v7890_v48 = vld [vmem:[#allocation41_spill] sm:$0xff]  ;;  %v7891_v2 = vld [vmem:[#allocation42_spill] sm:$0xff] }
 0x64d   :  { %v5638_v1 = vpop.eup %5637 }
 0x64e   :  { %v7255_v50 = vpack.c.bf16 %v2402_v26, %v2401_v21  ;;  %v2372_v6 = vmul.f32 %v5638_v1, %v7161_v46  ;;  %v2403_v57 = vmax.f32 %v2371_v20, 0.0  ;;  %v5492_v21 = vld [vmem:[#allocation13 + $0x8] sm:$0xff]   ;;  %v5493_v26 = vld [vmem:[#allocation13 + $0x10] sm:$0xff]   ;;  %v5494_v20 = vld [vmem:[#allocation13 + $0x18] sm:$0xff]  }
 0x64f   :  { %v5640_v37 = vpop.eup %5639  ;;  %v5495_v1 = vld [vmem:[#allocation13 + $0x20] sm:$0xff]  }
 0x650   :  { %4582 = vmatprep.subr.bf16.mxu0 %v7255_v50  ;;  %v2404_v59 = vmax.f32 %v2372_v6, 0.0  ;;  %v2355_v13 = vmul.f32 %v5640_v37, %v7167_v24  ;;  %v5484_v24 = vld [vmem:[#allocation14 + $0x8] sm:$0xff]  }
 0x651   :  { %v5642_v10 = vpop.eup %5641  ;;  %4583 = vmatpush3.bf16.msra.mxu0 %v7248_v27 }
 0x652   :  { %v7261_v0 = vpack.c.bf16 %v2404_v59, %v2403_v57  ;;  %v2356_v62 = vmul.f32 %v5642_v10, %v7173_v38  ;;  %v2387_v55 = vmax.f32 %v2355_v13, 0.0  ;;  %v5485_v38 = vld [vmem:[#allocation14 + $0x10] sm:$0xff]   ;;  %v7900_v59 = vld [vmem:[#allocation43_spill] sm:$0xff]  ;;  %v7901_v10 = vld [vmem:[#allocation45_spill] sm:$0xff] }
 0x653   :  { %v7899_v57 = vld [vmem:[#allocation90_spill] sm:$0xff] }
 0x654   :  { %4584 = vmatprep.subr.bf16.mxu0 %v7261_v0  ;;  %v2388_v17 = vmax.f32 %v2356_v62, 0.0  ;;  %v7902_v62 = vld [vmem:[#allocation81_spill] sm:$0xff] }
 0x656   :  { %v7265_v46 = vpack.c.bf16 %v2388_v17, %v2387_v55 }
 0x658   :  { %4585 = vmatpush3.bf16.msra.mxu0 %v7265_v46  ;;  %5023 = vmatmul.mubr.bf16.gmra.mrb[124].mxu1 %v7265_v46 }
 0x659   :  { %5026 = vmatprep.mubr.bf16.mxu1 %v7215_v35  ;;  %5090 = vmatprep.subr.bf16.mxu0 %v5483_v11 }
 0x65b   :  { %2487 = vmatmul.mubr.bf16.vlgmr.msra.gmra.mrb[80].mxu0 %v6348_v29  ;;  %v5488_v29 = vld [vmem:[#allocation14 + $0x28] sm:$0xff]  }
 0x65c   :  { %2494 = vmatprep.mubr.bf16.mxu0 %v6354_v31  ;;  %5091 = vmatpush3.bf16.msra.mxu0 %v5483_v11  ;;  %v5489_v31 = vld [vmem:[#allocation14 + $0x30] sm:$0xff]  }
 0x65d   :  { %5092 = vmatprep.subr.bf16.mxu0 %v5484_v24 }
 0x660   :  { %5027 = vmatmul.mubr.bf16.gmra.mrb[128].mxu1 %v7218_v14  ;;  %5093 = vmatpush3.bf16.msra.mxu0 %v5484_v24 }
 0x661   :  { %5030 = vmatprep.mubr.bf16.mxu1 %v7227_v9  ;;  %5094 = vmatprep.subr.bf16.mxu0 %v5485_v38 }
 0x663   :  { %2495 = vmatmul.mubr.bf16.gmra.mrb[84].mxu0 %v6380_v41  ;;  %v5490_v41 = vld [vmem:[#allocation14 + $0x38] sm:$0xff]  }
 0x664   :  { %2502 = vmatprep.mubr.bf16.mxu0 %v6384_v43  ;;  %5095 = vmatpush3.bf16.msra.mxu0 %v5485_v38  ;;  %v5491_v43 = vld [vmem:[#allocation13] sm:$0xff]  }
 0x665   :  { %5096 = vmatprep.subr.bf16.mxu0 %v5486_v51 }
 0x668   :  { %5031 = vmatmul.mubr.bf16.gmra.mrb[132].mxu1 %v7230_v33  ;;  %5097 = vmatpush3.bf16.msra.mxu0 %v5486_v51 }
 0x669   :  { %5034 = vmatprep.mubr.bf16.mxu1 %v7240_v12  ;;  %5098 = vmatprep.subr.bf16.mxu0 %v5487_v5 }
 0x66b   :  { %2503 = vmatmul.mubr.bf16.gmra.mrb[88].mxu0 %v6410_v52  ;;  %v7874_v52 = vld [vmem:[#allocation25_spill] sm:$0xff] }
 0x66c   :  { %2510 = vmatprep.mubr.bf16.mxu0 %v6414_v54  ;;  %5099 = vmatpush3.bf16.msra.mxu0 %v5487_v5  ;;  %v7876_v54 = vld [vmem:[#allocation27_spill] sm:$0xff]  ;;  %v7903_v5 = vld [vmem:[#allocation82_spill] sm:$0xff] }
 0x66d   :  { %5100 = vmatprep.subr.bf16.mxu0 %v5488_v29 }
 0x670   :  { %5035 = vmatmul.mubr.bf16.gmra.mrb[136].mxu1 %v7243_v61  ;;  %5101 = vmatpush3.bf16.msra.mxu0 %v5488_v29  ;;  %v7904_v29 = vld [vmem:[#allocation44_spill] sm:$0xff] }
 0x671   :  { %5038 = vmatprep.mubr.bf16.mxu1 %v7255_v50  ;;  %5102 = vmatprep.subr.bf16.mxu0 %v5489_v31 }
 0x673   :  { %2511 = vmatmul.mubr.bf16.gmra.mrb[92].mxu0 %v6437_v63  ;;  %v7877_v63 = vld [vmem:[#allocation28_spill] sm:$0xff] }
 0x674   :  { %2518 = vmatprep.mubr.bf16.mxu0 %v6283_v15  ;;  %5103 = vmatpush3.bf16.msra.mxu0 %v5489_v31  ;;  %v7875_v15 = vld [vmem:[#allocation26_spill] sm:$0xff] }
 0x675   :  { %5104 = vmatprep.subr.bf16.mxu0 %v5490_v41 }
 0x678   :  { %5039 = vmatmul.mubr.bf16.gmra.mrb[140].mxu1 %v7261_v0  ;;  %5105 = vmatpush3.bf16.msra.mxu0 %v5490_v41  ;;  %v7905_v41 = vld [vmem:[#allocation46_spill] sm:$0xff] }
 0x679   :  { %5138 = vmatprep.subr.bf16.mxu0 %v5491_v43 }
 0x67b   :  { %2519 = vmatmul.mubr.bf16.gmra.mrb[96].mxu0 %v6350_v30  ;;  %v5499_v30 = vld [vmem:[#allocation10] sm:$0xff]  }
 0x67c   :  { %2526 = vmatprep.mubr.bf16.mxu0 %v6356_v32  ;;  %5042 = vmatprep.subr.bf16.mxu1 %v5499_v30  ;;  %v7879_v32 = vld [vmem:[#allocation30_spill] sm:$0xff] }
 0x67d   :  { %5043 = vmatpush3.bf16.msra.mxu1 %v5499_v30 }
 0x683   :  { %2527 = vmatmul.mubr.bf16.gmra.mrb[100].mxu0 %v6382_v42  ;;  %v5500_v42 = vld [vmem:[#allocation10 + $0x8] sm:$0xff]  }
 0x684   :  { %2534 = vmatprep.mubr.bf16.mxu0 %v6386_v44  ;;  %v5501_v44 = vld [vmem:[#allocation10 + $0x10] sm:$0xff]   ;;  %5044 = vmatprep.subr.bf16.mxu1 %v5500_v42 }
 0x685   :  { %5045 = vmatpush3.bf16.msra.mxu1 %v5500_v42 }
 0x686   :  { %5046 = vmatprep.subr.bf16.mxu1 %v5501_v44 }
 0x689   :  { %5047 = vmatpush3.bf16.msra.mxu1 %v5501_v44  ;;  %v7908_v44 = vld [vmem:[#allocation47_spill] sm:$0xff] }
 0x68a   :  { %5048 = vmatprep.subr.bf16.mxu1 %v5502_v7 }
 0x68b   :  { %2535 = vmatmul.mubr.bf16.gmra.mrb[104].mxu0 %v6412_v53  ;;  %v7881_v53 = vld [vmem:[#allocation32_spill] sm:$0xff] }
 0x68c   :  { %2542 = vmatprep.mubr.bf16.mxu0 %v7874_v52  ;;  %v7906_v52 = vld [vmem:[#allocation83_spill] sm:$0xff] }
 0x68d   :  { %5049 = vmatpush3.bf16.msra.mxu1 %v5502_v7  ;;  %v7909_v7 = vld [vmem:[#allocation48_spill] sm:$0xff] }
 0x68e   :  { %5050 = vmatprep.subr.bf16.mxu1 %v5503_v4 }
 0x691   :  { %5051 = vmatpush3.bf16.msra.mxu1 %v5503_v4  ;;  %v7910_v4 = vld [vmem:[#allocation85_spill] sm:$0xff] }
 0x692   :  { %5052 = vmatprep.subr.bf16.mxu1 %v5504_v28 }
 0x693   :  { %2543 = vmatmul.mubr.bf16.gmra.mrb[108].mxu0 %v7875_v15 }
 0x694   :  { %2550 = vmatprep.mubr.bf16.mxu0 %v7876_v54 }
 0x695   :  { %5053 = vmatpush3.bf16.msra.mxu1 %v5504_v28 }
 0x696   :  { %5054 = vmatprep.subr.bf16.mxu1 %v5505_v49 }
 0x699   :  { %5055 = vmatpush3.bf16.msra.mxu1 %v5505_v49 }
 0x69a   :  { %5056 = vmatprep.subr.bf16.mxu1 %v5506_v40 }
 0x69b   :  { %2551 = vmatmul.mubr.bf16.gmra.mrb[112].mxu0 %v7877_v63 }
 0x69c   :  { %2558 = vmatprep.mubr.bf16.mxu0 %v7878_v60 }
 0x69d   :  { %5057 = vmatpush3.bf16.msra.mxu1 %v5506_v40 }
 0x6a3   :  { %2559 = vmatmul.mubr.bf16.gmra.mrb[116].mxu0 %v7879_v32 }
 0x6a4   :  { %2566 = vmatprep.mubr.bf16.mxu0 %v7880_v3  ;;  %v7907_v3 = vld [vmem:[#allocation84_spill] sm:$0xff] }
 0x6ab   :  { %2567 = vmatmul.mubr.bf16.gmra.mrb[120].mxu0 %v7881_v53 }
 0x6ac   :  { %2574 = vmatprep.mubr.bf16.mxu0 %v7882_v8 }
 0x6b3   :  { %2575 = vmatmul.mubr.bf16.gmra.mrb[124].mxu0 %v7883_v25 }
 0x6b4   :  { %2582 = vmatprep.mubr.bf16.mxu0 %v7884_v18 }
 0x6bb   :  { %2583 = vmatmul.mubr.bf16.gmra.mrb[128].mxu0 %v7885_v36 }
 0x6bc   :  { %2590 = vmatprep.mubr.bf16.mxu0 %v7886_v58 }
 0x6c3   :  { %2591 = vmatmul.mubr.bf16.gmra.mrb[132].mxu0 %v7887_v19  ;;  %v7911_v19 = vld [vmem:[#allocation86_spill] sm:$0xff] }
 0x6c4   :  { %2598 = vmatprep.mubr.bf16.mxu0 %v7888_v56  ;;  %v7912_v56 = vld [vmem:[#allocation49_spill] sm:$0xff] }
 0x6cb   :  { %2599 = vmatmul.mubr.bf16.gmra.mrb[136].mxu0 %v7889_v47 }
 0x6cc   :  { %2606 = vmatprep.mubr.bf16.mxu0 %v7890_v48  ;;  %v7913_v48 = vld [vmem:[#allocation50_spill] sm:$0xff] }
 0x6d3   :  { %2607 = vmatmul.mubr.bf16.gmra.mrb[140].mxu0 %v7891_v2 }
 0x6d4   :  { %5106 = vmatprep.mubr.bf16.mxu0 %v7185_v39  ;;  %v5496_v39 = vld [vmem:[#allocation13 + $0x28] sm:$0xff]  }
 0x6db   :  { %5107 = vmatmul.mubr.bf16.vlgmr.msra.gmra.mrb[144].mxu0 %v7187_v23  ;;  %v5497_v23 = vld [vmem:[#allocation13 + $0x30] sm:$0xff]  }
 0x6dc   :  { %5110 = vmatprep.mubr.bf16.mxu0 %v7195_v22  ;;  %5139 = vmatpush3.bf16.msra.mxu0 %v5491_v43  ;;  %v5498_v22 = vld [vmem:[#allocation13 + $0x38] sm:$0xff]  }
 0x6dd   :  { %5140 = vmatprep.subr.bf16.mxu0 %v5492_v21 }
 0x6e0   :  { %5141 = vmatpush3.bf16.msra.mxu0 %v5492_v21  ;;  %v7914_v21 = vld [vmem:[#allocation88_spill] sm:$0xff] }
 0x6e1   :  { %5142 = vmatprep.subr.bf16.mxu0 %v5493_v26 }
 0x6e3   :  { %5111 = vmatmul.mubr.bf16.gmra.mrb[148].mxu0 %v7197_v16  ;;  %v7892_v16 = vld [vmem:[#allocation75_spill] sm:$0xff] }
 0x6e4   :  { %5114 = vmatprep.mubr.bf16.mxu0 %v7205_v34  ;;  %5143 = vmatpush3.bf16.msra.mxu0 %v5493_v26  ;;  %v7893_v34 = vld [vmem:[#allocation76_spill] sm:$0xff] }
 0x6e5   :  { %5144 = vmatprep.subr.bf16.mxu0 %v5494_v20 }
 0x6e8   :  { %5145 = vmatpush3.bf16.msra.mxu0 %v5494_v20 }
 0x6e9   :  { %5146 = vmatprep.subr.bf16.mxu0 %v5495_v1 }
 0x6eb   :  { %5115 = vmatmul.mubr.bf16.gmra.mrb[152].mxu0 %v7207_v45  ;;  %v7894_v45 = vld [vmem:[#allocation77_spill] sm:$0xff] }
 0x6ec   :  { %5118 = vmatprep.mubr.bf16.mxu0 %v7248_v27  ;;  %5147 = vmatpush3.bf16.msra.mxu0 %v5495_v1 }
 0x6ed   :  { %5148 = vmatprep.subr.bf16.mxu0 %v5496_v39 }
 0x6f0   :  { %5149 = vmatpush3.bf16.msra.mxu0 %v5496_v39 }
 0x6f1   :  { %5150 = vmatprep.subr.bf16.mxu0 %v5497_v23 }
 0x6f3   :  { %5119 = vmatmul.mubr.bf16.gmra.mrb[156].mxu0 %v7265_v46 }
 0x6f4   :  { %5122 = vmatprep.mubr.bf16.mxu0 %v7215_v35  ;;  %5151 = vmatpush3.bf16.msra.mxu0 %v5497_v23  ;;  %v7895_v35 = vld [vmem:[#allocation78_spill] sm:$0xff] }
 0x6f5   :  { %5152 = vmatprep.subr.bf16.mxu0 %v5498_v22 }
 0x6f8   :  { %5153 = vmatpush3.bf16.msra.mxu0 %v5498_v22 }
 0x6fb   :  { %5123 = vmatmul.mubr.bf16.gmra.mrb[160].mxu0 %v7218_v14  ;;  %v7896_v14 = vld [vmem:[#allocation79_spill] sm:$0xff] }
 0x6fc   :  { %5126 = vmatprep.mubr.bf16.mxu0 %v7227_v9  ;;  %v7897_v9 = vld [vmem:[#allocation80_spill] sm:$0xff] }
 0x703   :  { %5127 = vmatmul.mubr.bf16.gmra.mrb[164].mxu0 %v7230_v33  ;;  %v7898_v33 = vld [vmem:[#allocation87_spill] sm:$0xff] }
 0x704   :  { %5130 = vmatprep.mubr.bf16.mxu0 %v7240_v12 }
 0x70b   :  { %5131 = vmatmul.mubr.bf16.gmra.mrb[168].mxu0 %v7243_v61 }
 0x70c   :  { %5134 = vmatprep.mubr.bf16.mxu0 %v7255_v50 }
 0x713   :  { %5135 = vmatmul.mubr.bf16.gmra.mrb[172].mxu0 %v7261_v0 }
 0x714   :  { %5154 = vmatprep.mubr.bf16.mxu0 %v7892_v16 }
 0x71b   :  { %5155 = vmatmul.mubr.bf16.vlgmr.msra.gmra.mrb[144].mxu0 %v7893_v34  ;;  %v7915_v34 = vld [vmem:[#allocation89_spill] sm:$0xff] }
 0x71c   :  { %5158 = vmatprep.mubr.bf16.mxu0 %v7894_v45  ;;  %v7916_v45 = vld [vmem:[#allocation51_spill] sm:$0xff] }
 0x723   :  { %5159 = vmatmul.mubr.bf16.gmra.mrb[148].mxu0 %v7895_v35 }
 0x724   :  { %5162 = vmatprep.mubr.bf16.mxu0 %v7896_v14  ;;  %v7917_v14 = vld [vmem:[#allocation52_spill] sm:$0xff] }
 0x72b   :  { %5163 = vmatmul.mubr.bf16.gmra.mrb[152].mxu0 %v7897_v9 }
 0x72c   :  { %5166 = vmatprep.mubr.bf16.mxu0 %v7898_v33 }
 0x72e   :  { %v4586_v12 = vpop.f32.mrb[80].mxu0 }
 0x72f   :  { %v4587_v61 = vpop.f32.mrb[81].mxu0 }
 0x730   :  { %v4588_v27 = vadd.f32 %v4587_v61, %v4586_v12  ;;  %v4589_v50 = vpop.f32.mrb[82].mxu0 }
 0x731   :  { %v4590_v6 = vpop.f32.mrb[83].mxu0 }
 0x732   :  { %v4591_v37 = vadd.f32 %v4590_v6, %v4589_v50  ;;  %v2615_v13 = vmul.f32 %v4588_v27, %v7900_v59 }
 0x733   :  { %5167 = vmatmul.mubr.bf16.gmra.mrb[156].mxu0 %v7899_v57  ;;  %v7918_v57 = vld [vmem:[#allocation53_spill] sm:$0xff] }
 0x734   :  { %v2616_v0 = vmul.f32 %v4591_v37, %v7901_v10  ;;  %5170 = vmatprep.mubr.bf16.mxu0 %v7902_v62 }
 0x736   :  { %v4592_v55 = vpop.f32.mrb[84].mxu0  ;;  %v2647_v17 = vpack.c.bf16 %v2616_v0, %v2615_v13  ;;  %v7919_v13 = vld [vmem:[#allocation54_spill] sm:$0xff] }
 0x737   :  { %v4593_v11 = vpop.f32.mrb[85].mxu0 }
 0x738   :  { %v4594_v46 = vadd.f32 %v4593_v11, %v4592_v55  ;;  %v4595_v24 = vpop.f32.mrb[86].mxu0  ;;  %5058 = vmatprep.mubr.bf16.mxu1 %v2647_v17 }
 0x739   :  { %v4596_v38 = vpop.f32.mrb[87].mxu0 }
 0x73a   :  { %v4597_v51 = vadd.f32 %v4596_v38, %v4595_v24  ;;  %v2617_v31 = vmul.f32 %v4594_v46, %v7904_v29  ;;  %v7920_v38 = vld [vmem:[#allocation55_spill] sm:$0xff] }
 0x73b   :  { %5171 = vmatmul.mubr.bf16.gmra.mrb[160].mxu0 %v7903_v5  ;;  %v7921_v5 = vld [vmem:[#allocation56_spill] sm:$0xff] }
 0x73c   :  { %v2618_v43 = vmul.f32 %v4597_v51, %v7905_v41  ;;  %5174 = vmatprep.mubr.bf16.mxu0 %v7906_v52 }
 0x73e   :  { %v2648_v15 = vpack.c.bf16 %v2618_v43, %v2617_v31  ;;  %v4598_v54 = vpop.f32.mrb[88].mxu0 }
 0x73f   :  { %v4599_v63 = vpop.f32.mrb[89].mxu0 }
 0x740   :  { %v4600_v60 = vadd.f32 %v4599_v63, %v4598_v54  ;;  %v4601_v30 = vpop.f32.mrb[90].mxu0  ;;  %5059 = vmatmul.mubr.bf16.vlgmr.msra.gmra.mrb[112].mxu1 %v2648_v15 }
 0x741   :  { %v4602_v32 = vpop.f32.mrb[91].mxu0 }
 0x742   :  { %v4603_v42 = vadd.f32 %v4602_v32, %v4601_v30  ;;  %v2619_v53 = vmul.f32 %v4600_v60, %v7908_v44  ;;  %v7922_v60 = vld [vmem:[#allocation57_spill] sm:$0xff]  ;;  %v7923_v32 = vld [vmem:[#allocation58_spill] sm:$0xff] }
 0x743   :  { %5175 = vmatmul.mubr.bf16.gmra.mrb[164].mxu0 %v7907_v3 }
 0x744   :  { %v2620_v8 = vmul.f32 %v4603_v42, %v7909_v7  ;;  %5178 = vmatprep.mubr.bf16.mxu0 %v7910_v4 }
 0x746   :  { %v4604_v25 = vpop.f32.mrb[92].mxu0  ;;  %v2649_v28 = vpack.c.bf16 %v2620_v8, %v2619_v53 }
 0x747   :  { %v4605_v18 = vpop.f32.mrb[93].mxu0 }
 0x748   :  { %v4606_v49 = vadd.f32 %v4605_v18, %v4604_v25  ;;  %v4607_v36 = vpop.f32.mrb[94].mxu0  ;;  %5062 = vmatprep.mubr.bf16.mxu1 %v2649_v28  ;;  %v7924_v28 = vld [vmem:[#allocation59_spill] sm:$0xff] }
 0x749   :  { %v4608_v40 = vpop.f32.mrb[95].mxu0 }
 0x74a   :  { %v4609_v58 = vadd.f32 %v4608_v40, %v4607_v36  ;;  %v2621_v47 = vmul.f32 %v4606_v49, %v7912_v56  ;;  %v7925_v49 = vld [vmem:[#allocation60_spill] sm:$0xff] }
 0x74b   :  { %5179 = vmatmul.mubr.bf16.gmra.mrb[168].mxu0 %v7911_v19 }
 0x74c   :  { %v2622_v2 = vmul.f32 %v4609_v58, %v7913_v48  ;;  %5182 = vmatprep.mubr.bf16.mxu0 %v7914_v21  ;;  %v7926_v21 = vld [vmem:[#allocation61_spill] sm:$0xff] }
 0x74e   :  { %v4610_v26 = vpop.f32.mrb[96].mxu0  ;;  %v2650_v20 = vpack.c.bf16 %v2622_v2, %v2621_v47 }
 0x74f   :  { %v4611_v1 = vpop.f32.mrb[97].mxu0 }
 0x750   :  { %v4612_v39 = vadd.f32 %v4611_v1, %v4610_v26  ;;  %v4613_v23 = vpop.f32.mrb[98].mxu0  ;;  %5063 = vmatmul.mubr.bf16.gmra.mrb[116].mxu1 %v2650_v20  ;;  %v7927_v20 = vld [vmem:[#allocation62_spill] sm:$0xff] }
 0x751   :  { %v4614_v22 = vpop.f32.mrb[99].mxu0 }
 0x752   :  { %v4615_v16 = vadd.f32 %v4614_v22, %v4613_v23  ;;  %v2623_v35 = vmul.f32 %v4612_v39, %v7916_v45 }
 0x753   :  { %5183 = vmatmul.mubr.bf16.gmra.mrb[172].mxu0 %v7915_v34 }
 0x754   :  { %v2624_v9 = vmul.f32 %v4615_v16, %v7917_v14  ;;  %v7928_v14 = vld [vmem:[#allocation63_spill] sm:$0xff] }
 0x756   :  { %v4616_v33 = vpop.f32.mrb[100].mxu0  ;;  %v2651_v12 = vpack.c.bf16 %v2624_v9, %v2623_v35 }
 0x757   :  { %v4617_v61 = vpop.f32.mrb[101].mxu0 }
 0x758   :  { %v4618_v27 = vadd.f32 %v4617_v61, %v4616_v33  ;;  %v4619_v50 = vpop.f32.mrb[102].mxu0  ;;  %5066 = vmatprep.mubr.bf16.mxu1 %v2651_v12  ;;  %v7929_v33 = vld [vmem:[#allocation64_spill] sm:$0xff] }
 0x759   :  { %v4620_v6 = vpop.f32.mrb[103].mxu0 }
 0x75a   :  { %v4621_v37 = vadd.f32 %v4620_v6, %v4619_v50  ;;  %v2625_v59 = vmul.f32 %v4618_v27, %v7918_v57 }
 0x75c   :  { %v2626_v10 = vmul.f32 %v4621_v37, %v7919_v13  ;;  %v7930_v13 = vld [vmem:[#allocation65_spill] sm:$0xff] }
 0x75e   :  { %v4622_v0 = vpop.f32.mrb[104].mxu0  ;;  %v2652_v62 = vpack.c.bf16 %v2626_v10, %v2625_v59 }
 0x75f   :  { %v4623_v55 = vpop.f32.mrb[105].mxu0 }
 0x760   :  { %v4624_v17 = vadd.f32 %v4623_v55, %v4622_v0  ;;  %v4625_v11 = vpop.f32.mrb[106].mxu0  ;;  %5067 = vmatmul.mubr.bf16.gmra.mrb[120].mxu1 %v2652_v62  ;;  %v7931_v0 = vld [vmem:[#allocation66_spill] sm:$0xff] }
 0x761   :  { %v4626_v46 = vpop.f32.mrb[107].mxu0 }
 0x762   :  { %v4627_v24 = vadd.f32 %v4626_v46, %v4625_v11  ;;  %v2627_v51 = vmul.f32 %v4624_v17, %v7920_v38 }
 0x764   :  { %v2628_v29 = vmul.f32 %v4627_v24, %v7921_v5  ;;  %v7932_v5 = vld [vmem:[#allocation67_spill] sm:$0xff] }
 0x766   :  { %v4628_v31 = vpop.f32.mrb[108].mxu0  ;;  %v2653_v41 = vpack.c.bf16 %v2628_v29, %v2627_v51 }
 0x767   :  { %v4629_v43 = vpop.f32.mrb[109].mxu0 }
 0x768   :  { %v4630_v52 = vadd.f32 %v4629_v43, %v4628_v31  ;;  %v4631_v15 = vpop.f32.mrb[110].mxu0  ;;  %5070 = vmatprep.mubr.bf16.mxu1 %v2653_v41  ;;  %v7933_v31 = vld [vmem:[#allocation68_spill] sm:$0xff] }
 0x769   :  { %v4632_v54 = vpop.f32.mrb[111].mxu0 }
 0x76a   :  { %v4633_v63 = vadd.f32 %v4632_v54, %v4631_v15  ;;  %v2629_v30 = vmul.f32 %v4630_v52, %v7922_v60 }
 0x76c   :  { %v2630_v42 = vmul.f32 %v4633_v63, %v7923_v32  ;;  %v7934_v32 = vld [vmem:[#allocation69_spill] sm:$0xff] }
 0x76e   :  { %v4634_v3 = vpop.f32.mrb[112].mxu0  ;;  %v2654_v44 = vpack.c.bf16 %v2630_v42, %v2629_v30 }
 0x76f   :  { %v4635_v53 = vpop.f32.mrb[113].mxu0 }
 0x770   :  { %v4636_v7 = vadd.f32 %v4635_v53, %v4634_v3  ;;  %v4637_v8 = vpop.f32.mrb[114].mxu0  ;;  %5071 = vmatmul.mubr.bf16.gmra.mrb[124].mxu1 %v2654_v44  ;;  %v7935_v3 = vld [vmem:[#allocation70_spill] sm:$0xff] }
 0x771   :  { %v4638_v4 = vpop.f32.mrb[115].mxu0 }
 0x772   :  { %v4639_v25 = vadd.f32 %v4638_v4, %v4637_v8  ;;  %v2631_v18 = vmul.f32 %v4636_v7, %v7924_v28 }
 0x774   :  { %v2632_v36 = vmul.f32 %v4639_v25, %v7925_v49  ;;  %v7936_v49 = vld [vmem:[#allocation71_spill] sm:$0xff] }
 0x776   :  { %v4640_v40 = vpop.f32.mrb[116].mxu0  ;;  %v2655_v58 = vpack.c.bf16 %v2632_v36, %v2631_v18 }
 0x777   :  { %v4641_v19 = vpop.f32.mrb[117].mxu0 }
 0x778   :  { %v4642_v56 = vadd.f32 %v4641_v19, %v4640_v40  ;;  %v4643_v47 = vpop.f32.mrb[118].mxu0  ;;  %5074 = vmatprep.mubr.bf16.mxu1 %v2655_v58  ;;  %v7937_v40 = vld [vmem:[#allocation72_spill] sm:$0xff] }
 0x779   :  { %v4644_v48 = vpop.f32.mrb[119].mxu0 }
 0x77a   :  { %v4645_v2 = vadd.f32 %v4644_v48, %v4643_v47  ;;  %v2633_v26 = vmul.f32 %v4642_v56, %v7926_v21 }
 0x77c   :  { %v2634_v1 = vmul.f32 %v4645_v2, %v7927_v20  ;;  %v7938_v20 = vld [vmem:[#allocation73_spill] sm:$0xff] }
 0x77e   :  { %v4646_v39 = vpop.f32.mrb[120].mxu0  ;;  %v2656_v23 = vpack.c.bf16 %v2634_v1, %v2633_v26 }
 0x77f   :  { %v4647_v22 = vpop.f32.mrb[121].mxu0 }
 0x780   :  { %v4648_v16 = vadd.f32 %v4647_v22, %v4646_v39  ;;  %v4649_v34 = vpop.f32.mrb[122].mxu0  ;;  %5075 = vmatmul.mubr.bf16.gmra.mrb[128].mxu1 %v2656_v23  ;;  %v7939_v39 = vld [vmem:[#allocation74_spill] sm:$0xff] }
 0x781   :  { %v4650_v45 = vpop.f32.mrb[123].mxu0 }
 0x782   :  { %v4651_v35 = vadd.f32 %v4650_v45, %v4649_v34  ;;  %v2635_v9 = vmul.f32 %v4648_v16, %v7928_v14  ;;  %v5507_v16 = vld [vmem:[#allocation16] sm:$0xff]   ;;  %v5508_v34 = vld [vmem:[#allocation16 + $0x8] sm:$0xff]  }
 0x783   :  { %5186 = vmatprep.subr.bf16.mxu0 %v5507_v16  ;;  %v7375_v45 = vld [vmem:[%s7629_s11] ss:$0 sm:$0xff] }
 0x784   :  { %v2636_v12 = vmul.f32 %v4651_v35, %v7929_v33  ;;  %5187 = vmatpush3.bf16.msra.mxu0 %v5507_v16 }
 0x785   :  { %5188 = vmatprep.subr.bf16.mxu0 %v5508_v34 }
 0x786   :  { %v4652_v61 = vpop.f32.mrb[124].mxu0  ;;  %v2657_v27 = vpack.c.bf16 %v2636_v12, %v2635_v9 }
 0x787   :  { %v4653_v50 = vpop.f32.mrb[125].mxu0 }
 0x788   :  { %v4654_v6 = vadd.f32 %v4653_v50, %v4652_v61  ;;  %v4655_v37 = vpop.f32.mrb[126].mxu0  ;;  %5078 = vmatprep.mubr.bf16.mxu1 %v2657_v27  ;;  %5189 = vmatpush3.bf16.msra.mxu0 %v5508_v34 }
 0x789   :  { %v4656_v57 = vpop.f32.mrb[127].mxu0 }
 0x78a   :  { %v4657_v59 = vadd.f32 %v4656_v57, %v4655_v37  ;;  %v2637_v10 = vmul.f32 %v4654_v6, %v7930_v13 }
 0x78c   :  { %v2638_v62 = vmul.f32 %v4657_v59, %v7931_v0 }
 0x78e   :  { %v4658_v55 = vpop.f32.mrb[128].mxu0  ;;  %v2658_v17 = vpack.c.bf16 %v2638_v62, %v2637_v10 }
 0x78f   :  { %v4659_v11 = vpop.f32.mrb[129].mxu0 }
 0x790   :  { %v4660_v46 = vadd.f32 %v4659_v11, %v4658_v55  ;;  %v4661_v24 = vpop.f32.mrb[130].mxu0  ;;  %5079 = vmatmul.mubr.bf16.gmra.mrb[132].mxu1 %v2658_v17 }
 0x791   :  { %v4662_v38 = vpop.f32.mrb[131].mxu0 }
 0x792   :  { %v4663_v51 = vadd.f32 %v4662_v38, %v4661_v24  ;;  %v2639_v29 = vmul.f32 %v4660_v46, %v7932_v5  ;;  %v5509_v24 = vld [vmem:[#allocation16 + $0x10] sm:$0xff]  }
 0x793   :  { %5190 = vmatprep.subr.bf16.mxu0 %v5509_v24 }
 0x794   :  { %v2640_v41 = vmul.f32 %v4663_v51, %v7933_v31  ;;  %5191 = vmatpush3.bf16.msra.mxu0 %v5509_v24 }
 0x796   :  { %v4664_v43 = vpop.f32.mrb[132].mxu0  ;;  %v2659_v52 = vpack.c.bf16 %v2640_v41, %v2639_v29  ;;  %v5510_v29 = vld [vmem:[#allocation16 + $0x18] sm:$0xff]   ;;  %v5511_v41 = vld [vmem:[#allocation16 + $0x20] sm:$0xff]  }
 0x797   :  { %v4665_v15 = vpop.f32.mrb[133].mxu0  ;;  %5192 = vmatprep.subr.bf16.mxu0 %v5510_v29 }
 0x798   :  { %v4666_v54 = vadd.f32 %v4665_v15, %v4664_v43  ;;  %v4667_v63 = vpop.f32.mrb[134].mxu0  ;;  %5082 = vmatprep.mubr.bf16.mxu1 %v2659_v52  ;;  %5193 = vmatpush3.bf16.msra.mxu0 %v5510_v29  ;;  %v5512_v52 = vld [vmem:[#allocation16 + $0x28] sm:$0xff]  }
 0x799   :  { %v4668_v60 = vpop.f32.mrb[135].mxu0  ;;  %5194 = vmatprep.subr.bf16.mxu0 %v5511_v41 }
 0x79a   :  { %v4669_v30 = vadd.f32 %v4668_v60, %v4667_v63  ;;  %v2641_v42 = vmul.f32 %v4666_v54, %v7934_v32 }
 0x79c   :  { %v2642_v44 = vmul.f32 %v4669_v30, %v7935_v3  ;;  %5195 = vmatpush3.bf16.msra.mxu0 %v5511_v41  ;;  %v5513_v3 = vld [vmem:[#allocation16 + $0x30] sm:$0xff]  }
 0x79d   :  { %5196 = vmatprep.subr.bf16.mxu0 %v5512_v52 }
 0x79e   :  { %v4670_v53 = vpop.f32.mrb[136].mxu0  ;;  %v2660_v7 = vpack.c.bf16 %v2642_v44, %v2641_v42 }
 0x79f   :  { %v4671_v8 = vpop.f32.mrb[137].mxu0 }
 0x7a0   :  { %v4672_v4 = vadd.f32 %v4671_v8, %v4670_v53  ;;  %v4673_v25 = vpop.f32.mrb[138].mxu0  ;;  %5083 = vmatmul.mubr.bf16.gmra.mrb[136].mxu1 %v2660_v7  ;;  %5197 = vmatpush3.bf16.msra.mxu0 %v5512_v52  ;;  %v5514_v8 = vld [vmem:[#allocation16 + $0x38] sm:$0xff]  }
 0x7a1   :  { %v4674_v28 = vpop.f32.mrb[139].mxu0  ;;  %5198 = vmatprep.subr.bf16.mxu0 %v5513_v3 }
 0x7a2   :  { %v4675_v18 = vadd.f32 %v4674_v28, %v4673_v25  ;;  %v2643_v36 = vmul.f32 %v4672_v4, %v7936_v49 }
 0x7a4   :  { %v2644_v58 = vmul.f32 %v4675_v18, %v7937_v40  ;;  %5199 = vmatpush3.bf16.msra.mxu0 %v5513_v3 }
 0x7a5   :  { %5200 = vmatprep.subr.bf16.mxu0 %v5514_v8 }
 0x7a6   :  { %v4676_v19 = vpop.f32.mrb[140].mxu0  ;;  %v2661_v56 = vpack.c.bf16 %v2644_v58, %v2643_v36 }
 0x7a7   :  { %v4677_v47 = vpop.f32.mrb[141].mxu0 }
 0x7a8   :  { %v4678_v48 = vadd.f32 %v4677_v47, %v4676_v19  ;;  %v4679_v2 = vpop.f32.mrb[142].mxu0  ;;  %5086 = vmatprep.mubr.bf16.mxu1 %v2661_v56  ;;  %5201 = vmatpush3.bf16.msra.mxu0 %v5514_v8 }
 0x7a9   :  { %v4680_v21 = vpop.f32.mrb[143].mxu0 }
 0x7aa   :  { %v4681_v26 = vadd.f32 %v4680_v21, %v4679_v2  ;;  %v2645_v1 = vmul.f32 %v4678_v48, %v7938_v20 }
 0x7ac   :  { %v2646_v23 = vmul.f32 %v4681_v26, %v7939_v39 }
 0x7ae   :  { %v2662_v22 = vpack.c.bf16 %v2646_v23, %v2645_v1 }
 0x7b0   :  { %5087 = vmatmul.mubr.bf16.gmra.mrb[140].mxu1 %v2662_v22 }
 0x813   :  { %v5060_v35 = vpop.f32.mrb[112].mxu1 }
 0x814   :  { %v2954_v14 = vpop.f32.mrb[113].mxu1  ;;  %v7381_v61 = vadd.f32 %v5060_v35, %v7375_v45 }
 0x815   :  { %v7378_v9 = vadd.f32 %v7375_v45, %v2954_v14  ;;  %v5061_v33 = vpop.f32.mrb[114].mxu1 }
 0x816   :  { %v2957_v12 = vpop.f32.mrb[115].mxu1  ;;  %v7389_v6 = vadd.f32 %v5061_v33, %v7375_v45  ;;  %v3121_v57 = vmul.f32 %v7381_v61, %v7381_v61 }
 0x817   :  { %v7384_v27 = vadd.f32 %v7375_v45, %v2957_v12  ;;  %v3119_v50 = vmul.f32 %v7378_v9, %v7378_v9 }
 0x818   :  { %v3122_v59 = vmul.f32 %v7389_v6, %v7389_v6 }
 0x819   :  { %v3120_v37 = vmul.f32 %v7384_v27, %v7384_v27  ;;  %3151 = vadd.xlane.f32.xlu1 %v3119_v50 }
 0x81b   :  { %3153 = vadd.xlane.f32.xlu0 %v3120_v37 }
 0x81d   :  { %3155 = vadd.xlane.f32.xlu1 %v3121_v57 }
 0x81f   :  { %3157 = vadd.xlane.f32.xlu0 %v3122_v59 }
 0x823   :  { %v5064_v13 = vpop.f32.mrb[116].mxu1 }
 0x824   :  { %v2970_v10 = vpop.f32.mrb[117].mxu1  ;;  %v7401_v17 = vadd.f32 %v5064_v13, %v7375_v45 }
 0x825   :  { %v7398_v0 = vadd.f32 %v7375_v45, %v2970_v10  ;;  %v5065_v62 = vpop.f32.mrb[118].mxu1 }
 0x826   :  { %v2973_v55 = vpop.f32.mrb[119].mxu1  ;;  %v7409_v38 = vadd.f32 %v5065_v62, %v7375_v45  ;;  %v3125_v5 = vmul.f32 %v7401_v17, %v7401_v17 }
 0x827   :  { %v3123_v11 = vmul.f32 %v7398_v0, %v7398_v0  ;;  %v7406_v46 = vadd.f32 %v7375_v45, %v2973_v55 }
 0x828   :  { %v3126_v31 = vmul.f32 %v7409_v38, %v7409_v38 }
 0x829   :  { %v3124_v51 = vmul.f32 %v7406_v46, %v7406_v46  ;;  %3159 = vadd.xlane.f32.xlu1 %v3123_v11 }
 0x82b   :  { %3161 = vadd.xlane.f32.xlu0 %v3124_v51 }
 0x82d   :  { %3163 = vadd.xlane.f32.xlu1 %v3125_v5 }
 0x82f   :  { %3165 = vadd.xlane.f32.xlu0 %v3126_v31 }
 0x833   :  { %v5068_v43 = vpop.f32.mrb[120].mxu1 }
 0x834   :  { %v2986_v15 = vpop.f32.mrb[121].mxu1  ;;  %v7421_v30 = vadd.f32 %v5068_v43, %v7375_v45 }
 0x835   :  { %v7418_v54 = vadd.f32 %v7375_v45, %v2986_v15  ;;  %v5069_v63 = vpop.f32.mrb[122].mxu1 }
 0x836   :  { %v2989_v60 = vpop.f32.mrb[123].mxu1  ;;  %v7429_v44 = vadd.f32 %v5069_v63, %v7375_v45  ;;  %v3129_v7 = vmul.f32 %v7421_v30, %v7421_v30 }
 0x837   :  { %v3127_v32 = vmul.f32 %v7418_v54, %v7418_v54  ;;  %v7426_v42 = vadd.f32 %v7375_v45, %v2989_v60 }
 0x838   :  { %v3130_v4 = vmul.f32 %v7429_v44, %v7429_v44 }
 0x839   :  { %v3128_v53 = vmul.f32 %v7426_v42, %v7426_v42  ;;  %3167 = vadd.xlane.f32.xlu1 %v3127_v32 }
 0x83b   :  { %3169 = vadd.xlane.f32.xlu0 %v3128_v53 }
 0x83d   :  { %3171 = vadd.xlane.f32.xlu1 %v3129_v7 }
 0x83f   :  { %3173 = vadd.xlane.f32.xlu0 %v3130_v4 }
 0x843   :  { %v5072_v25 = vpop.f32.mrb[124].mxu1 }
 0x844   :  { %v3002_v28 = vpop.f32.mrb[125].mxu1  ;;  %v7441_v40 = vadd.f32 %v5072_v25, %v7375_v45 }
 0x845   :  { %v7438_v18 = vadd.f32 %v7375_v45, %v3002_v28  ;;  %v5073_v49 = vpop.f32.mrb[126].mxu1 }
 0x846   :  { %v3005_v36 = vpop.f32.mrb[127].mxu1  ;;  %v7449_v56 = vadd.f32 %v5073_v49, %v7375_v45  ;;  %v3133_v48 = vmul.f32 %v7441_v40, %v7441_v40 }
 0x847   :  { %v3131_v58 = vmul.f32 %v7438_v18, %v7438_v18  ;;  %v7446_v19 = vadd.f32 %v7375_v45, %v3005_v36 }
 0x848   :  { %v3134_v2 = vmul.f32 %v7449_v56, %v7449_v56 }
 0x849   :  { %v3132_v47 = vmul.f32 %v7446_v19, %v7446_v19  ;;  %3175 = vadd.xlane.f32.xlu1 %v3131_v58 }
 0x84b   :  { %3177 = vadd.xlane.f32.xlu0 %v3132_v47 }
 0x84d   :  { %3179 = vadd.xlane.f32.xlu1 %v3133_v48 }
 0x84f   :  { %3181 = vadd.xlane.f32.xlu0 %v3134_v2 }
 0x853   :  { %v5076_v21 = vpop.f32.mrb[128].mxu1 }
 0x854   :  { %v3018_v26 = vpop.f32.mrb[129].mxu1  ;;  %v7461_v23 = vadd.f32 %v5076_v21, %v7375_v45 }
 0x855   :  { %v7458_v20 = vadd.f32 %v7375_v45, %v3018_v26  ;;  %v5077_v1 = vpop.f32.mrb[130].mxu1 }
 0x856   :  { %v3021_v39 = vpop.f32.mrb[131].mxu1  ;;  %v7469_v34 = vadd.f32 %v5077_v1, %v7375_v45  ;;  %v3137_v14 = vmul.f32 %v7461_v23, %v7461_v23 }
 0x857   :  { %v3135_v22 = vmul.f32 %v7458_v20, %v7458_v20  ;;  %v7466_v16 = vadd.f32 %v7375_v45, %v3021_v39 }
 0x858   :  { %v3138_v33 = vmul.f32 %v7469_v34, %v7469_v34 }
 0x859   :  { %v3136_v35 = vmul.f32 %v7466_v16, %v7466_v16  ;;  %3183 = vadd.xlane.f32.xlu1 %v3135_v22 }
 0x85b   :  { %3185 = vadd.xlane.f32.xlu0 %v3136_v35 }
 0x85d   :  { %3187 = vadd.xlane.f32.xlu1 %v3137_v14 }
 0x85f   :  { %3189 = vadd.xlane.f32.xlu0 %v3138_v33 }
 0x863   :  { %v5080_v12 = vpop.f32.mrb[132].mxu1 }
 0x864   :  { %v3034_v50 = vpop.f32.mrb[133].mxu1  ;;  %v7481_v13 = vadd.f32 %v5080_v12, %v7375_v45 }
 0x865   :  { %v7478_v37 = vadd.f32 %v7375_v45, %v3034_v50  ;;  %v5081_v57 = vpop.f32.mrb[134].mxu1 }
 0x866   :  { %v3037_v59 = vpop.f32.mrb[135].mxu1  ;;  %v7489_v55 = vadd.f32 %v5081_v57, %v7375_v45  ;;  %v3141_v24 = vmul.f32 %v7481_v13, %v7481_v13 }
 0x867   :  { %v3139_v10 = vmul.f32 %v7478_v37, %v7478_v37  ;;  %v7486_v62 = vadd.f32 %v7375_v45, %v3037_v59 }
 0x868   :  { %v3142_v51 = vmul.f32 %v7489_v55, %v7489_v55 }
 0x869   :  { %v3140_v11 = vmul.f32 %v7486_v62, %v7486_v62  ;;  %3191 = vadd.xlane.f32.xlu1 %v3139_v10 }
 0x86b   :  { %3193 = vadd.xlane.f32.xlu0 %v3140_v11 }
 0x86d   :  { %3195 = vadd.xlane.f32.xlu1 %v3141_v24 }
 0x86f   :  { %3197 = vadd.xlane.f32.xlu0 %v3142_v51 }
 0x873   :  { %v5084_v5 = vpop.f32.mrb[136].mxu1 }
 0x874   :  { %v3050_v29 = vpop.f32.mrb[137].mxu1  ;;  %v7501_v52 = vadd.f32 %v5084_v5, %v7375_v45 }
 0x875   :  { %v7498_v31 = vadd.f32 %v7375_v45, %v3050_v29  ;;  %v5085_v41 = vpop.f32.mrb[138].mxu1 }
 0x876   :  { %v3053_v43 = vpop.f32.mrb[139].mxu1  ;;  %v7509_v60 = vadd.f32 %v5085_v41, %v7375_v45  ;;  %v3145_v3 = vmul.f32 %v7501_v52, %v7501_v52 }
 0x877   :  { %v3143_v15 = vmul.f32 %v7498_v31, %v7498_v31  ;;  %v7506_v63 = vadd.f32 %v7375_v45, %v3053_v43 }
 0x878   :  { %v3146_v53 = vmul.f32 %v7509_v60, %v7509_v60 }
 0x879   :  { %v3144_v32 = vmul.f32 %v7506_v63, %v7506_v63  ;;  %3199 = vadd.xlane.f32.xlu1 %v3143_v15 }
 0x87b   :  { %3201 = vadd.xlane.f32.xlu0 %v3144_v32 }
 0x87d   :  { %3203 = vadd.xlane.f32.xlu1 %v3145_v3 }
 0x87f   :  { %3205 = vadd.xlane.f32.xlu0 %v3146_v53 }
 0x883   :  { %v5088_v7 = vpop.f32.mrb[140].mxu1 }
 0x884   :  { %v3066_v8 = vpop.f32.mrb[141].mxu1  ;;  %v7521_v49 = vadd.f32 %v5088_v7, %v7375_v45 }
 0x885   :  { %v7518_v4 = vadd.f32 %v7375_v45, %v3066_v8  ;;  %v5089_v25 = vpop.f32.mrb[142].mxu1 }
 0x886   :  { %v3069_v28 = vpop.f32.mrb[143].mxu1  ;;  %v7529_v47 = vadd.f32 %v5089_v25, %v7375_v45  ;;  %v3149_v2 = vmul.f32 %v7521_v49, %v7521_v49 }
 0x887   :  { %v3147_v36 = vmul.f32 %v7518_v4, %v7518_v4  ;;  %v7526_v58 = vadd.f32 %v7375_v45, %v3069_v28 }
 0x888   :  { %v3150_v21 = vmul.f32 %v7529_v47, %v7529_v47 }
 0x889   :  { %v3148_v48 = vmul.f32 %v7526_v58, %v7526_v58  ;;  %3207 = vadd.xlane.f32.xlu1 %v3147_v36 }
 0x88b   :  { %3209 = vadd.xlane.f32.xlu0 %v3148_v48 }
 0x88d   :  { %3211 = vadd.xlane.f32.xlu1 %v3149_v2 }
 0x88f   :  { %3213 = vadd.xlane.f32.xlu0 %v3150_v21 }
 0x8a6   :  { %v3152_v26 = vpop.xlane.xlu1 %3151 }
 0x8a7   :  { %v3215_v1 = vmax.f32 %v3152_v26, 1e-24 }
 0x8a8   :  { %v3154_v39 = vpop.xlane.xlu0 %3153 }
 0x8a9   :  { %5643 = vrsqrt.f32 %v3215_v1  ;;  %v3216_v22 = vmax.f32 %v3154_v39, 1e-24 }
 0x8aa   :  { %v3156_v45 = vpop.xlane.xlu1 %3155 }
 0x8ab   :  { %5645 = vrsqrt.f32 %v3216_v22  ;;  %v3217_v35 = vmax.f32 %v3156_v45, 1e-24 }
 0x8ac   :  { %v3158_v14 = vpop.xlane.xlu0 %3157 }
 0x8ad   :  { %5647 = vrsqrt.f32 %v3217_v35  ;;  %v3218_v33 = vmax.f32 %v3158_v14, 1e-24 }
 0x8af   :  { %5649 = vrsqrt.f32 %v3218_v33 }
 0x8b3   :  { %v5644_v12 = vpop.eup %5643 }
 0x8b4   :  { %v3279_v50 = vmul.f32 %v5644_v12, %v7378_v9 }
 0x8b5   :  { %v5646_v57 = vpop.eup %5645 }
 0x8b6   :  { %v3160_v59 = vpop.xlane.xlu1 %3159  ;;  %v3280_v10 = vmul.f32 %v5646_v57, %v7384_v27  ;;  %v3311_v29 = vmax.f32 %v3279_v50, 0.0 }
 0x8b7   :  { %v5648_v11 = vpop.eup %5647  ;;  %v3219_v24 = vmax.f32 %v3160_v59, 1e-24 }
 0x8b8   :  { %v3281_v51 = vmul.f32 %v5648_v11, %v7381_v61  ;;  %v3162_v5 = vpop.xlane.xlu0 %3161  ;;  %v3312_v41 = vmax.f32 %v3280_v10, 0.0 }
 0x8b9   :  { %v5650_v43 = vpop.eup %5649  ;;  %5651 = vrsqrt.f32 %v3219_v24  ;;  %v3220_v15 = vmax.f32 %v3162_v5, 1e-24 }
 0x8ba   :  { %v3282_v32 = vmul.f32 %v5650_v43, %v7389_v6  ;;  %v3164_v3 = vpop.xlane.xlu1 %3163  ;;  %v3343_v53 = vpack.c.bf16 %v3312_v41, %v3311_v29  ;;  %v3313_v7 = vmax.f32 %v3281_v51, 0.0 }
 0x8bb   :  { %5653 = vrsqrt.f32 %v3220_v15  ;;  %v3221_v9 = vmax.f32 %v3164_v3, 1e-24 }
 0x8bc   :  { %v3314_v8 = vmax.f32 %v3282_v32, 0.0  ;;  %5202 = vmatprep.mubr.bf16.mxu0 %v3343_v53  ;;  %v3166_v27 = vpop.xlane.xlu0 %3165 }
 0x8bd   :  { %5655 = vrsqrt.f32 %v3221_v9  ;;  %v3222_v25 = vmax.f32 %v3166_v27, 1e-24 }
 0x8be   :  { %v3344_v28 = vpack.c.bf16 %v3314_v8, %v3313_v7 }
 0x8bf   :  { %5657 = vrsqrt.f32 %v3222_v25 }
 0x8c0   :  { %5203 = vmatmul.mubr.bf16.vlgmr.msra.gmra.mrb[144].mxu0 %v3344_v28 }
 0x8c3   :  { %v5652_v61 = vpop.eup %5651 }
 0x8c4   :  { %v3283_v36 = vmul.f32 %v5652_v61, %v7398_v0 }
 0x8c5   :  { %v5654_v48 = vpop.eup %5653 }
 0x8c6   :  { %v3168_v2 = vpop.xlane.xlu1 %3167  ;;  %v3284_v6 = vmul.f32 %v5654_v48, %v7406_v46  ;;  %v3315_v39 = vmax.f32 %v3283_v36, 0.0 }
 0x8c7   :  { %v5656_v21 = vpop.eup %5655  ;;  %v3223_v26 = vmax.f32 %v3168_v2, 1e-24 }
 0x8c8   :  { %v3170_v1 = vpop.xlane.xlu0 %3169  ;;  %v3316_v22 = vmax.f32 %v3284_v6, 0.0  ;;  %v3285_v45 = vmul.f32 %v5656_v21, %v7401_v17 }
 0x8c9   :  { %v5658_v35 = vpop.eup %5657  ;;  %5659 = vrsqrt.f32 %v3223_v26  ;;  %v3224_v14 = vmax.f32 %v3170_v1, 1e-24 }
 0x8ca   :  { %v3172_v33 = vpop.xlane.xlu1 %3171  ;;  %v3345_v12 = vpack.c.bf16 %v3316_v22, %v3315_v39  ;;  %v3286_v50 = vmul.f32 %v5658_v35, %v7409_v38  ;;  %v3317_v59 = vmax.f32 %v3285_v45, 0.0 }
 0x8cb   :  { %5661 = vrsqrt.f32 %v3224_v14  ;;  %v3225_v0 = vmax.f32 %v3172_v33, 1e-24 }
 0x8cc   :  { %5206 = vmatprep.mubr.bf16.mxu0 %v3345_v12  ;;  %v3174_v57 = vpop.xlane.xlu0 %3173  ;;  %v3318_v46 = vmax.f32 %v3286_v50, 0.0 }
 0x8cd   :  { %5663 = vrsqrt.f32 %v3225_v0  ;;  %v3226_v10 = vmax.f32 %v3174_v57, 1e-24 }
 0x8ce   :  { %v3346_v11 = vpack.c.bf16 %v3318_v46, %v3317_v59 }
 0x8cf   :  { %5665 = vrsqrt.f32 %v3226_v10 }
 0x8d0   :  { %5207 = vmatmul.mubr.bf16.gmra.mrb[148].mxu0 %v3346_v11 }
 0x8d3   :  { %v5660_v24 = vpop.eup %5659 }
 0x8d4   :  { %v3287_v17 = vmul.f32 %v5660_v24, %v7418_v54 }
 0x8d5   :  { %v5662_v51 = vpop.eup %5661 }
 0x8d6   :  { %v3176_v5 = vpop.xlane.xlu1 %3175  ;;  %v3288_v29 = vmul.f32 %v5662_v51, %v7426_v42  ;;  %v3319_v15 = vmax.f32 %v3287_v17, 0.0 }
 0x8d7   :  { %v5664_v41 = vpop.eup %5663  ;;  %v3227_v38 = vmax.f32 %v3176_v5, 1e-24 }
 0x8d8   :  { %v3178_v43 = vpop.xlane.xlu0 %3177  ;;  %v3320_v32 = vmax.f32 %v3288_v29, 0.0  ;;  %v3289_v3 = vmul.f32 %v5664_v41, %v7421_v30 }
 0x8d9   :  { %v5666_v53 = vpop.eup %5665  ;;  %5667 = vrsqrt.f32 %v3227_v38  ;;  %v3228_v9 = vmax.f32 %v3178_v43, 1e-24 }
 0x8da   :  { %v3180_v7 = vpop.xlane.xlu1 %3179  ;;  %v3347_v8 = vpack.c.bf16 %v3320_v32, %v3319_v15  ;;  %v3290_v27 = vmul.f32 %v5666_v53, %v7429_v44  ;;  %v3321_v28 = vmax.f32 %v3289_v3, 0.0 }
 0x8db   :  { %5669 = vrsqrt.f32 %v3228_v9  ;;  %v3229_v54 = vmax.f32 %v3180_v7, 1e-24 }
 0x8dc   :  { %5210 = vmatprep.mubr.bf16.mxu0 %v3347_v8  ;;  %v3182_v25 = vpop.xlane.xlu0 %3181  ;;  %v3322_v42 = vmax.f32 %v3290_v27, 0.0 }
 0x8dd   :  { %5671 = vrsqrt.f32 %v3229_v54  ;;  %v3230_v61 = vmax.f32 %v3182_v25, 1e-24 }
 0x8de   :  { %v3348_v36 = vpack.c.bf16 %v3322_v42, %v3321_v28 }
 0x8df   :  { %5673 = vrsqrt.f32 %v3230_v61 }
 0x8e0   :  { %5211 = vmatmul.mubr.bf16.gmra.mrb[152].mxu0 %v3348_v36 }
 0x8e3   :  { %v5668_v48 = vpop.eup %5667 }
 0x8e4   :  { %v3291_v30 = vmul.f32 %v5668_v48, %v7438_v18 }
 0x8e5   :  { %v5670_v2 = vpop.eup %5669 }
 0x8e6   :  { %v3184_v6 = vpop.xlane.xlu1 %3183  ;;  %v3292_v21 = vmul.f32 %v5670_v2, %v7446_v19  ;;  %v3323_v39 = vmax.f32 %v3291_v30, 0.0 }
 0x8e7   :  { %v5672_v26 = vpop.eup %5671  ;;  %v3231_v44 = vmax.f32 %v3184_v6, 1e-24 }
 0x8e8   :  { %v3186_v1 = vpop.xlane.xlu0 %3185  ;;  %v3324_v22 = vmax.f32 %v3292_v21, 0.0  ;;  %v3293_v45 = vmul.f32 %v5672_v26, %v7441_v40 }
 0x8e9   :  { %v5674_v35 = vpop.eup %5673  ;;  %5675 = vrsqrt.f32 %v3231_v44  ;;  %v3232_v14 = vmax.f32 %v3186_v1, 1e-24 }
 0x8ea   :  { %v3188_v33 = vpop.xlane.xlu1 %3187  ;;  %v3349_v12 = vpack.c.bf16 %v3324_v22, %v3323_v39  ;;  %v3294_v50 = vmul.f32 %v5674_v35, %v7449_v56  ;;  %v3325_v57 = vmax.f32 %v3293_v45, 0.0 }
 0x8eb   :  { %5677 = vrsqrt.f32 %v3232_v14  ;;  %v3233_v18 = vmax.f32 %v3188_v33, 1e-24 }
 0x8ec   :  { %5214 = vmatprep.mubr.bf16.mxu0 %v3349_v12  ;;  %v3190_v0 = vpop.xlane.xlu0 %3189  ;;  %v3326_v19 = vmax.f32 %v3294_v50, 0.0 }
 0x8ed   :  { %5679 = vrsqrt.f32 %v3233_v18  ;;  %v3234_v59 = vmax.f32 %v3190_v0, 1e-24 }
 0x8ee   :  { %v3350_v46 = vpack.c.bf16 %v3326_v19, %v3325_v57 }
 0x8ef   :  { %5681 = vrsqrt.f32 %v3234_v59 }
 0x8f0   :  { %5215 = vmatmul.mubr.bf16.gmra.mrb[156].mxu0 %v3350_v46 }
 0x8f3   :  { %v5676_v10 = vpop.eup %5675 }
 0x8f4   :  { %v3295_v40 = vmul.f32 %v5676_v10, %v7458_v20 }
 0x8f5   :  { %v5678_v11 = vpop.eup %5677 }
 0x8f6   :  { %v3192_v24 = vpop.xlane.xlu1 %3191  ;;  %v3296_v17 = vmul.f32 %v5678_v11, %v7466_v16  ;;  %v3327_v29 = vmax.f32 %v3295_v40, 0.0 }
 0x8f7   :  { %v5680_v51 = vpop.eup %5679  ;;  %v3235_v56 = vmax.f32 %v3192_v24, 1e-24 }
 0x8f8   :  { %v3194_v5 = vpop.xlane.xlu0 %3193  ;;  %v3328_v41 = vmax.f32 %v3296_v17, 0.0  ;;  %v3297_v38 = vmul.f32 %v5680_v51, %v7461_v23 }
 0x8f9   :  { %v5682_v43 = vpop.eup %5681  ;;  %5683 = vrsqrt.f32 %v3235_v56  ;;  %v3236_v15 = vmax.f32 %v3194_v5, 1e-24 }
 0x8fa   :  { %v3196_v32 = vpop.xlane.xlu1 %3195  ;;  %v3351_v3 = vpack.c.bf16 %v3328_v41, %v3327_v29  ;;  %v3298_v53 = vmul.f32 %v5682_v43, %v7469_v34  ;;  %v3329_v7 = vmax.f32 %v3297_v38, 0.0 }
 0x8fb   :  { %5685 = vrsqrt.f32 %v3236_v15  ;;  %v3237_v20 = vmax.f32 %v3196_v32, 1e-24 }
 0x8fc   :  { %5218 = vmatprep.mubr.bf16.mxu0 %v3351_v3  ;;  %v3198_v9 = vpop.xlane.xlu0 %3197  ;;  %v3330_v16 = vmax.f32 %v3298_v53, 0.0 }
 0x8fd   :  { %5687 = vrsqrt.f32 %v3237_v20  ;;  %v3238_v8 = vmax.f32 %v3198_v9, 1e-24 }
 0x8fe   :  { %v3352_v27 = vpack.c.bf16 %v3330_v16, %v3329_v7 }
 0x8ff   :  { %5689 = vrsqrt.f32 %v3238_v8 }
 0x900   :  { %5219 = vmatmul.mubr.bf16.gmra.mrb[160].mxu0 %v3352_v27 }
 0x903   :  { %v5684_v54 = vpop.eup %5683 }
 0x904   :  { %v3299_v23 = vmul.f32 %v5684_v54, %v7478_v37 }
 0x905   :  { %v5686_v25 = vpop.eup %5685 }
 0x906   :  { %v3200_v28 = vpop.xlane.xlu1 %3199  ;;  %v3300_v42 = vmul.f32 %v5686_v25, %v7486_v62  ;;  %v3331_v48 = vmax.f32 %v3299_v23, 0.0 }
 0x907   :  { %v5688_v61 = vpop.eup %5687  ;;  %v3239_v34 = vmax.f32 %v3200_v28, 1e-24 }
 0x908   :  { %v3202_v36 = vpop.xlane.xlu0 %3201  ;;  %v3332_v30 = vmax.f32 %v3300_v42, 0.0  ;;  %v3301_v2 = vmul.f32 %v5688_v61, %v7481_v13 }
 0x909   :  { %v5690_v6 = vpop.eup %5689  ;;  %5691 = vrsqrt.f32 %v3239_v34  ;;  %v3240_v21 = vmax.f32 %v3202_v36, 1e-24 }
 0x90a   :  { %v3204_v26 = vpop.xlane.xlu1 %3203  ;;  %v3353_v44 = vpack.c.bf16 %v3332_v30, %v3331_v48  ;;  %v3302_v1 = vmul.f32 %v5690_v6, %v7489_v55  ;;  %v3333_v22 = vmax.f32 %v3301_v2, 0.0 }
 0x90b   :  { %5693 = vrsqrt.f32 %v3240_v21  ;;  %v3241_v37 = vmax.f32 %v3204_v26, 1e-24 }
 0x90c   :  { %5222 = vmatprep.mubr.bf16.mxu0 %v3353_v44  ;;  %v3206_v39 = vpop.xlane.xlu0 %3205  ;;  %v3334_v62 = vmax.f32 %v3302_v1, 0.0 }
 0x90d   :  { %5695 = vrsqrt.f32 %v3241_v37  ;;  %v3242_v45 = vmax.f32 %v3206_v39, 1e-24 }
 0x90e   :  { %v3354_v35 = vpack.c.bf16 %v3334_v62, %v3333_v22 }
 0x90f   :  { %5697 = vrsqrt.f32 %v3242_v45 }
 0x910   :  { %5223 = vmatmul.mubr.bf16.gmra.mrb[164].mxu0 %v3354_v35 }
 0x913   :  { %v5692_v14 = vpop.eup %5691 }
 0x914   :  { %v3303_v13 = vmul.f32 %v5692_v14, %v7498_v31 }
 0x915   :  { %v5694_v33 = vpop.eup %5693 }
 0x916   :  { %v3208_v12 = vpop.xlane.xlu1 %3207  ;;  %v3304_v50 = vmul.f32 %v5694_v33, %v7506_v63  ;;  %v3335_v57 = vmax.f32 %v3303_v13, 0.0 }
 0x917   :  { %v5696_v18 = vpop.eup %5695  ;;  %v3243_v55 = vmax.f32 %v3208_v12, 1e-24 }
 0x918   :  { %v3210_v0 = vpop.xlane.xlu0 %3209  ;;  %v3336_v19 = vmax.f32 %v3304_v50, 0.0  ;;  %v3305_v59 = vmul.f32 %v5696_v18, %v7501_v52 }
 0x919   :  { %v5698_v46 = vpop.eup %5697  ;;  %5699 = vrsqrt.f32 %v3243_v55  ;;  %v3244_v10 = vmax.f32 %v3210_v0, 1e-24 }
 0x91a   :  { %v3212_v40 = vpop.xlane.xlu1 %3211  ;;  %v3355_v11 = vpack.c.bf16 %v3336_v19, %v3335_v57  ;;  %v3306_v24 = vmul.f32 %v5698_v46, %v7509_v60  ;;  %v3337_v51 = vmax.f32 %v3305_v59, 0.0 }
 0x91b   :  { %5701 = vrsqrt.f32 %v3244_v10  ;;  %v3245_v31 = vmax.f32 %v3212_v40, 1e-24 }
 0x91c   :  { %5226 = vmatprep.mubr.bf16.mxu0 %v3355_v11  ;;  %v3214_v17 = vpop.xlane.xlu0 %3213  ;;  %v3338_v63 = vmax.f32 %v3306_v24, 0.0 }
 0x91d   :  { %5703 = vrsqrt.f32 %v3245_v31  ;;  %v3246_v56 = vmax.f32 %v3214_v17, 1e-24 }
 0x91e   :  { %v3356_v5 = vpack.c.bf16 %v3338_v63, %v3337_v51 }
 0x91f   :  { %5705 = vrsqrt.f32 %v3246_v56 }
 0x920   :  { %5227 = vmatmul.mubr.bf16.gmra.mrb[168].mxu0 %v3356_v5 }
 0x923   :  { %v5700_v29 = vpop.eup %5699 }
 0x924   :  { %v3307_v52 = vmul.f32 %v5700_v29, %v7518_v4  ;;  %v7572_v4 = vld [vmem:[%s7633_s15] ss:$0 sm:$0xff]  ;;  %s5951_s15 = smov [#allocation17]  }
 0x925   :  { %v5702_v41 = vpop.eup %5701  ;;  %s4142_s23 = sshll.u32 %s5951_s15, 4  ;;  %s4143_s23 = int_to_ptr.vmem [resolvable:$true] %s4142_s23 }
 0x926   :  { %v3308_v38 = vmul.f32 %v5702_v41, %v7526_v58  ;;  %v3339_v15 = vmax.f32 %v3307_v52, 0.0  ;;  %s5905_s28 = scalar_lea.vmem %s4143_s23, 4096  ;;  %p5910_p3 = scmp.lt.s32.totalorder %s4143_s23, %s4143_s23 }
 0x927   :  { %v5704_v43 = vpop.eup %5703  ;;  %p5906_p2 = scmp.ne.s32.totalorder %s4143_s23, %s5905_s28  ;;  %p5911_p4 = scmp.lt.s32.totalorder %s5905_s28, %s5905_s28 }
 0x928   :  { %v3340_v60 = vmax.f32 %v3308_v38, 0.0  ;;  %v3309_v32 = vmul.f32 %v5704_v43, %v7521_v49 }
 0x929   :  { %v5706_v3 = vpop.eup %5705  ;;  %p5912_p5 = por %p5911_p4, %p5910_p3 }
 0x92a   :  { %v3357_v53 = vpack.c.bf16 %v3340_v60, %v3339_v15  ;;  %v3310_v20 = vmul.f32 %v5706_v3, %v7529_v47  ;;  %v3341_v9 = vmax.f32 %v3309_v32, 0.0 }
 0x92b   :  { %p5913_p6 = pnand %p5912_p5, %p5906_p2 }
 0x92c   :  { %5230 = vmatprep.mubr.bf16.mxu0 %v3357_v53  ;;  %v3342_v7 = vmax.f32 %v3310_v20, 0.0 }
 0x92e   :  { %v3358_v16 = vpack.c.bf16 %v3342_v7, %v3341_v9 }
 0x930   :  { %5231 = vmatmul.mubr.bf16.gmra.mrb[172].mxu0 %v3358_v16 }
 0x993   :  { %v5204_v58 = vpop.f32.mrb[144].mxu0 }
 0x994   :  { %v4075_v8 = vadd.f32 %v5204_v58, %v7572_v4  ;;  %v3907_v27 = vpop.f32.mrb[145].mxu0 }
 0x995   :  { %v4073_v49 = vadd.f32 %v7572_v4, %v3907_v27  ;;  %v5205_v54 = vpop.f32.mrb[146].mxu0 }
 0x996   :  { %4107 = vst [vmem:[#allocation17 + $0x10] sm:$0xff] %v4075_v8  ;;  %v4076_v47 = vadd.f32 %v5205_v54, %v7572_v4  ;;  %v3910_v23 = vpop.f32.mrb[147].mxu0 }
 0x997   :  { %4105 = vst [vmem:[#allocation17] sm:$0xff] %v4073_v49  ;;  %v4074_v25 = vadd.f32 %v7572_v4, %v3910_v23 }
 0x998   :  { %4108 = vst [vmem:[#allocation17 + $0x18] sm:$0xff] %v4076_v47 }
 0x999   :  { %4106 = vst [vmem:[#allocation17 + $0x8] sm:$0xff] %v4074_v25 }
 0x9a3   :  { %v5208_v28 = vpop.f32.mrb[148].mxu0 }
 0x9a4   :  { %v4079_v42 = vadd.f32 %v5208_v28, %v7572_v4  ;;  %v3923_v61 = vpop.f32.mrb[149].mxu0 }
 0x9a5   :  { %v4077_v34 = vadd.f32 %v7572_v4, %v3923_v61  ;;  %v5209_v36 = vpop.f32.mrb[150].mxu0 }
 0x9a6   :  { %4111 = vst [vmem:[#allocation17 + $0x30] sm:$0xff] %v4079_v42  ;;  %v4080_v48 = vadd.f32 %v5209_v36, %v7572_v4  ;;  %v3926_v30 = vpop.f32.mrb[151].mxu0 }
 0x9a7   :  { %4109 = vst [vmem:[#allocation17 + $0x20] sm:$0xff] %v4077_v34  ;;  %v4078_v2 = vadd.f32 %v7572_v4, %v3926_v30 }
 0x9a8   :  { %4112 = vst [vmem:[#allocation17 + $0x38] sm:$0xff] %v4080_v48 }
 0x9a9   :  { %4110 = vst [vmem:[#allocation17 + $0x28] sm:$0xff] %v4078_v2 }
 0x9b3   :  { %v5212_v6 = vpop.f32.mrb[152].mxu0 }
 0x9b4   :  { %v4083_v21 = vadd.f32 %v5212_v6, %v7572_v4  ;;  %v3939_v26 = vpop.f32.mrb[153].mxu0 }
 0x9b5   :  { %v4081_v44 = vadd.f32 %v7572_v4, %v3939_v26  ;;  %v5213_v1 = vpop.f32.mrb[154].mxu0 }
 0x9b6   :  { %4115 = vst [vmem:[#allocation17 + $0x50] sm:$0xff] %v4083_v21  ;;  %v4084_v37 = vadd.f32 %v5213_v1, %v7572_v4  ;;  %v3942_v39 = vpop.f32.mrb[155].mxu0 }
 0x9b7   :  { %4113 = vst [vmem:[#allocation17 + $0x40] sm:$0xff] %v4081_v44  ;;  %v4082_v22 = vadd.f32 %v7572_v4, %v3942_v39 }
 0x9b8   :  { %4116 = vst [vmem:[#allocation17 + $0x58] sm:$0xff] %v4084_v37 }
 0x9b9   :  { %4114 = vst [vmem:[#allocation17 + $0x48] sm:$0xff] %v4082_v22 }
 0x9c3   :  { %v5216_v62 = vpop.f32.mrb[156].mxu0 }
 0x9c4   :  { %v4087_v45 = vadd.f32 %v5216_v62, %v7572_v4  ;;  %v3955_v35 = vpop.f32.mrb[157].mxu0 }
 0x9c5   :  { %v4085_v14 = vadd.f32 %v7572_v4, %v3955_v35  ;;  %v5217_v13 = vpop.f32.mrb[158].mxu0 }
 0x9c6   :  { %4119 = vst [vmem:[#allocation17 + $0x70] sm:$0xff] %v4087_v45  ;;  %v4088_v33 = vadd.f32 %v5217_v13, %v7572_v4  ;;  %v3958_v12 = vpop.f32.mrb[159].mxu0 }
 0x9c7   :  { %4117 = vst [vmem:[#allocation17 + $0x60] sm:$0xff] %v4085_v14  ;;  %v4086_v50 = vadd.f32 %v7572_v4, %v3958_v12 }
 0x9c8   :  { %4120 = vst [vmem:[#allocation17 + $0x78] sm:$0xff] %v4088_v33 }
 0x9c9   :  { %4118 = vst [vmem:[#allocation17 + $0x68] sm:$0xff] %v4086_v50 }
 0x9d3   :  { %v5220_v18 = vpop.f32.mrb[160].mxu0 }
 0x9d4   :  { %v4091_v55 = vadd.f32 %v5220_v18, %v7572_v4  ;;  %v3971_v0 = vpop.f32.mrb[161].mxu0 }
 0x9d5   :  { %v4089_v57 = vadd.f32 %v7572_v4, %v3971_v0  ;;  %v5221_v19 = vpop.f32.mrb[162].mxu0 }
 0x9d6   :  { %4123 = vst [vmem:[#allocation17 + $0x90] sm:$0xff] %v4091_v55  ;;  %v4092_v59 = vadd.f32 %v5221_v19, %v7572_v4  ;;  %v3974_v46 = vpop.f32.mrb[163].mxu0 }
 0x9d7   :  { %4121 = vst [vmem:[#allocation17 + $0x80] sm:$0xff] %v4089_v57  ;;  %v4090_v10 = vadd.f32 %v7572_v4, %v3974_v46 }
 0x9d8   :  { %4124 = vst [vmem:[#allocation17 + $0x98] sm:$0xff] %v4092_v59 }
 0x9d9   :  { %4122 = vst [vmem:[#allocation17 + $0x88] sm:$0xff] %v4090_v10 }
 0x9e3   :  { %v5224_v40 = vpop.f32.mrb[164].mxu0 }
 0x9e4   :  { %v4095_v11 = vadd.f32 %v5224_v40, %v7572_v4  ;;  %v3987_v24 = vpop.f32.mrb[165].mxu0 }
 0x9e5   :  { %v4093_v31 = vadd.f32 %v7572_v4, %v3987_v24  ;;  %v5225_v17 = vpop.f32.mrb[166].mxu0 }
 0x9e6   :  { %4127 = vst [vmem:[#allocation17 + $0xb0] sm:$0xff] %v4095_v11  ;;  %v4096_v51 = vadd.f32 %v5225_v17, %v7572_v4  ;;  %v3990_v63 = vpop.f32.mrb[167].mxu0 }
 0x9e7   :  { %4125 = vst [vmem:[#allocation17 + $0xa0] sm:$0xff] %v4093_v31  ;;  %v4094_v56 = vadd.f32 %v7572_v4, %v3990_v63 }
 0x9e8   :  { %4128 = vst [vmem:[#allocation17 + $0xb8] sm:$0xff] %v4096_v51 }
 0x9e9   :  { %4126 = vst [vmem:[#allocation17 + $0xa8] sm:$0xff] %v4094_v56 }
 0x9f3   :  { %v5228_v5 = vpop.f32.mrb[168].mxu0 }
 0x9f4   :  { %v4099_v29 = vadd.f32 %v5228_v5, %v7572_v4  ;;  %v4003_v52 = vpop.f32.mrb[169].mxu0 }
 0x9f5   :  { %v4097_v41 = vadd.f32 %v7572_v4, %v4003_v52  ;;  %v5229_v38 = vpop.f32.mrb[170].mxu0 }
 0x9f6   :  { %4131 = vst [vmem:[#allocation17 + $0xd0] sm:$0xff] %v4099_v29  ;;  %v4100_v43 = vadd.f32 %v5229_v38, %v7572_v4  ;;  %v4006_v15 = vpop.f32.mrb[171].mxu0 }
 0x9f7   :  { %4129 = vst [vmem:[#allocation17 + $0xc0] sm:$0xff] %v4097_v41  ;;  %v4098_v60 = vadd.f32 %v7572_v4, %v4006_v15 }
 0x9f8   :  { %4132 = vst [vmem:[#allocation17 + $0xd8] sm:$0xff] %v4100_v43 }
 0x9f9   :  { %4130 = vst [vmem:[#allocation17 + $0xc8] sm:$0xff] %v4098_v60 }
 0xa03   :  { %v5232_v32 = vpop.f32.mrb[172].mxu0 }
 0xa04   :  { %v4103_v3 = vadd.f32 %v5232_v32, %v7572_v4  ;;  %v4019_v53 = vpop.f32.mrb[173].mxu0 }
 0xa05   :  { %v4101_v20 = vadd.f32 %v7572_v4, %v4019_v53  ;;  %v5233_v9 = vpop.f32.mrb[174].mxu0 }
 0xa06   :  { %4135 = vst [vmem:[#allocation17 + $0xf0] sm:$0xff] %v4103_v3  ;;  %v4104_v7 = vadd.f32 %v5233_v9, %v7572_v4  ;;  %v4022_v16 = vpop.f32.mrb[175].mxu0 }
 0xa07   :  { %4133 = vst [vmem:[#allocation17 + $0xe0] sm:$0xff] %v4101_v20  ;;  %v4102_v58 = vadd.f32 %v7572_v4, %v4022_v16 }
 0xa08   :  { %4136 = vst [vmem:[#allocation17 + $0xf8] sm:$0xff] %v4104_v7 }
 0xa09   :  { %4134 = vst [vmem:[#allocation17 + $0xe8] sm:$0xff] %v4102_v58 }
 0xa0a   :  { %5916 = shalt.err (!%p5913_p6)
}
 0xa0b   :  { %s5917_s20 = scalar_lea.hbm %s7634_s16, 4096 }
 0xa0c   :  { %p5918_p7 = scmp.ne.s32.totalorder %s7634_s16, %s5917_s20  ;;  %p5921_p8 = scmp.lt.u32.totalorder %s5917_s20, %s7634_s16 }
 0xa0e   :  { %p5923_p9 = pnand %p5921_p8, %p5918_p7 }
 0xa10   :  { %5926 = shalt.err (!%p5923_p9)
}
 0xa11   :  { %s5952_s4 = smov 128   ;;  %s5953_s12 = smov 8  }
 0xa12   :  { %4148 = dma.vmem_to_hbm [thread:$0]  %s4143_s23, 4096, %s7634_s16, [#allocation4], %s5952_s4, %s5952_s4, %s5953_s12  }
 0xa13   :  { %5937 = dma.done.wait [#allocation4], 4096  }
 0xa14   :  { %5938 = vsyncadd [#allocation4], 4294963200 }
 0xa15   :  { %4152 = vsyncpa [#allocation3], 1 }
 0xa16   :  { %4153 = vsyncpa [#allocation6], 1 }
 0xa17   :  { %4154 = vsyncpa [#allocation9], 1 }
 0xa18   :  { %4155 = vsyncpa [#allocation12], 1 }
 0xa19   :  { %4156 = vsyncpa [#allocation15], 1 }
 0xa1a   :  { %4157 = vsyncpa [#allocation4], 1 }

</bundles_post_ra>
